<compile_context>
chip_gen: v7x
topology: tpu7x:2x2x1
jax: 0.10.0
libtpu: 0.0.40
codegen_flags: <defaults>
</compile_context>

<pallas_src>
import functools

import jax
import jax.numpy as jnp
from jax.experimental import pallas as pl
from jax.experimental.pallas import tpu as pltpu


def _round_up(x, m):
    return ((x + m - 1) // m) * m


def _choose_tn(n, max_tn=640):
    """Largest multiple-of-128 tile dividing n (<= max_tn); prefer >=2 grid steps."""
    cands = [t for t in range(128, min(n, max_tn) + 1, 128) if n % t == 0]
    if not cands:
        return n
    multi = [t for t in cands if n // t >= 2]
    return max(multi) if multi else max(cands)


def _linear_kernel(x_ref, w_ref, b_ref, o_ref, *, apply_softplus):
    """One (M, tn) output tile: o = [softplus](x @ W[:, tile] + b[tile]).

    Full-K contraction in a single MXU call: bf16 operands, f32 accumulation.
    """
    y = jnp.dot(
        x_ref[...].astype(jnp.bfloat16),
        w_ref[...],
        preferred_element_type=jnp.float32,
    )
    y = y + b_ref[...]  # bias broadcast over batch rows (f32)
    if apply_softplus:
        # numerically stable softplus: max(y, 0) + log1p(exp(-|y|))
        y = jnp.maximum(y, 0.0) + jnp.log1p(jnp.exp(-jnp.abs(y)))
    o_ref[...] = y.astype(o_ref.dtype)


def pallas_linear(x, w, b, *, apply_softplus):
    """x: (M, K) f32, w: (K, N) bf16, b: (1, N) f32 — all padded to (8,128) tiles."""
    M, K = x.shape
    Kw, N = w.shape
    assert K == Kw and b.shape == (1, N)
    assert M % 8 == 0 and K % 128 == 0 and N % 128 == 0

    tn = _choose_tn(N)
    kernel = functools.partial(_linear_kernel, apply_softplus=apply_softplus)

    return pl.pallas_call(
        kernel,
        out_shape=jax.ShapeDtypeStruct((M, N), jnp.float32),
        grid_spec=pltpu.PrefetchScalarGridSpec(
            num_scalar_prefetch=0,
            grid=(N // tn,),
            in_specs=[
                # full activations, resident across all N tiles (DMA'd once)
                pl.BlockSpec((M, K), lambda j: (0, 0)),
                # full-K weight column tile (streamed, double-buffered)
                pl.BlockSpec((K, tn), lambda j: (0, j)),
                # bias tile
                pl.BlockSpec((1, tn), lambda j: (0, j)),
            ],
            out_specs=pl.BlockSpec((M, tn), lambda j: (0, j)),
        ),
        compiler_params=pltpu.CompilerParams(
            dimension_semantics=("parallel",),
            vmem_limit_bytes=32 * 1024 * 1024,
        ),
    )(x, w, b)


def init_params(key, input_size):
    """Deterministic parameter init mimicking nn.Linear's U(-1/sqrt(fan_in), +)."""
    dims = [input_size, 100, 1500, 1250, 2000, 1]
    params = []
    for i in range(5):
        fan_in, fan_out = dims[i], dims[i + 1]
        key, kw, kb = jax.random.split(key, 3)
        bound = 1.0 / jnp.sqrt(fan_in)
        # stored as [in, out] so forward is x @ W + b (matches nn.Linear's x @ W.T)
        w = jax.random.uniform(kw, (fan_in, fan_out), jnp.float32, -bound, bound)
        b = jax.random.uniform(kb, (fan_out,), jnp.float32, -bound, bound)
        params.append((w, b))
    return params


def pad_params(params):
    """Zero-pad to (multiple-of-128) feature dims; weights in bf16, biases in f32."""
    padded = []
    for w, b in params:
        k, n = w.shape
        kp, np_ = _round_up(k, 128), _round_up(n, 128)
        w_p = (
            jnp.zeros((kp, np_), jnp.float32).at[:k, :n].set(w).astype(jnp.bfloat16)
        )
        b_p = jnp.zeros((1, np_), jnp.float32).at[0, :n].set(b)
        padded.append((w_p, b_p))
    return padded


@jax.jit
def net_forward(x, padded_params):
    """x: (batch, input_size) float32 -> (batch, 1) float32."""
    batch, in_feat = x.shape
    m_p = _round_up(batch, 8)
    k_p = padded_params[0][0].shape[0]
    x_p = jnp.zeros((m_p, k_p), jnp.float32).at[:batch, :in_feat].set(x)

    h = x_p
    n_layers = len(padded_params)
    for i, (w_p, b_p) in enumerate(padded_params):
        apply_softplus = i < n_layers - 1  # softplus after fc1..fc4, not fc5
        h = pallas_linear(h, w_p, b_p, apply_softplus=apply_softplus)

    return h[:batch, :1]  # unpad: final layer has 1 real output feature


def reference_forward(x, params):
    h = x
    for i, (w, b) in enumerate(params):
        h = h @ w + b
        if i < len(params) - 1:
            h = jax.nn.softplus(h)
    return h


if __name__ == "__main__":
    key = jax.random.PRNGKey(0)
    k_params, k_x = jax.random.split(key)

    batch, input_size = 2, 32
    params = init_params(k_params, input_size)
    padded_params = pad_params(params)

    x = jax.random.normal(k_x, (batch, input_size), jnp.float32)

    out = net_forward(x, padded_params)
    out = jax.block_until_ready(out)

    ref = reference_forward(x, params)
    assert out.shape == (batch, 1), out.shape
    # bf16 weights -> loosened tolerance vs the f32 reference
    assert jnp.allclose(out, ref, atol=2e-2, rtol=2e-2), (out, ref)

    print("KERNEL_OK")
</pallas_src>

<mosaic_0001>
module attributes {stable_mosaic.version = 11 : i64} {
  func.func @_linear_kernel(%arg0: i32, %arg1: memref<8x128xf32, #tpu.memory_space<vmem>>, %arg2: memref<128x128xbf16, #tpu.memory_space<vmem>>, %arg3: memref<1x128xf32, #tpu.memory_space<vmem>>, %arg4: memref<8x128xf32, #tpu.memory_space<vmem>>) attributes {dimension_semantics = [#tpu.dimension_semantics<parallel>], iteration_bounds = array<i64: 1>, scalar_prefetch = 0 : i64, scratch_operands = 0 : i64, tpu.core_type = #tpu.core_type<tc>, window_params = [{pipeline_mode = #tpu.pipeline_mode<synchronous>, transform_indices = @transform_0, window_bounds = array<i64: 8, 128>}, {transform_indices = @transform_1, window_bounds = array<i64: 128, 128>}, {transform_indices = @transform_2, window_bounds = array<i64: 1, 128>}, {transform_indices = @transform_3, window_bounds = array<i64: 8, 128>}]} {
    %c0 = arith.constant 0 : index
    %c0_0 = arith.constant 0 : index
    %0 = vector.load %arg1[%c0, %c0_0] : memref<8x128xf32, #tpu.memory_space<vmem>>, vector<8x128xf32>
    %1 = arith.truncf %0 : vector<8x128xf32> to vector<8x128xbf16>
    %c0_1 = arith.constant 0 : index
    %c0_2 = arith.constant 0 : index
    %2 = vector.load %arg2[%c0_1, %c0_2] : memref<128x128xbf16, #tpu.memory_space<vmem>>, vector<128x128xbf16>
    %cst = arith.constant dense<0.000000e+00> : vector<8x128xf32>
    %3 = tpu.matmul %1, %2, %cst {dimension_numbers = #tpu.dot_dimension_numbers<[1], [0], [0], [1], [0, 0, 1, 1], [], []>} : vector<8x128xbf16>, vector<128x128xbf16>, vector<8x128xf32> -> vector<8x128xf32>
    %c0_3 = arith.constant 0 : index
    %c0_4 = arith.constant 0 : index
    %4 = vector.load %arg3[%c0_3, %c0_4] : memref<1x128xf32, #tpu.memory_space<vmem>>, vector<1x128xf32>
    %5 = vector.broadcast %4 : vector<1x128xf32> to vector<8x128xf32>
    %6 = arith.addf %3, %5 : vector<8x128xf32>
    %cst_5 = arith.constant 0.000000e+00 : f32
    %7 = vector.broadcast %cst_5 : f32 to vector<8x128xf32>
    %8 = arith.maximumf %6, %7 : vector<8x128xf32>
    %9 = math.absf %6 : vector<8x128xf32>
    %cst_6 = arith.constant 0.000000e+00 : f32
    %10 = vector.broadcast %cst_6 : f32 to vector<8x128xf32>
    %11 = arith.subf %10, %9 : vector<8x128xf32>
    %12 = math.exp %11 : vector<8x128xf32>
    %13 = math.log1p %12 : vector<8x128xf32>
    %14 = arith.addf %8, %13 : vector<8x128xf32>
    %c0_7 = arith.constant 0 : index
    %c0_8 = arith.constant 0 : index
    %15 = vector.load %arg4[%c0_7, %c0_8] : memref<8x128xf32, #tpu.memory_space<vmem>>, vector<8x128xf32>
    tpu.vector_store %arg4[%c0_7, %c0_8], %14 {strides = array<i32>} : memref<8x128xf32, #tpu.memory_space<vmem>>, vector<8x128xf32>,
    return
  }
  func.func @transform_0(%arg0: i32) -> (i32, i32) {
    %c0_i32 = arith.constant 0 : i32
    %c0_i32_0 = arith.constant 0 : i32
    %c0_i32_1 = arith.constant 0 : i32
    return %c0_i32, %c0_i32_0 : i32, i32
  }
  func.func @transform_1(%arg0: i32) -> (i32, i32) {
    %c0_i32 = arith.constant 0 : i32
    %c0_i32_0 = arith.constant 0 : i32
    return %c0_i32, %arg0 : i32, i32
  }
  func.func @transform_2(%arg0: i32) -> (i32, i32) {
    %c0_i32 = arith.constant 0 : i32
    %c0_i32_0 = arith.constant 0 : i32
    return %c0_i32, %arg0 : i32, i32
  }
  func.func @transform_3(%arg0: i32) -> (i32, i32) {
    %c0_i32 = arith.constant 0 : i32
    %c0_i32_0 = arith.constant 0 : i32
    return %c0_i32, %arg0 : i32, i32
  }
}

module attributes {stable_mosaic.version = 11 : i64} {
  func.func @_linear_kernel(%arg0: i32, %arg1: memref<8x1536xf32, #tpu.memory_space<vmem>>, %arg2: memref<1536x640xbf16, #tpu.memory_space<vmem>>, %arg3: memref<1x640xf32, #tpu.memory_space<vmem>>, %arg4: memref<8x640xf32, #tpu.memory_space<vmem>>) attributes {dimension_semantics = [#tpu.dimension_semantics<parallel>], iteration_bounds = array<i64: 2>, scalar_prefetch = 0 : i64, scratch_operands = 0 : i64, tpu.core_type = #tpu.core_type<tc>, window_params = [{pipeline_mode = #tpu.pipeline_mode<synchronous>, transform_indices = @transform_0, window_bounds = array<i64: 8, 1536>}, {transform_indices = @transform_1, window_bounds = array<i64: 1536, 640>}, {transform_indices = @transform_2, window_bounds = array<i64: 1, 640>}, {transform_indices = @transform_3, window_bounds = array<i64: 8, 640>}]} {
    %c0 = arith.constant 0 : index
    %c0_0 = arith.constant 0 : index
    %0 = vector.load %arg1[%c0, %c0_0] : memref<8x1536xf32, #tpu.memory_space<vmem>>, vector<8x1536xf32>
    %1 = arith.truncf %0 : vector<8x1536xf32> to vector<8x1536xbf16>
    %c0_1 = arith.constant 0 : index
    %c0_2 = arith.constant 0 : index
    %2 = vector.load %arg2[%c0_1, %c0_2] : memref<1536x640xbf16, #tpu.memory_space<vmem>>, vector<1536x640xbf16>
    %cst = arith.constant dense<0.000000e+00> : vector<8x640xf32>
    %3 = tpu.matmul %1, %2, %cst {dimension_numbers = #tpu.dot_dimension_numbers<[1], [0], [0], [1], [0, 0, 1, 1], [], []>} : vector<8x1536xbf16>, vector<1536x640xbf16>, vector<8x640xf32> -> vector<8x640xf32>
    %c0_3 = arith.constant 0 : index
    %c0_4 = arith.constant 0 : index
    %4 = vector.load %arg3[%c0_3, %c0_4] : memref<1x640xf32, #tpu.memory_space<vmem>>, vector<1x640xf32>
    %5 = vector.broadcast %4 : vector<1x640xf32> to vector<8x640xf32>
    %6 = arith.addf %3, %5 : vector<8x640xf32>
    %cst_5 = arith.constant 0.000000e+00 : f32
    %7 = vector.broadcast %cst_5 : f32 to vector<8x640xf32>
    %8 = arith.maximumf %6, %7 : vector<8x640xf32>
    %9 = math.absf %6 : vector<8x640xf32>
    %cst_6 = arith.constant 0.000000e+00 : f32
    %10 = vector.broadcast %cst_6 : f32 to vector<8x640xf32>
    %11 = arith.subf %10, %9 : vector<8x640xf32>
    %12 = math.exp %11 : vector<8x640xf32>
    %13 = math.log1p %12 : vector<8x640xf32>
    %14 = arith.addf %8, %13 : vector<8x640xf32>
    %c0_7 = arith.constant 0 : index
    %c0_8 = arith.constant 0 : index
    %15 = vector.load %arg4[%c0_7, %c0_8] : memref<8x640xf32, #tpu.memory_space<vmem>>, vector<8x640xf32>
    tpu.vector_store %arg4[%c0_7, %c0_8], %14 {strides = array<i32>} : memref<8x640xf32, #tpu.memory_space<vmem>>, vector<8x640xf32>,
    return
  }
  func.func @transform_0(%arg0: i32) -> (i32, i32) {
    %c0_i32 = arith.constant 0 : i32
    %c0_i32_0 = arith.constant 0 : i32
    %c0_i32_1 = arith.constant 0 : i32
    return %c0_i32, %c0_i32_0 : i32, i32
  }
  func.func @transform_1(%arg0: i32) -> (i32, i32) {
    %c0_i32 = arith.constant 0 : i32
    %c0_i32_0 = arith.constant 0 : i32
    return %c0_i32, %arg0 : i32, i32
  }
  func.func @transform_2(%arg0: i32) -> (i32, i32) {
    %c0_i32 = arith.constant 0 : i32
    %c0_i32_0 = arith.constant 0 : i32
    return %c0_i32, %arg0 : i32, i32
  }
  func.func @transform_3(%arg0: i32) -> (i32, i32) {
    %c0_i32 = arith.constant 0 : i32
    %c0_i32_0 = arith.constant 0 : i32
    return %c0_i32, %arg0 : i32, i32
  }
}

module attributes {stable_mosaic.version = 11 : i64} {
  func.func @_linear_kernel(%arg0: i32, %arg1: memref<8x128xf32, #tpu.memory_space<vmem>>, %arg2: memref<128x512xbf16, #tpu.memory_space<vmem>>, %arg3: memref<1x512xf32, #tpu.memory_space<vmem>>, %arg4: memref<8x512xf32, #tpu.memory_space<vmem>>) attributes {dimension_semantics = [#tpu.dimension_semantics<parallel>], iteration_bounds = array<i64: 3>, scalar_prefetch = 0 : i64, scratch_operands = 0 : i64, tpu.core_type = #tpu.core_type<tc>, window_params = [{pipeline_mode = #tpu.pipeline_mode<synchronous>, transform_indices = @transform_0, window_bounds = array<i64: 8, 128>}, {transform_indices = @transform_1, window_bounds = array<i64: 128, 512>}, {transform_indices = @transform_2, window_bounds = array<i64: 1, 512>}, {transform_indices = @transform_3, window_bounds = array<i64: 8, 512>}]} {
    %c0 = arith.constant 0 : index
    %c0_0 = arith.constant 0 : index
    %0 = vector.load %arg1[%c0, %c0_0] : memref<8x128xf32, #tpu.memory_space<vmem>>, vector<8x128xf32>
    %1 = arith.truncf %0 : vector<8x128xf32> to vector<8x128xbf16>
    %c0_1 = arith.constant 0 : index
    %c0_2 = arith.constant 0 : index
    %2 = vector.load %arg2[%c0_1, %c0_2] : memref<128x512xbf16, #tpu.memory_space<vmem>>, vector<128x512xbf16>
    %cst = arith.constant dense<0.000000e+00> : vector<8x512xf32>
    %3 = tpu.matmul %1, %2, %cst {dimension_numbers = #tpu.dot_dimension_numbers<[1], [0], [0], [1], [0, 0, 1, 1], [], []>} : vector<8x128xbf16>, vector<128x512xbf16>, vector<8x512xf32> -> vector<8x512xf32>
    %c0_3 = arith.constant 0 : index
    %c0_4 = arith.constant 0 : index
    %4 = vector.load %arg3[%c0_3, %c0_4] : memref<1x512xf32, #tpu.memory_space<vmem>>, vector<1x512xf32>
    %5 = vector.broadcast %4 : vector<1x512xf32> to vector<8x512xf32>
    %6 = arith.addf %3, %5 : vector<8x512xf32>
    %cst_5 = arith.constant 0.000000e+00 : f32
    %7 = vector.broadcast %cst_5 : f32 to vector<8x512xf32>
    %8 = arith.maximumf %6, %7 : vector<8x512xf32>
    %9 = math.absf %6 : vector<8x512xf32>
    %cst_6 = arith.constant 0.000000e+00 : f32
    %10 = vector.broadcast %cst_6 : f32 to vector<8x512xf32>
    %11 = arith.subf %10, %9 : vector<8x512xf32>
    %12 = math.exp %11 : vector<8x512xf32>
    %13 = math.log1p %12 : vector<8x512xf32>
    %14 = arith.addf %8, %13 : vector<8x512xf32>
    %c0_7 = arith.constant 0 : index
    %c0_8 = arith.constant 0 : index
    %15 = vector.load %arg4[%c0_7, %c0_8] : memref<8x512xf32, #tpu.memory_space<vmem>>, vector<8x512xf32>
    tpu.vector_store %arg4[%c0_7, %c0_8], %14 {strides = array<i32>} : memref<8x512xf32, #tpu.memory_space<vmem>>, vector<8x512xf32>,
    return
  }
  func.func @transform_0(%arg0: i32) -> (i32, i32) {
    %c0_i32 = arith.constant 0 : i32
    %c0_i32_0 = arith.constant 0 : i32
    %c0_i32_1 = arith.constant 0 : i32
    return %c0_i32, %c0_i32_0 : i32, i32
  }
  func.func @transform_1(%arg0: i32) -> (i32, i32) {
    %c0_i32 = arith.constant 0 : i32
    %c0_i32_0 = arith.constant 0 : i32
    return %c0_i32, %arg0 : i32, i32
  }
  func.func @transform_2(%arg0: i32) -> (i32, i32) {
    %c0_i32 = arith.constant 0 : i32
    %c0_i32_0 = arith.constant 0 : i32
    return %c0_i32, %arg0 : i32, i32
  }
  func.func @transform_3(%arg0: i32) -> (i32, i32) {
    %c0_i32 = arith.constant 0 : i32
    %c0_i32_0 = arith.constant 0 : i32
    return %c0_i32, %arg0 : i32, i32
  }
}

module attributes {stable_mosaic.version = 11 : i64} {
  func.func @_linear_kernel(%arg0: i32, %arg1: memref<8x1280xf32, #tpu.memory_space<vmem>>, %arg2: memref<1280x512xbf16, #tpu.memory_space<vmem>>, %arg3: memref<1x512xf32, #tpu.memory_space<vmem>>, %arg4: memref<8x512xf32, #tpu.memory_space<vmem>>) attributes {dimension_semantics = [#tpu.dimension_semantics<parallel>], iteration_bounds = array<i64: 4>, scalar_prefetch = 0 : i64, scratch_operands = 0 : i64, tpu.core_type = #tpu.core_type<tc>, window_params = [{pipeline_mode = #tpu.pipeline_mode<synchronous>, transform_indices = @transform_0, window_bounds = array<i64: 8, 1280>}, {transform_indices = @transform_1, window_bounds = array<i64: 1280, 512>}, {transform_indices = @transform_2, window_bounds = array<i64: 1, 512>}, {transform_indices = @transform_3, window_bounds = array<i64: 8, 512>}]} {
    %c0 = arith.constant 0 : index
    %c0_0 = arith.constant 0 : index
    %0 = vector.load %arg1[%c0, %c0_0] : memref<8x1280xf32, #tpu.memory_space<vmem>>, vector<8x1280xf32>
    %1 = arith.truncf %0 : vector<8x1280xf32> to vector<8x1280xbf16>
    %c0_1 = arith.constant 0 : index
    %c0_2 = arith.constant 0 : index
    %2 = vector.load %arg2[%c0_1, %c0_2] : memref<1280x512xbf16, #tpu.memory_space<vmem>>, vector<1280x512xbf16>
    %cst = arith.constant dense<0.000000e+00> : vector<8x512xf32>
    %3 = tpu.matmul %1, %2, %cst {dimension_numbers = #tpu.dot_dimension_numbers<[1], [0], [0], [1], [0, 0, 1, 1], [], []>} : vector<8x1280xbf16>, vector<1280x512xbf16>, vector<8x512xf32> -> vector<8x512xf32>
    %c0_3 = arith.constant 0 : index
    %c0_4 = arith.constant 0 : index
    %4 = vector.load %arg3[%c0_3, %c0_4] : memref<1x512xf32, #tpu.memory_space<vmem>>, vector<1x512xf32>
    %5 = vector.broadcast %4 : vector<1x512xf32> to vector<8x512xf32>
    %6 = arith.addf %3, %5 : vector<8x512xf32>
    %cst_5 = arith.constant 0.000000e+00 : f32
    %7 = vector.broadcast %cst_5 : f32 to vector<8x512xf32>
    %8 = arith.maximumf %6, %7 : vector<8x512xf32>
    %9 = math.absf %6 : vector<8x512xf32>
    %cst_6 = arith.constant 0.000000e+00 : f32
    %10 = vector.broadcast %cst_6 : f32 to vector<8x512xf32>
    %11 = arith.subf %10, %9 : vector<8x512xf32>
    %12 = math.exp %11 : vector<8x512xf32>
    %13 = math.log1p %12 : vector<8x512xf32>
    %14 = arith.addf %8, %13 : vector<8x512xf32>
    %c0_7 = arith.constant 0 : index
    %c0_8 = arith.constant 0 : index
    %15 = vector.load %arg4[%c0_7, %c0_8] : memref<8x512xf32, #tpu.memory_space<vmem>>, vector<8x512xf32>
    tpu.vector_store %arg4[%c0_7, %c0_8], %14 {strides = array<i32>} : memref<8x512xf32, #tpu.memory_space<vmem>>, vector<8x512xf32>,
    return
  }
  func.func @transform_0(%arg0: i32) -> (i32, i32) {
    %c0_i32 = arith.constant 0 : i32
    %c0_i32_0 = arith.constant 0 : i32
    %c0_i32_1 = arith.constant 0 : i32
    return %c0_i32, %c0_i32_0 : i32, i32
  }
  func.func @transform_1(%arg0: i32) -> (i32, i32) {
    %c0_i32 = arith.constant 0 : i32
    %c0_i32_0 = arith.constant 0 : i32
    return %c0_i32, %arg0 : i32, i32
  }
  func.func @transform_2(%arg0: i32) -> (i32, i32) {
    %c0_i32 = arith.constant 0 : i32
    %c0_i32_0 = arith.constant 0 : i32
    return %c0_i32, %arg0 : i32, i32
  }
  func.func @transform_3(%arg0: i32) -> (i32, i32) {
    %c0_i32 = arith.constant 0 : i32
    %c0_i32_0 = arith.constant 0 : i32
    return %c0_i32, %arg0 : i32, i32
  }
}

module attributes {stable_mosaic.version = 11 : i64} {
  func.func @_linear_kernel(%arg0: i32, %arg1: memref<8x2048xf32, #tpu.memory_space<vmem>>, %arg2: memref<2048x128xbf16, #tpu.memory_space<vmem>>, %arg3: memref<1x128xf32, #tpu.memory_space<vmem>>, %arg4: memref<8x128xf32, #tpu.memory_space<vmem>>) attributes {dimension_semantics = [#tpu.dimension_semantics<parallel>], iteration_bounds = array<i64: 1>, scalar_prefetch = 0 : i64, scratch_operands = 0 : i64, tpu.core_type = #tpu.core_type<tc>, window_params = [{pipeline_mode = #tpu.pipeline_mode<synchronous>, transform_indices = @transform_0, window_bounds = array<i64: 8, 2048>}, {transform_indices = @transform_1, window_bounds = array<i64: 2048, 128>}, {transform_indices = @transform_2, window_bounds = array<i64: 1, 128>}, {transform_indices = @transform_3, window_bounds = array<i64: 8, 128>}]} {
    %c0 = arith.constant 0 : index
    %c0_0 = arith.constant 0 : index
    %0 = vector.load %arg1[%c0, %c0_0] : memref<8x2048xf32, #tpu.memory_space<vmem>>, vector<8x2048xf32>
    %1 = arith.truncf %0 : vector<8x2048xf32> to vector<8x2048xbf16>
    %c0_1 = arith.constant 0 : index
    %c0_2 = arith.constant 0 : index
    %2 = vector.load %arg2[%c0_1, %c0_2] : memref<2048x128xbf16, #tpu.memory_space<vmem>>, vector<2048x128xbf16>
    %cst = arith.constant dense<0.000000e+00> : vector<8x128xf32>
    %3 = tpu.matmul %1, %2, %cst {dimension_numbers = #tpu.dot_dimension_numbers<[1], [0], [0], [1], [0, 0, 1, 1], [], []>} : vector<8x2048xbf16>, vector<2048x128xbf16>, vector<8x128xf32> -> vector<8x128xf32>
    %c0_3 = arith.constant 0 : index
    %c0_4 = arith.constant 0 : index
    %4 = vector.load %arg3[%c0_3, %c0_4] : memref<1x128xf32, #tpu.memory_space<vmem>>, vector<1x128xf32>
    %5 = vector.broadcast %4 : vector<1x128xf32> to vector<8x128xf32>
    %6 = arith.addf %3, %5 : vector<8x128xf32>
    %c0_5 = arith.constant 0 : index
    %c0_6 = arith.constant 0 : index
    %7 = vector.load %arg4[%c0_5, %c0_6] : memref<8x128xf32, #tpu.memory_space<vmem>>, vector<8x128xf32>
    tpu.vector_store %arg4[%c0_5, %c0_6], %6 {strides = array<i32>} : memref<8x128xf32, #tpu.memory_space<vmem>>, vector<8x128xf32>,
    return
  }
  func.func @transform_0(%arg0: i32) -> (i32, i32) {
    %c0_i32 = arith.constant 0 : i32
    %c0_i32_0 = arith.constant 0 : i32
    %c0_i32_1 = arith.constant 0 : i32
    return %c0_i32, %c0_i32_0 : i32, i32
  }
  func.func @transform_1(%arg0: i32) -> (i32, i32) {
    %c0_i32 = arith.constant 0 : i32
    %c0_i32_0 = arith.constant 0 : i32
    return %c0_i32, %arg0 : i32, i32
  }
  func.func @transform_2(%arg0: i32) -> (i32, i32) {
    %c0_i32 = arith.constant 0 : i32
    %c0_i32_0 = arith.constant 0 : i32
    return %c0_i32, %arg0 : i32, i32
  }
  func.func @transform_3(%arg0: i32) -> (i32, i32) {
    %c0_i32 = arith.constant 0 : i32
    %c0_i32_0 = arith.constant 0 : i32
    return %c0_i32, %arg0 : i32, i32
  }
}

</mosaic_0001>

<bundles_post_ra>
// kernel: net_forward.6
= control target key start
LH: loop header
LB: loop body
LE: loop exit
PB: predicated region body
PF: predicated region fallthrough
CT: control target
= control target key end

     0   :  { %8 = vsyncpa [#allocation3], 0  ;;  %s1175_s0 = inlined_call_operand.vmem [shape: f32[8,128], index: 0, kind: input, shape index: {}]   ;;  %s1176_s1 = inlined_call_operand.hbm [shape: bf16[128,1536], index: 1, kind: input, shape index: {}]   ;;  %s1177_s2 = inlined_call_operand.hbm [shape: f32[1,1536], index: 2, kind: input, shape index: {}]   ;;  %s1178_s3 = inlined_call_operand.vmem [shape: f32[8,1536], index: 3, kind: output, shape index: {}]  }
   0x1   :  { %10 = vsyncpa [#allocation3 + $0x1], 0 }
   0x2   :  { %11 = vsyncpa [#allocation5], 0 }
   0x3   :  { %13 = vsyncpa [#allocation5 + $0x1], 0  ;;  %s974_s12 = smov 0   ;;  %s976_s13 = smov 0  }
   0x4   :  { %s978_s14 = smov 0   ;;  %s980_s15 = smov 0  }
   0x5 LB: > { %s685_s16 = sadd.s32 4294967295, %s946_s15   ;;  %s994_s17 = sadd.s32 1, %s946_s15   ;;  %s946_s15 = sphi %s980_s15, %s1188_s15   ;;  %s942_s14 = sphi %s978_s14, %s1187_s14   ;;  %s938_s13 = sphi %s976_s13, %s1186_s13   ;;  %s934_s12 = sphi %s974_s12, %s1185_s12  }
   0x6   : > { %s44_s18 = ssub.s32 %s946_s15, %s994_s17  ;;  %s47_s19 = sadd.s32 1, %s942_s14 }
   0x7   : > { %p45_p0 = scmp.eq.s32.totalorder %s44_s18, 0  ;;  %p54_p1 = scmp.ne.s32.totalorder %s942_s14, %s938_s13 }
   0x8   : > { %p55_p2 = scmp.eq.s32.totalorder %s946_s15, 0  ;;  %p60_p3 = scmp.ne.s32.totalorder %s938_s13, %s934_s12 }
   0x9   : > { %s1004_s20 = scalar_select %p45_p0, %s942_s14, %s47_s19  }
   0xa   : > { %p56_p4 = por %p55_p2, %p54_p1  ;;  %p61_p5 = scmp.eq.s32.totalorder %s685_s16, 0 }
   0xb   : > { %p747_p6 = scmp.lt.s32.totalorder %s946_s15, 3  ;;  %s1014_s22 = sand.u32 1, %s942_s14  }
   0xc   : > { %p1009_p7 = por %p61_p5, %p60_p3  ;;  %s689_s23 = sshll.u32 %s1014_s22, 8 }
   0xd   : > { %s734_s24 = sshll.u32 %s946_s15, 8  ;;  %s143_s28 = scalar_lea.vmem [#allocation2], %s689_s23 }
   0xe   : > { %s1180_s21 = scalar_select %p1009_p7, 1, 0 }
   0xf   : > { %s1021_s27 = scalar_lea.hbm %s1176_s1, %s734_s24  ;;  %s150_s29 = sshll.u32 %s143_s28, 4  ;;  %s1023_s29 = int_to_ptr.vmem [resolvable:$true] %s150_s29 }
  0x10   : > { %p1025_p8 = pnand %p747_p6, %p56_p4  ;;  %s140_s4 = scalar_lea.sflag [#allocation3], %s1014_s22 }
  0x11   : > { %s848_s5 = scalar_lea.hbm %s1021_s27, 4096  ;;  %s853_s8 = scalar_lea.hbm %s1176_s1, 12288 }
  0x12   : > { %p849_p9 = scmp.ne.s32.totalorder %s1021_s27, %s848_s5  ;;  %p850_p10 = pneg %p1025_p8 }
  0x13   : > { %p854_p13 = scmp.lt.u32.totalorder %s1021_s27, %s1176_s1  ;;  %p855_p0 = scmp.lt.u32.totalorder %s853_s8, %s848_s5 }
  0x14   : > { %p851_p11 = pnand %p850_p10, %p849_p9  ;;  %p857_p2 = scmp.lt.u32.totalorder %s848_s5, %s1021_s27 }
  0x15   : > { %p856_p1 = por %p855_p0, %p854_p13 }
  0x16   : > { %p852_p12 = pneg %p851_p11 }
  0x17   : > { %p858_p3 = por %p857_p2, %p856_p1 }
  0x19   : > { %p859_p4 = pnand %p858_p3, %p852_p12 }
  0x1b   : > { %862 = shalt.err (!%p859_p4)
}
  0x1c   : > { %s863_s11 = scalar_lea.vmem %s1023_s29, 4096  ;;  %s948_s12 = smov [#allocation2]  }
  0x1d   : > { %p864_p5 = scmp.ne.s32.totalorder %s1023_s29, %s863_s11  ;;  %s868_s18 = sshll.u32 %s948_s12, 4  ;;  %s869_s18 = int_to_ptr.vmem [resolvable:$false] %s868_s18 }
  0x1e   : > { %s870_s19 = scalar_lea.vmem %s869_s18, 8192  ;;  %p871_p11 = scmp.lt.s32.totalorder %s1023_s29, %s869_s18 }
  0x1f   : > { %p866_p6 = pnand %p864_p5, %p850_p10  ;;  %p872_p13 = scmp.lt.s32.totalorder %s870_s19, %s863_s11 }
  0x21   : > { %p867_p9 = pneg %p866_p6  ;;  %p873_p0 = por %p872_p13, %p871_p11 }
  0x23   : > { %p874_p1 = pnand %p873_p0, %p867_p9 }
  0x25   : > { %877 = shalt.err (!%p874_p1)
}
  0x26   : > { %s949_s23 = smov 768   ;;  %s950_s24 = smov 256  }
  0x27   : > { %s951_s25 = smov 16   ;;  %p695_p12 = scmp.ge.s32.totalorder %s946_s15, 1 }
  0x28   : > { %743 = dma.hbm_to_vmem [thread:$0]  (!%p1025_p8), %s1021_s27, 4096, %s1023_s29, %s140_s4, %s949_s23, %s950_s24, %s951_s25  }
  0x29   : > { %p177_p2 = scmp.lt.s32.totalorder %s946_s15, 4  ;;  %s692_s26 = sshll.u32 %s1014_s22, 2 }
  0x2a   : > { %s735_s5 = sshll.u32 %s946_s15, 6  ;;  %s164_s6 = scalar_lea.vmem [#allocation4], %s692_s26 }
  0x2b   : > { %p1060_p3 = pnand %p695_p12, %p177_p2  ;;  %s172_s7 = sshll.u32 %s164_s6, 4  ;;  %s173_s7 = int_to_ptr.vmem [resolvable:$true] %s172_s7 }
  0x2c   : > { %s1068_s10 = scalar_lea.hbm %s1177_s2, %s735_s5  ;;  %s161_s27 = scalar_lea.sflag [#allocation5], %s1014_s22 }
  0x2d   : > { %s1182_s28 = scalar_select %p1060_p3, 1, 0 }
  0x2e   : > { %s878_s29 = scalar_lea.hbm %s1068_s10, 64  ;;  %s883_s12 = scalar_lea.hbm %s1177_s2, 192 }
  0x2f   : > { %p879_p4 = scmp.ne.s32.totalorder %s1068_s10, %s878_s29  ;;  %p884_p9 = scmp.lt.u32.totalorder %s1068_s10, %s1177_s2 }
  0x30   : > { %p885_p11 = scmp.lt.u32.totalorder %s883_s12, %s878_s29  ;;  %p887_p0 = scmp.lt.u32.totalorder %s878_s29, %s1068_s10 }
  0x31   : > { %p881_p5 = pnand %p879_p4, %p850_p10 }
  0x32   : > { %p886_p13 = por %p885_p11, %p884_p9 }
  0x33   : > { %p882_p6 = pneg %p881_p5 }
  0x34   : > { %p888_p1 = por %p887_p0, %p886_p13 }
  0x36   : > { %p889_p12 = pnand %p888_p1, %p882_p6 }
  0x38   : > { %892 = shalt.err (!%p889_p12)
}
  0x39   : > { %s893_s22 = scalar_lea.vmem %s173_s7, 64  ;;  %s952_s23 = smov [#allocation4]  }
  0x3a   : > { %p894_p2 = scmp.ne.s32.totalorder %s173_s7, %s893_s22  ;;  %s898_s24 = sshll.u32 %s952_s23, 4  ;;  %s899_s24 = int_to_ptr.vmem [resolvable:$false] %s898_s24 }
  0x3b   : > { %s900_s25 = scalar_lea.vmem %s899_s24, 128  ;;  %p901_p7 = scmp.lt.s32.totalorder %s173_s7, %s899_s24 }
  0x3c   : > { %p896_p4 = pnand %p894_p2, %p850_p10  ;;  %p902_p3 = scmp.lt.s32.totalorder %s900_s25, %s893_s22 }
  0x3e   : > { %p897_p5 = pneg %p896_p4  ;;  %p903_p9 = por %p902_p3, %p901_p7 }
  0x40   : > { %p904_p11 = pnand %p903_p9, %p897_p5 }
  0x42   : > { %907 = shalt.err (!%p904_p11)
}
  0x43   : > { %746 = dma.hbm_to_vmem [thread:$0]  (!%p1025_p8), %s1068_s10, 64, %s173_s7, %s161_s27  }
  0x44   : > { %p1183_p6 = scmp.ne.s32.totalorder %s1182_s28, 0 }
  0x45   : > { %s183_s26 = sand.u32 (!%p1183_p6), 1, %s938_s13   ;;  %p1184_p10 = scmp.ne.s32.totalorder (!%p1183_p6), %s1180_s21, 0 }
  0x46   : > { %181 = sbr.rel (%p1183_p6) target bundleno = 368 (0x170), region = 32  ;;  %s696_s5 = sshll.u32 (!%p1183_p6), %s183_s26, 8 }
  0x47   : > { %s184_s6 = scalar_lea.sflag (!%p1183_p6), [#allocation3], %s183_s26  ;;  %s1093_s8 = scalar_lea.vmem (!%p1183_p6), [#allocation2], %s696_s5 }
  0x4d   : > { %925 = dma.done.wait (%p1184_p10), %s184_s6, 4096  }
  0x4e   : > { %927 = vsyncadd (%p1184_p10), %s184_s6, 4294963200  ;;  %s697_s9 = sshll.u32 %s183_s26, 2  ;;  %s193_s30 = scalar_lea.sflag [#allocation5], %s183_s26 }
  0x4f   : > { %s1099_s29 = scalar_lea.vmem [#allocation4], %s697_s9 }
  0x50   : > { %929 = dma.done.wait (%p1184_p10), %s193_s30, 64  }
  0x51   : > { %931 = vsyncadd (%p1184_p10), %s193_s30, 4294967232  ;;  %v953_v0 = vmov 0   ;;  %v784_v1 = vld [vmem:[%s1093_s8 + $0x4] ss:$16 sps:$4 sm:$0xff]   ;;  %v786_v2 = vld [vmem:[%s1093_s8 + $0xc] ss:$16 sps:$4 sm:$0xff]   ;;  %v269_v35 = vlaneseq }
  0x52   : > { %481 = vmatprep.mubr.bf16.mxu0 %v953_v0  ;;  %522 = vmatprep.mubr.bf16.mxu1 %v953_v0  ;;  %v788_v3 = vld [vmem:[%s1093_s8] ss:$16 sps:$4 sm:$0xff]   ;;  %v789_v4 = vld [vmem:[%s1093_s8 + $0x8] ss:$16 sps:$4 sm:$0xff]   ;;  %v790_v5 = vld [vmem:[%s1093_s8 + $0x24] ss:$16 sps:$4 sm:$0xff]  }
  0x53   : > { %449 = vmatprep.subr.bf16.mxu0 %v784_v1  ;;  %490 = vmatprep.subr.bf16.mxu1 %v786_v2  ;;  %v792_v6 = vld [vmem:[%s1093_s8 + $0x2c] ss:$16 sps:$4 sm:$0xff]   ;;  %v794_v7 = vld [vmem:[%s1093_s8 + $0x20] ss:$16 sps:$4 sm:$0xff]   ;;  %v795_v8 = vld [vmem:[%s1093_s8 + $0x28] ss:$16 sps:$4 sm:$0xff]  }
  0x54   : > { %450 = vmatpush1.bf16.msra.mxu0 %v788_v3  ;;  %491 = vmatpush1.bf16.msra.mxu1 %v789_v4  ;;  %v796_v9 = vld [vmem:[%s1093_s8 + $0x44] ss:$16 sps:$4 sm:$0xff]   ;;  %v798_v10 = vld [vmem:[%s1093_s8 + $0x4c] ss:$16 sps:$4 sm:$0xff]   ;;  %v800_v11 = vld [vmem:[%s1093_s8 + $0x40] ss:$16 sps:$4 sm:$0xff]  }
  0x55   : > { %451 = vmatprep.subr.bf16.mxu0 %v790_v5  ;;  %492 = vmatprep.subr.bf16.mxu1 %v792_v6  ;;  %v801_v12 = vld [vmem:[%s1093_s8 + $0x48] ss:$16 sps:$4 sm:$0xff]   ;;  %v802_v13 = vld [vmem:[%s1093_s8 + $0x64] ss:$16 sps:$4 sm:$0xff]   ;;  %v804_v14 = vld [vmem:[%s1093_s8 + $0x6c] ss:$16 sps:$4 sm:$0xff]  }
  0x56   : > { %v806_v15 = vld [vmem:[%s1093_s8 + $0x60] ss:$16 sps:$4 sm:$0xff]   ;;  %v807_v16 = vld [vmem:[%s1093_s8 + $0x68] ss:$16 sps:$4 sm:$0xff]   ;;  %v808_v17 = vld [vmem:[%s1093_s8 + $0x84] ss:$16 sps:$4 sm:$0xff]  }
  0x57   : > { %v810_v18 = vld [vmem:[%s1093_s8 + $0x8c] ss:$16 sps:$4 sm:$0xff]   ;;  %v812_v19 = vld [vmem:[%s1093_s8 + $0x80] ss:$16 sps:$4 sm:$0xff]   ;;  %v813_v20 = vld [vmem:[%s1093_s8 + $0x88] ss:$16 sps:$4 sm:$0xff]  }
  0x58   : > { %452 = vmatpush1.bf16.msra.mxu0 %v794_v7  ;;  %493 = vmatpush1.bf16.msra.mxu1 %v795_v8  ;;  %v814_v21 = vld [vmem:[%s1093_s8 + $0xa4] ss:$16 sps:$4 sm:$0xff]   ;;  %v816_v22 = vld [vmem:[%s1093_s8 + $0xac] ss:$16 sps:$4 sm:$0xff]   ;;  %v818_v23 = vld [vmem:[%s1093_s8 + $0xa0] ss:$16 sps:$4 sm:$0xff]  }
  0x59   : > { %453 = vmatprep.subr.bf16.mxu0 %v796_v9  ;;  %494 = vmatprep.subr.bf16.mxu1 %v798_v10  ;;  %v819_v24 = vld [vmem:[%s1093_s8 + $0xa8] ss:$16 sps:$4 sm:$0xff]   ;;  %v820_v25 = vld [vmem:[%s1093_s8 + $0xc4] ss:$16 sps:$4 sm:$0xff]   ;;  %v822_v26 = vld [vmem:[%s1093_s8 + $0xcc] ss:$16 sps:$4 sm:$0xff]  }
  0x5a   : > { %v824_v27 = vld [vmem:[%s1093_s8 + $0xc0] ss:$16 sps:$4 sm:$0xff]   ;;  %v825_v28 = vld [vmem:[%s1093_s8 + $0xc8] ss:$16 sps:$4 sm:$0xff]   ;;  %v826_v29 = vld [vmem:[%s1093_s8 + $0xe4] ss:$16 sps:$4 sm:$0xff]  }
  0x5b   : > { %v828_v30 = vld [vmem:[%s1093_s8 + $0xec] ss:$16 sps:$4 sm:$0xff]   ;;  %v830_v31 = vld [vmem:[%s1093_s8 + $0xe0] ss:$16 sps:$4 sm:$0xff]   ;;  %v831_v32 = vld [vmem:[%s1093_s8 + $0xe8] ss:$16 sps:$4 sm:$0xff]  }
  0x5c   : > { %454 = vmatpush1.bf16.msra.mxu0 %v800_v11  ;;  %495 = vmatpush1.bf16.msra.mxu1 %v801_v12  ;;  %v233_v33 = vld [vmem:[%s1175_s0] sm:$0xff]  ;;  %v270_v36 = vshrl.u32 %v269_v35, 7  ;;  %s698_s7 = sshll.u32 %s685_s16, 2 }
  0x5d   : > { %455 = vmatprep.subr.bf16.mxu0 %v802_v13  ;;  %496 = vmatprep.subr.bf16.mxu1 %v804_v14  ;;  %v234_v34 = vpack.c.bf16 %v233_v33, %v233_v33  ;;  %v267_v39 = vld [vmem:[%s1099_s29] sm:$0xf]  ;;  %p227_p7 = scmp.lt.s32.totalorder %s698_s7, 11 }
  0x5e   : > { %v271_v37 = vsub.s32 0, %v270_v36  ;;  %v279_v38 = vsub.s32 2, %v270_v36  ;;  %v275_v40 = vsub.s32 1, %v270_v36  ;;  %v283_v41 = vsub.s32 3, %v270_v36 }
  0x5f   : > { %s1190_s7 = smov (!%p227_p7, %s698_s7), 11 }
  0x60   : > { %456 = vmatpush1.bf16.msra.mxu0 %v806_v15  ;;  %497 = vmatpush1.bf16.msra.mxu1 %v807_v16  ;;  %v272_v42 = vrot.slane %v267_v39, %v271_v37  ;;  %v280_v43 = vrot.slane %v267_v39, %v279_v38  ;;  %v276_v44 = vrot.slane %v267_v39, %v275_v40  ;;  %s699_s15 = sshll.u32 %s1190_s7, 3 }
  0x61   : > { %457 = vmatprep.subr.bf16.mxu0 %v808_v17  ;;  %498 = vmatprep.subr.bf16.mxu1 %v810_v18  ;;  %v284_v45 = vrot.slane %v267_v39, %v283_v41  ;;  %s230_s27 = scalar_lea.vmem %s1178_s3, %s699_s15 }
  0x64   : > { %458 = vmatpush1.bf16.msra.mxu0 %v812_v19  ;;  %499 = vmatpush1.bf16.msra.mxu1 %v813_v20 }
  0x65   : > { %459 = vmatprep.subr.bf16.mxu0 %v814_v21  ;;  %500 = vmatprep.subr.bf16.mxu1 %v816_v22 }
  0x68   : > { %460 = vmatpush1.bf16.msra.mxu0 %v818_v23  ;;  %501 = vmatpush1.bf16.msra.mxu1 %v819_v24 }
  0x69   : > { %461 = vmatprep.subr.bf16.mxu0 %v820_v25  ;;  %502 = vmatprep.subr.bf16.mxu1 %v822_v26 }
  0x6c   : > { %462 = vmatpush1.bf16.msra.mxu0 %v824_v27  ;;  %503 = vmatpush1.bf16.msra.mxu1 %v825_v28 }
  0x6d   : > { %463 = vmatprep.subr.bf16.mxu0 %v826_v29  ;;  %504 = vmatprep.subr.bf16.mxu1 %v828_v30 }
  0x70   : > { %464 = vmatpush1.bf16.msra.mxu0 %v830_v31  ;;  %505 = vmatpush1.bf16.msra.mxu1 %v831_v32 }
  0x73   : > { %482 = vmatmul.mubr.bf16.vlgmr.msra.gmra.mrb[0].mxu0 %v234_v34  ;;  %523 = vmatmul.mubr.bf16.vlgmr.msra.gmra.mrb[0].mxu1 %v234_v34 }
 0x146   : > { %v483_v46 = vpop.f32.mrb[0].mxu0  ;;  %v524_v47 = vpop.f32.mrb[0].mxu1 }
 0x147   : > { %v1141_v48 = vadd.f32 %v483_v46, %v272_v42  ;;  %v1143_v49 = vadd.f32 %v524_v47, %v280_v43  ;;  %v485_v50 = vpop.f32.mrb[1].mxu0  ;;  %v526_v51 = vpop.f32.mrb[1].mxu1 }
 0x148   : > { %v1145_v52 = vadd.f32 %v485_v50, %v276_v44  ;;  %v1147_v53 = vadd.f32 %v526_v51, %v284_v45  ;;  %v487_v54 = vpop.f32.mrb[2].mxu0  ;;  %v528_v55 = vpop.f32.mrb[2].mxu1 }
 0x149   : > { %v535_v56 = vand.u32 2147483647, %v1141_v48  ;;  %v537_v57 = vand.u32 2147483647, %v1143_v49  ;;  %v488_v62 = vpop.f32.mrb[3].mxu0  ;;  %v529_v63 = vpop.f32.mrb[3].mxu1 }
 0x14a   : > { %v536_v58 = vand.u32 2147483647, %v1145_v52  ;;  %v538_v59 = vand.u32 2147483647, %v1147_v53  ;;  %v531_v24 = vmax.f32 %v1141_v48, 0.0  ;;  %v533_v29 = vmax.f32 %v1143_v49, 0.0 }
 0x14b   : > { %v539_v60 = vsub.f32 0.0, %v535_v56  ;;  %v541_v61 = vsub.f32 0.0, %v537_v57  ;;  %v532_v41 = vmax.f32 %v1145_v52, 0.0  ;;  %v534_v47 = vmax.f32 %v1147_v53, 0.0 }
 0x14c   : > { %v540_v0 = vsub.f32 0.0, %v536_v58  ;;  %v542_v1 = vsub.f32 0.0, %v538_v59 }
 0x14d   : > { %v543_v2 = vmul.f32 1.442695, %v539_v60  ;;  %v547_v3 = vmul.f32 1.442695, %v541_v61 }
 0x14e   : > { %v545_v4 = vmul.f32 1.442695, %v540_v0  ;;  %v549_v5 = vmul.f32 1.442695, %v542_v1 }
 0x14f   : > { %832 = vpow2.f32 %v543_v2 }
 0x150   : > { %834 = vpow2.f32 %v547_v3 }
 0x151   : > { %836 = vpow2.f32 %v545_v4 }
 0x152   : > { %838 = vpow2.f32 %v549_v5 }
 0x159   : > { %v833_v6 = vpop.eup %832 }
 0x15a   : > { %v835_v7 = vpop.eup %834  ;;  %v551_v8 = vadd.f32 1.0, %v833_v6  ;;  %v554_v14 = vmul.f32 -0.5, %v833_v6  ;;  %v557_v19 = vand.u32 2147483647, %v833_v6 }
 0x15b   : > { %v837_v9 = vpop.eup %836  ;;  %v569_v10 = vadd.f32 1.0, %v835_v7  ;;  %v572_v15 = vmul.f32 -0.5, %v835_v7  ;;  %v575_v21 = vand.u32 2147483647, %v835_v7 }
 0x15c   : > { %v839_v11 = vpop.eup %838  ;;  %840 = vlog2.f32 %v551_v8  ;;  %v560_v12 = vadd.f32 1.0, %v837_v9  ;;  %v563_v16 = vmul.f32 -0.5, %v837_v9  ;;  %v555_v17 = vadd.f32 1.0, %v554_v14 }
 0x15d   : > { %842 = vlog2.f32 %v569_v10  ;;  %v578_v13 = vadd.f32 1.0, %v839_v11  ;;  %v581_v18 = vmul.f32 -0.5, %v839_v11  ;;  %v573_v20 = vadd.f32 1.0, %v572_v15 }
 0x15e   : > { %844 = vlog2.f32 %v560_v12  ;;  %v564_v22 = vadd.f32 1.0, %v563_v16  ;;  %v566_v25 = vand.u32 2147483647, %v837_v9  ;;  %v556_v28 = vmul.f32 %v833_v6, %v555_v17 }
 0x15f   : > { %846 = vlog2.f32 %v578_v13  ;;  %v582_v30 = vadd.f32 1.0, %v581_v18  ;;  %vm558_vm0 = vcmp.lt.f32.partialorder %v557_v19, 0.0004427343  ;;  %v574_v33 = vmul.f32 %v835_v7, %v573_v20 }
 0x160   : > { %v584_v34 = vand.u32 2147483647, %v839_v11  ;;  %vm576_vm1 = vcmp.lt.f32.partialorder %v575_v21, 0.0004427343  ;;  %v565_v37 = vmul.f32 %v837_v9, %v564_v22  ;;  %vm567_vm2 = vcmp.lt.f32.partialorder %v566_v25, 0.0004427343 }
 0x161   : > { %v583_v45 = vmul.f32 %v839_v11, %v582_v30 }
 0x162   : > { %vm585_vm3 = vcmp.lt.f32.partialorder %v584_v34, 0.0004427343 }
 0x166   : > { %v841_v23 = vpop.eup %840 }
 0x167   : > { %v843_v26 = vpop.eup %842  ;;  %v553_v27 = vmul.f32 0.6931472, %v841_v23 }
 0x168   : > { %v845_v31 = vpop.eup %844  ;;  %v571_v32 = vmul.f32 0.6931472, %v843_v26 }
 0x169   : > { %v559_v35 = vsel %vm558_vm0, %v556_v28, %v553_v27  ;;  %v562_v36 = vmul.f32 0.6931472, %v845_v31  ;;  %v847_v38 = vpop.eup %846 }
 0x16a   : > { %v587_v39 = vadd.f32 %v559_v35, %v531_v24  ;;  %v577_v40 = vsel %vm576_vm1, %v574_v33, %v571_v32  ;;  %v580_v44 = vmul.f32 0.6931472, %v847_v38 }
 0x16b   : > { %v589_v42 = vadd.f32 %v577_v40, %v533_v29  ;;  %v568_v43 = vsel %vm567_vm2, %v565_v37, %v562_v36 }
 0x16c   : > { %591 = vst [vmem:[%s230_s27] sm:$0xff] %v587_v39  ;;  %v588_v46 = vadd.f32 %v568_v43, %v532_v41  ;;  %v586_v48 = vsel %vm585_vm3, %v583_v45, %v580_v44 }
 0x16d   : > { %593 = vst [vmem:[%s230_s27 + $0x10] sm:$0xff] %v589_v42  ;;  %v590_v49 = vadd.f32 %v586_v48, %v534_v47 }
 0x16e   : > { %592 = vst [vmem:[%s230_s27 + $0x8] sm:$0xff] %v588_v46 }
 0x16f   : > { %594 = vst [vmem:[%s230_s27 + $0x18] sm:$0xff] %v590_v49 }
 0x170 PF: > { %p16_p8 = scmp.ge.s32.totalorder %s994_s17, 5   ;;  %s1185_s12 = smov %s938_s13 }
 0x171   : > { %s1186_s13 = smov %s942_s14  ;;  %s1187_s14 = smov %s1004_s20 }
 0x172   : > { %s1188_s15 = smov %s994_s17  ;;  %18 = sbr.rel (!%p16_p8) target bundleno = 5 (0x5), region = 85 }
 0x179   :  { %617 = vsyncpa [#allocation3], 1 }
 0x17a   :  { %619 = vsyncpa [#allocation3 + $0x1], 1 }
 0x17b   :  { %620 = vsyncpa [#allocation5], 1 }
 0x17c   :  { %622 = vsyncpa [#allocation5 + $0x1], 1 }

// kernel: net_forward.5
= control target key start
LH: loop header
LB: loop body
LE: loop exit
PB: predicated region body
PF: predicated region fallthrough
CT: control target
= control target key end

     0   :  { %8 = vsyncpa [#allocation3], 0  ;;  %s336_s0 = inlined_call_operand.vmem [shape: f32[8,128], index: 0, kind: input, shape index: {}]   ;;  %s337_s1 = inlined_call_operand.hbm [shape: bf16[128,128], index: 1, kind: input, shape index: {}]   ;;  %s338_s2 = inlined_call_operand.hbm [shape: f32[1,128], index: 2, kind: input, shape index: {}]   ;;  %s339_s3 = inlined_call_operand.vmem [shape: f32[8,128], index: 3, kind: output, shape index: {}]  }
   0x1   :  { %9 = vsyncpa [#allocation5], 0  ;;  %s280_s12 = smov [#allocation2]   ;;  %s232_s16 = scalar_lea.hbm %s337_s1, 1024 }
   0x2   :  { %s17_s13 = sshll.u32 %s280_s12, 4  ;;  %p233_p0 = scmp.ne.s32.totalorder %s337_s1, %s232_s16  ;;  %s18_s13 = int_to_ptr.vmem [resolvable:$true] %s17_s13 }
   0x3   :  { %p236_p1 = scmp.lt.u32.totalorder %s232_s16, %s337_s1 }
   0x5   :  { %p238_p2 = pnand %p236_p1, %p233_p0 }
   0x7   :  { %241 = shalt.err (!%p238_p2)
}
   0x8   :  { %s242_s21 = scalar_lea.vmem %s18_s13, 1024  ;;  %p247_p4 = scmp.lt.s32.totalorder %s18_s13, %s18_s13 }
   0x9   :  { %p243_p3 = scmp.ne.s32.totalorder %s18_s13, %s242_s21  ;;  %p248_p5 = scmp.lt.s32.totalorder %s242_s21, %s242_s21 }
   0xb   :  { %p249_p6 = por %p248_p5, %p247_p4 }
   0xd   :  { %p250_p7 = pnand %p249_p6, %p243_p3 }
   0xf   :  { %253 = shalt.err (!%p250_p7)
}
  0x10   :  { %s281_s22 = smov 64   ;;  %s282_s23 = smov 4  }
  0x11   :  { %23 = dma.hbm_to_vmem [thread:$0]  %s337_s1, 1024, %s18_s13, [#allocation3], %s281_s22, %s281_s22, %s282_s23  }
  0x12   :  { %s283_s26 = smov [#allocation4]   ;;  %s254_s30 = scalar_lea.hbm %s338_s2, 16 }
  0x13   :  { %s30_s27 = sshll.u32 %s283_s26, 4  ;;  %p255_p8 = scmp.ne.s32.totalorder %s338_s2, %s254_s30  ;;  %s31_s27 = int_to_ptr.vmem [resolvable:$true] %s30_s27 }
  0x14   :  { %p258_p9 = scmp.lt.u32.totalorder %s254_s30, %s338_s2 }
  0x16   :  { %p260_p10 = pnand %p258_p9, %p255_p8 }
  0x18   :  { %263 = shalt.err (!%p260_p10)
}
  0x19   :  { %s264_s8 = scalar_lea.vmem %s31_s27, 16  ;;  %s268_s1 = scalar_lea.vmem %s31_s27, 32 }
  0x1a   :  { %p265_p11 = scmp.ne.s32.totalorder %s31_s27, %s264_s8  ;;  %p269_p12 = scmp.lt.s32.totalorder %s31_s27, %s31_s27 }
  0x1b   :  { %p270_p13 = scmp.lt.s32.totalorder %s268_s1, %s264_s8 }
  0x1d   :  { %p271_p0 = por %p270_p13, %p269_p12 }
  0x1f   :  { %p272_p1 = pnand %p271_p0, %p265_p11 }
  0x21   :  { %275 = shalt.err (!%p272_p1)
}
  0x22   :  { %33 = dma.hbm_to_vmem [thread:$0]  %s338_s2, 16, %s31_s27, [#allocation5]  }
  0x23   :  { %276 = dma.done.wait [#allocation3], 1024  }
  0x24   :  { %277 = vsyncadd [#allocation3], 4294966272 }
  0x25   :  { %278 = dma.done.wait [#allocation5], 16  }
  0x26   :  { %279 = vsyncadd [#allocation5], 4294967280  ;;  %v284_v0 = vmov 0.0   ;;  %vm285_vm0 = vmmov 0   ;;  %v220_v1 = vld [vmem:[#allocation2] sm:$0xff]   ;;  %v221_v2 = vld [vmem:[#allocation2 + $0x8] sm:$0xff]  }
  0x27   :  { %194 = vmatprep.subr.bf16.mxu0 %v284_v0  ;;  %210 = vmatprep.mubr.msk.bf16.mxu0 %vm285_vm0, %v284_v0  ;;  %v222_v3 = vld [vmem:[#allocation2 + $0x10] sm:$0xff]   ;;  %v223_v4 = vld [vmem:[#allocation2 + $0x18] sm:$0xff]   ;;  %v224_v5 = vld [vmem:[#allocation2 + $0x20] sm:$0xff]  }
  0x28   :  { %195 = vmatpush3.bf16.msra.mxu0 %v220_v1  ;;  %v225_v6 = vld [vmem:[#allocation2 + $0x28] sm:$0xff]   ;;  %v226_v7 = vld [vmem:[#allocation2 + $0x30] sm:$0xff]   ;;  %v227_v8 = vld [vmem:[#allocation2 + $0x38] sm:$0xff]  }
  0x29   :  { %196 = vmatprep.subr.bf16.mxu0 %v284_v0  ;;  %v41_v9 = vld [vmem:[%s336_s0] sm:$0xff] }
  0x2a   :  { %v42_v10 = vpack.c.bf16 %v41_v9, %v41_v9  ;;  %v176_v11 = vld [vmem:[#allocation4] ss:$0 sm:$0xff] }
  0x2c   :  { %197 = vmatpush3.bf16.msra.mxu0 %v221_v2 }
  0x2d   :  { %198 = vmatprep.subr.bf16.mxu0 %v284_v0 }
  0x30   :  { %199 = vmatpush3.bf16.msra.mxu0 %v222_v3 }
  0x31   :  { %200 = vmatprep.subr.bf16.mxu0 %v284_v0 }
  0x34   :  { %201 = vmatpush3.bf16.msra.mxu0 %v223_v4 }
  0x35   :  { %202 = vmatprep.subr.bf16.mxu0 %v284_v0 }
  0x38   :  { %203 = vmatpush3.bf16.msra.mxu0 %v224_v5 }
  0x39   :  { %204 = vmatprep.subr.bf16.mxu0 %v284_v0 }
  0x3c   :  { %205 = vmatpush3.bf16.msra.mxu0 %v225_v6 }
  0x3d   :  { %206 = vmatprep.subr.bf16.mxu0 %v284_v0 }
  0x40   :  { %207 = vmatpush3.bf16.msra.mxu0 %v226_v7 }
  0x41   :  { %208 = vmatprep.subr.bf16.mxu0 %v284_v0 }
  0x44   :  { %209 = vmatpush3.bf16.msra.mxu0 %v227_v8 }
  0x47   :  { %211 = vmatmul.mubr.bf16.vlgmr.msra.gmra.mrb[0].mxu0 %v42_v10 }
 0x11a   :  { %v148_v12 = vpop.f32.mrb[0].mxu0 }
 0x11b   :  { %v149_v13 = vadd.f32 %v176_v11, %v148_v12  ;;  %v212_v14 = vpop.f32.mrb[1].mxu0 }
 0x11c   :  { %v151_v15 = vpop.f32.mrb[2].mxu0 }
 0x11d   :  { %v155_v16 = vand.u32 2147483647, %v149_v13  ;;  %v213_v17 = vpop.f32.mrb[3].mxu0  ;;  %v154_v28 = vmax.f32 %v149_v13, 0.0 }
 0x11f   :  { %v156_v18 = vsub.f32 0.0, %v155_v16 }
 0x121   :  { %v157_v19 = vmul.f32 1.442695, %v156_v18 }
 0x123   :  { %228 = vpow2.f32 %v157_v19 }
 0x12d   :  { %v229_v20 = vpop.eup %228 }
 0x12e   :  { %v159_v21 = vadd.f32 1.0, %v229_v20  ;;  %v162_v22 = vmul.f32 -0.5, %v229_v20  ;;  %v165_v24 = vand.u32 2147483647, %v229_v20 }
 0x130   :  { %230 = vlog2.f32 %v159_v21  ;;  %v163_v23 = vadd.f32 1.0, %v162_v22  ;;  %vm166_vm1 = vcmp.lt.f32.partialorder %v165_v24, 0.0004427343 }
 0x132   :  { %v164_v27 = vmul.f32 %v229_v20, %v163_v23 }
 0x13a   :  { %v231_v25 = vpop.eup %230 }
 0x13b   :  { %v161_v26 = vmul.f32 0.6931472, %v231_v25 }
 0x13d   :  { %v167_v29 = vsel %vm166_vm1, %v164_v27, %v161_v26 }
 0x13e   :  { %v168_v30 = vadd.f32 %v167_v29, %v154_v28 }
 0x140   :  { %169 = vst [vmem:[%s339_s3] sm:$0xff] %v168_v30 }
 0x141   :  { %174 = vsyncpa [#allocation3], 1 }
 0x142   :  { %175 = vsyncpa [#allocation5], 1 }

// kernel: net_forward.9
= control target key start
LH: loop header
LB: loop body
LE: loop exit
PB: predicated region body
PF: predicated region fallthrough
CT: control target
= control target key end

     0   :  { %s2294_s1 = inlined_call_operand.vmem [shape: bf16[2048,128], index: 1, kind: input, shape index: {}]   ;;  %s2295_s0 = inlined_call_operand.vmem [shape: f32[8,2048], index: 0, kind: input, shape index: {}]   ;;  %s2296_s2 = inlined_call_operand.vmem [shape: f32[1,128], index: 2, kind: input, shape index: {}]   ;;  %s2297_s3 = inlined_call_operand.vmem [shape: f32[8,128], index: 3, kind: output, shape index: {}]  }
   0x1   :  { %v1708_v0 = vld [vmem:[%s2294_s1 + $0x40] sm:$0xff]   ;;  %v1712_v4 = vld [vmem:[%s2294_s1 + $0x48] sm:$0xff]   ;;  %v1716_v8 = vld [vmem:[%s2294_s1 + $0x50] sm:$0xff]  }
   0x2   :  { %v1709_v1 = vld [vmem:[%s2294_s1 + $0xc0] sm:$0xff]   ;;  %1532 = vmatprep.subr.bf16.mxu0 %v1708_v0  ;;  %v1713_v5 = vld [vmem:[%s2294_s1 + $0xc8] sm:$0xff]   ;;  %v1717_v9 = vld [vmem:[%s2294_s1 + $0xd0] sm:$0xff]  }
   0x3   :  { %v1710_v2 = vld [vmem:[%s2294_s1] sm:$0xff]   ;;  %1554 = vmatprep.subr.bf16.mxu1 %v1709_v1  ;;  %v1714_v6 = vld [vmem:[%s2294_s1 + $0x8] sm:$0xff]   ;;  %v1718_v10 = vld [vmem:[%s2294_s1 + $0x10] sm:$0xff]  }
   0x4   :  { %v1711_v3 = vld [vmem:[%s2294_s1 + $0x80] sm:$0xff]   ;;  %1533 = vmatpush3.bf16.msra.mxu0 %v1710_v2  ;;  %v1715_v7 = vld [vmem:[%s2294_s1 + $0x88] sm:$0xff]   ;;  %v1719_v11 = vld [vmem:[%s2294_s1 + $0x90] sm:$0xff]  }
   0x5   :  { %1555 = vmatpush3.bf16.msra.mxu1 %v1711_v3  ;;  %1534 = vmatprep.subr.bf16.mxu0 %v1712_v4  ;;  %v1720_v12 = vld [vmem:[%s2294_s1 + $0x58] sm:$0xff]   ;;  %v1724_v16 = vld [vmem:[%s2294_s1 + $0x60] sm:$0xff]   ;;  %v1728_v20 = vld [vmem:[%s2294_s1 + $0x68] sm:$0xff]  }
   0x6   :  { %1556 = vmatprep.subr.bf16.mxu1 %v1713_v5  ;;  %v1721_v13 = vld [vmem:[%s2294_s1 + $0xd8] sm:$0xff]   ;;  %v1725_v17 = vld [vmem:[%s2294_s1 + $0xe0] sm:$0xff]   ;;  %v1729_v21 = vld [vmem:[%s2294_s1 + $0xe8] sm:$0xff]  }
   0x7   :  { %v1722_v14 = vld [vmem:[%s2294_s1 + $0x18] sm:$0xff]   ;;  %v1726_v18 = vld [vmem:[%s2294_s1 + $0x20] sm:$0xff]   ;;  %v1730_v22 = vld [vmem:[%s2294_s1 + $0x28] sm:$0xff]  }
   0x8   :  { %1535 = vmatpush3.bf16.msra.mxu0 %v1714_v6  ;;  %v1723_v15 = vld [vmem:[%s2294_s1 + $0x98] sm:$0xff]   ;;  %v1727_v19 = vld [vmem:[%s2294_s1 + $0xa0] sm:$0xff]   ;;  %v1731_v23 = vld [vmem:[%s2294_s1 + $0xa8] sm:$0xff]  }
   0x9   :  { %1557 = vmatpush3.bf16.msra.mxu1 %v1715_v7  ;;  %1536 = vmatprep.subr.bf16.mxu0 %v1716_v8  ;;  %v1732_v24 = vld [vmem:[%s2294_s1 + $0x70] sm:$0xff]   ;;  %v1736_v28 = vld [vmem:[%s2294_s1 + $0x78] sm:$0xff]   ;;  %v16_v32 = vld [vmem:[%s2295_s0 + $0x8] sm:$0xff] }
   0xa   :  { %1558 = vmatprep.subr.bf16.mxu1 %v1717_v9  ;;  %v1733_v25 = vld [vmem:[%s2294_s1 + $0xf0] sm:$0xff]   ;;  %v1737_v29 = vld [vmem:[%s2294_s1 + $0xf8] sm:$0xff]   ;;  %v15_v34 = vld [vmem:[%s2295_s0] sm:$0xff]  ;;  %v32_v35 = vpack.c.bf16 %v16_v32, %v16_v32 }
   0xb   :  { %v1734_v26 = vld [vmem:[%s2294_s1 + $0x30] sm:$0xff]   ;;  %v1738_v30 = vld [vmem:[%s2294_s1 + $0x38] sm:$0xff]   ;;  %v31_v37 = vpack.c.bf16 %v15_v34, %v15_v34  ;;  %v1740_v40 = vld [vmem:[%s2294_s1 + $0x140] sm:$0xff]  }
   0xc   :  { %1537 = vmatpush3.bf16.msra.mxu0 %v1718_v10  ;;  %v1735_v27 = vld [vmem:[%s2294_s1 + $0xb0] sm:$0xff]   ;;  %v1739_v31 = vld [vmem:[%s2294_s1 + $0xb8] sm:$0xff]   ;;  %1110 = vmatprep.mubr.bf16.mxu0 %v32_v35  ;;  %v1741_v41 = vld [vmem:[%s2294_s1 + $0x1c0] sm:$0xff]  }
   0xd   :  { %1559 = vmatpush3.bf16.msra.mxu1 %v1719_v11  ;;  %1538 = vmatprep.subr.bf16.mxu0 %v1720_v12  ;;  %v18_v33 = vld [vmem:[%s2295_s0 + $0x18] sm:$0xff]  ;;  %v17_v38 = vld [vmem:[%s2295_s0 + $0x10] sm:$0xff]  ;;  %v1742_v42 = vld [vmem:[%s2294_s1 + $0x100] sm:$0xff]  }
   0xe   :  { %1560 = vmatprep.subr.bf16.mxu1 %v1721_v13  ;;  %v34_v36 = vpack.c.bf16 %v18_v33, %v18_v33  ;;  %v33_v39 = vpack.c.bf16 %v17_v38, %v17_v38  ;;  %v1743_v43 = vld [vmem:[%s2294_s1 + $0x180] sm:$0xff]   ;;  %v1744_v44 = vld [vmem:[%s2294_s1 + $0x148] sm:$0xff]   ;;  %v1748_v48 = vld [vmem:[%s2294_s1 + $0x150] sm:$0xff]  }
   0xf   :  { %v1745_v45 = vld [vmem:[%s2294_s1 + $0x1c8] sm:$0xff]   ;;  %v1749_v49 = vld [vmem:[%s2294_s1 + $0x1d0] sm:$0xff]   ;;  %v1752_v52 = vld [vmem:[%s2294_s1 + $0x158] sm:$0xff]  }
  0x10   :  { %1539 = vmatpush3.bf16.msra.mxu0 %v1722_v14  ;;  %1150 = vmatprep.mubr.bf16.mxu1 %v34_v36  ;;  %v1746_v46 = vld [vmem:[%s2294_s1 + $0x108] sm:$0xff]   ;;  %v1750_v50 = vld [vmem:[%s2294_s1 + $0x110] sm:$0xff]   ;;  %v1753_v53 = vld [vmem:[%s2294_s1 + $0x1d8] sm:$0xff]  }
  0x11   :  { %1561 = vmatpush3.bf16.msra.mxu1 %v1723_v15  ;;  %1540 = vmatprep.subr.bf16.mxu0 %v1724_v16  ;;  %v1747_v47 = vld [vmem:[%s2294_s1 + $0x188] sm:$0xff]   ;;  %v1751_v51 = vld [vmem:[%s2294_s1 + $0x190] sm:$0xff]   ;;  %v1754_v54 = vld [vmem:[%s2294_s1 + $0x118] sm:$0xff]  }
  0x12   :  { %1562 = vmatprep.subr.bf16.mxu1 %v1725_v17  ;;  %v1755_v55 = vld [vmem:[%s2294_s1 + $0x198] sm:$0xff]   ;;  %v1756_v56 = vld [vmem:[%s2294_s1 + $0x160] sm:$0xff]   ;;  %v1760_v60 = vld [vmem:[%s2294_s1 + $0x168] sm:$0xff]  }
  0x13   :  { %v1757_v57 = vld [vmem:[%s2294_s1 + $0x1e0] sm:$0xff]   ;;  %v1761_v61 = vld [vmem:[%s2294_s1 + $0x1e8] sm:$0xff]   ;;  %v1764_v0 = vld [vmem:[%s2294_s1 + $0x170] sm:$0xff]  }
  0x14   :  { %1541 = vmatpush3.bf16.msra.mxu0 %v1726_v18  ;;  %v1758_v58 = vld [vmem:[%s2294_s1 + $0x120] sm:$0xff]   ;;  %v1762_v62 = vld [vmem:[%s2294_s1 + $0x128] sm:$0xff]   ;;  %v1765_v1 = vld [vmem:[%s2294_s1 + $0x1f0] sm:$0xff]  }
  0x15   :  { %1563 = vmatpush3.bf16.msra.mxu1 %v1727_v19  ;;  %1542 = vmatprep.subr.bf16.mxu0 %v1728_v20  ;;  %v1759_v59 = vld [vmem:[%s2294_s1 + $0x1a0] sm:$0xff]   ;;  %v1763_v63 = vld [vmem:[%s2294_s1 + $0x1a8] sm:$0xff]   ;;  %v1766_v2 = vld [vmem:[%s2294_s1 + $0x130] sm:$0xff]  }
  0x16   :  { %1564 = vmatprep.subr.bf16.mxu1 %v1729_v21  ;;  %v1767_v3 = vld [vmem:[%s2294_s1 + $0x1b0] sm:$0xff]   ;;  %v1768_v4 = vld [vmem:[%s2294_s1 + $0x178] sm:$0xff]   ;;  %v20_v8 = vld [vmem:[%s2295_s0 + $0x28] sm:$0xff] }
  0x17   :  { %v1769_v5 = vld [vmem:[%s2294_s1 + $0x1f8] sm:$0xff]   ;;  %v36_v10 = vpack.c.bf16 %v20_v8, %v20_v8  ;;  %v19_v12 = vld [vmem:[%s2295_s0 + $0x20] sm:$0xff]  ;;  %v21_v13 = vld [vmem:[%s2295_s0 + $0x30] sm:$0xff] }
  0x18   :  { %1543 = vmatpush3.bf16.msra.mxu0 %v1730_v22  ;;  %v1770_v6 = vld [vmem:[%s2294_s1 + $0x138] sm:$0xff]   ;;  %v35_v14 = vpack.c.bf16 %v19_v12, %v19_v12  ;;  %v37_v15 = vpack.c.bf16 %v21_v13, %v21_v13  ;;  %v1772_v16 = vld [vmem:[%s2294_s1 + $0x240] sm:$0xff]   ;;  %v1776_v20 = vld [vmem:[%s2294_s1 + $0x248] sm:$0xff]  }
  0x19   :  { %1565 = vmatpush3.bf16.msra.mxu1 %v1731_v23  ;;  %1544 = vmatprep.subr.bf16.mxu0 %v1732_v24  ;;  %v1771_v7 = vld [vmem:[%s2294_s1 + $0x1b8] sm:$0xff]   ;;  %v1773_v17 = vld [vmem:[%s2294_s1 + $0x2c0] sm:$0xff]   ;;  %v1777_v21 = vld [vmem:[%s2294_s1 + $0x2c8] sm:$0xff]  }
  0x1a   :  { %1566 = vmatprep.subr.bf16.mxu1 %v1733_v25  ;;  %v22_v9 = vld [vmem:[%s2295_s0 + $0x38] sm:$0xff]  ;;  %v1774_v18 = vld [vmem:[%s2294_s1 + $0x200] sm:$0xff]   ;;  %v1778_v22 = vld [vmem:[%s2294_s1 + $0x208] sm:$0xff]  }
  0x1b   :  { %v38_v11 = vpack.c.bf16 %v22_v9, %v22_v9  ;;  %v1775_v19 = vld [vmem:[%s2294_s1 + $0x280] sm:$0xff]   ;;  %v1779_v23 = vld [vmem:[%s2294_s1 + $0x288] sm:$0xff]   ;;  %v1780_v24 = vld [vmem:[%s2294_s1 + $0x250] sm:$0xff]  }
  0x1c   :  { %1545 = vmatpush3.bf16.msra.mxu0 %v1734_v26  ;;  %v1781_v25 = vld [vmem:[%s2294_s1 + $0x2d0] sm:$0xff]   ;;  %v1788_v32 = vld [vmem:[%s2294_s1 + $0x260] sm:$0xff]   ;;  %v1792_v36 = vld [vmem:[%s2294_s1 + $0x268] sm:$0xff]  }
  0x1d   :  { %1567 = vmatpush3.bf16.msra.mxu1 %v1735_v27  ;;  %1546 = vmatprep.subr.bf16.mxu0 %v1736_v28  ;;  %v1782_v26 = vld [vmem:[%s2294_s1 + $0x210] sm:$0xff]   ;;  %v1784_v28 = vld [vmem:[%s2294_s1 + $0x258] sm:$0xff]   ;;  %v1789_v33 = vld [vmem:[%s2294_s1 + $0x2e0] sm:$0xff]  }
  0x1e   :  { %1568 = vmatprep.subr.bf16.mxu1 %v1737_v29  ;;  %v1783_v27 = vld [vmem:[%s2294_s1 + $0x290] sm:$0xff]   ;;  %v1785_v29 = vld [vmem:[%s2294_s1 + $0x2d8] sm:$0xff]   ;;  %v1790_v34 = vld [vmem:[%s2294_s1 + $0x220] sm:$0xff]  }
  0x1f   :  { %v1791_v35 = vld [vmem:[%s2294_s1 + $0x2a0] sm:$0xff]   ;;  %v1794_v38 = vld [vmem:[%s2294_s1 + $0x228] sm:$0xff]  }
  0x20   :  { %1547 = vmatpush3.bf16.msra.mxu0 %v1738_v30  ;;  %v1786_v30 = vld [vmem:[%s2294_s1 + $0x218] sm:$0xff]   ;;  %v1820_v8 = vld [vmem:[%s2294_s1 + $0x360] sm:$0xff]   ;;  %v1824_v12 = vld [vmem:[%s2294_s1 + $0x368] sm:$0xff]  }
  0x21   :  { %1569 = vmatpush3.bf16.msra.mxu1 %v1739_v31  ;;  %1576 = vmatprep.subr.bf16.mxu0 %v1740_v40  ;;  %v1787_v31 = vld [vmem:[%s2294_s1 + $0x298] sm:$0xff]   ;;  %v1796_v40 = vld [vmem:[%s2294_s1 + $0x270] sm:$0xff]   ;;  %v1821_v9 = vld [vmem:[%s2294_s1 + $0x3e0] sm:$0xff]  }
  0x22   :  { %1598 = vmatprep.subr.bf16.mxu1 %v1741_v41  ;;  %v1797_v41 = vld [vmem:[%s2294_s1 + $0x2f0] sm:$0xff]   ;;  %v1825_v13 = vld [vmem:[%s2294_s1 + $0x3e8] sm:$0xff]  }
  0x23   :  { %1111 = vmatmul.mubr.bf16.vlgmr.msra.gmra.mrb[0].mxu0 %v31_v37  ;;  %v1793_v37 = vld [vmem:[%s2294_s1 + $0x2e8] sm:$0xff]  }
  0x24   :  { %1151 = vmatmul.mubr.bf16.vlgmr.msra.gmra.mrb[0].mxu1 %v33_v39  ;;  %1577 = vmatpush3.bf16.msra.mxu0 %v1742_v42  ;;  %v1795_v39 = vld [vmem:[%s2294_s1 + $0x2a8] sm:$0xff]   ;;  %v1798_v42 = vld [vmem:[%s2294_s1 + $0x230] sm:$0xff]  }
  0x25   :  { %1599 = vmatpush3.bf16.msra.mxu1 %v1743_v43  ;;  %1578 = vmatprep.subr.bf16.mxu0 %v1744_v44  ;;  %v1799_v43 = vld [vmem:[%s2294_s1 + $0x2b0] sm:$0xff]   ;;  %v1800_v44 = vld [vmem:[%s2294_s1 + $0x278] sm:$0xff]  }
  0x26   :  { %1600 = vmatprep.subr.bf16.mxu1 %v1745_v45  ;;  %1190 = vmatprep.mubr.bf16.mxu0 %v36_v10  ;;  %v1801_v45 = vld [vmem:[%s2294_s1 + $0x2f8] sm:$0xff]   ;;  %v1822_v10 = vld [vmem:[%s2294_s1 + $0x320] sm:$0xff]  }
  0x27   :  { %1230 = vmatprep.mubr.bf16.mxu1 %v38_v11  ;;  %v1823_v11 = vld [vmem:[%s2294_s1 + $0x3a0] sm:$0xff]  }
  0x28   :  { %1579 = vmatpush3.bf16.msra.mxu0 %v1746_v46  ;;  %v1802_v46 = vld [vmem:[%s2294_s1 + $0x238] sm:$0xff]  }
  0x29   :  { %1601 = vmatpush3.bf16.msra.mxu1 %v1747_v47  ;;  %1580 = vmatprep.subr.bf16.mxu0 %v1748_v48  ;;  %v1803_v47 = vld [vmem:[%s2294_s1 + $0x2b8] sm:$0xff]   ;;  %v24_v48 = vld [vmem:[%s2295_s0 + $0x48] sm:$0xff] }
  0x2a   :  { %1602 = vmatprep.subr.bf16.mxu1 %v1749_v49  ;;  %v40_v49 = vpack.c.bf16 %v24_v48, %v24_v48 }
  0x2c   :  { %1581 = vmatpush3.bf16.msra.mxu0 %v1750_v50  ;;  %v26_v50 = vld [vmem:[%s2295_s0 + $0x58] sm:$0xff] }
  0x2d   :  { %1603 = vmatpush3.bf16.msra.mxu1 %v1751_v51  ;;  %1582 = vmatprep.subr.bf16.mxu0 %v1752_v52  ;;  %v23_v51 = vld [vmem:[%s2295_s0 + $0x40] sm:$0xff]  ;;  %v25_v52 = vld [vmem:[%s2295_s0 + $0x50] sm:$0xff] }
  0x2e   :  { %1604 = vmatprep.subr.bf16.mxu1 %v1753_v53  ;;  %v42_v53 = vpack.c.bf16 %v26_v50, %v26_v50 }
  0x30   :  { %1583 = vmatpush3.bf16.msra.mxu0 %v1754_v54  ;;  %v39_v54 = vpack.c.bf16 %v23_v51, %v23_v51 }
  0x31   :  { %1605 = vmatpush3.bf16.msra.mxu1 %v1755_v55  ;;  %1584 = vmatprep.subr.bf16.mxu0 %v1756_v56  ;;  %v41_v55 = vpack.c.bf16 %v25_v52, %v25_v52  ;;  %v1804_v56 = vld [vmem:[%s2294_s1 + $0x340] sm:$0xff]  }
  0x32   :  { %1606 = vmatprep.subr.bf16.mxu1 %v1757_v57  ;;  %v1805_v57 = vld [vmem:[%s2294_s1 + $0x3c0] sm:$0xff]  }
  0x34   :  { %1585 = vmatpush3.bf16.msra.mxu0 %v1758_v58  ;;  %v1806_v58 = vld [vmem:[%s2294_s1 + $0x300] sm:$0xff]  }
  0x35   :  { %1607 = vmatpush3.bf16.msra.mxu1 %v1759_v59  ;;  %1586 = vmatprep.subr.bf16.mxu0 %v1760_v60  ;;  %v1807_v59 = vld [vmem:[%s2294_s1 + $0x380] sm:$0xff]   ;;  %v1808_v60 = vld [vmem:[%s2294_s1 + $0x348] sm:$0xff]  }
  0x36   :  { %1608 = vmatprep.subr.bf16.mxu1 %v1761_v61  ;;  %v1809_v61 = vld [vmem:[%s2294_s1 + $0x3c8] sm:$0xff]  }
  0x38   :  { %1587 = vmatpush3.bf16.msra.mxu0 %v1762_v62  ;;  %v1810_v62 = vld [vmem:[%s2294_s1 + $0x308] sm:$0xff]  }
  0x39   :  { %1609 = vmatpush3.bf16.msra.mxu1 %v1763_v63  ;;  %1588 = vmatprep.subr.bf16.mxu0 %v1764_v0  ;;  %v1811_v63 = vld [vmem:[%s2294_s1 + $0x388] sm:$0xff]   ;;  %v1812_v0 = vld [vmem:[%s2294_s1 + $0x350] sm:$0xff]  }
  0x3a   :  { %1610 = vmatprep.subr.bf16.mxu1 %v1765_v1  ;;  %v1813_v1 = vld [vmem:[%s2294_s1 + $0x3d0] sm:$0xff]  }
  0x3c   :  { %1589 = vmatpush3.bf16.msra.mxu0 %v1766_v2  ;;  %v1814_v2 = vld [vmem:[%s2294_s1 + $0x310] sm:$0xff]  }
  0x3d   :  { %1611 = vmatpush3.bf16.msra.mxu1 %v1767_v3  ;;  %1590 = vmatprep.subr.bf16.mxu0 %v1768_v4  ;;  %v1815_v3 = vld [vmem:[%s2294_s1 + $0x390] sm:$0xff]   ;;  %v1816_v4 = vld [vmem:[%s2294_s1 + $0x358] sm:$0xff]  }
  0x3e   :  { %1612 = vmatprep.subr.bf16.mxu1 %v1769_v5  ;;  %v1817_v5 = vld [vmem:[%s2294_s1 + $0x3d8] sm:$0xff]  }
  0x40   :  { %1591 = vmatpush3.bf16.msra.mxu0 %v1770_v6  ;;  %v1818_v6 = vld [vmem:[%s2294_s1 + $0x318] sm:$0xff]  }
  0x41   :  { %1613 = vmatpush3.bf16.msra.mxu1 %v1771_v7  ;;  %1620 = vmatprep.subr.bf16.mxu0 %v1772_v16  ;;  %v1819_v7 = vld [vmem:[%s2294_s1 + $0x398] sm:$0xff]   ;;  %v1828_v16 = vld [vmem:[%s2294_s1 + $0x370] sm:$0xff]  }
  0x42   :  { %1642 = vmatprep.subr.bf16.mxu1 %v1773_v17  ;;  %v1829_v17 = vld [vmem:[%s2294_s1 + $0x3f0] sm:$0xff]  }
  0x43   :  { %1191 = vmatmul.mubr.bf16.vlgmr.msra.gmra.mrb[4].mxu0 %v35_v14  ;;  %v1826_v14 = vld [vmem:[%s2294_s1 + $0x328] sm:$0xff]  }
  0x44   :  { %1231 = vmatmul.mubr.bf16.vlgmr.msra.gmra.mrb[4].mxu1 %v37_v15  ;;  %1621 = vmatpush3.bf16.msra.mxu0 %v1774_v18  ;;  %v1827_v15 = vld [vmem:[%s2294_s1 + $0x3a8] sm:$0xff]   ;;  %v1830_v18 = vld [vmem:[%s2294_s1 + $0x330] sm:$0xff]  }
  0x45   :  { %1643 = vmatpush3.bf16.msra.mxu1 %v1775_v19  ;;  %1622 = vmatprep.subr.bf16.mxu0 %v1776_v20  ;;  %v1831_v19 = vld [vmem:[%s2294_s1 + $0x3b0] sm:$0xff]   ;;  %v1832_v20 = vld [vmem:[%s2294_s1 + $0x378] sm:$0xff]  }
  0x46   :  { %1644 = vmatprep.subr.bf16.mxu1 %v1777_v21  ;;  %1270 = vmatprep.mubr.bf16.mxu0 %v40_v49  ;;  %v1833_v21 = vld [vmem:[%s2294_s1 + $0x3f8] sm:$0xff]  }
  0x47   :  { %1310 = vmatprep.mubr.bf16.mxu1 %v42_v53 }
  0x48   :  { %1623 = vmatpush3.bf16.msra.mxu0 %v1778_v22  ;;  %v1834_v22 = vld [vmem:[%s2294_s1 + $0x338] sm:$0xff]  }
  0x49   :  { %1645 = vmatpush3.bf16.msra.mxu1 %v1779_v23  ;;  %1624 = vmatprep.subr.bf16.mxu0 %v1780_v24  ;;  %v1835_v23 = vld [vmem:[%s2294_s1 + $0x3b8] sm:$0xff]   ;;  %v28_v24 = vld [vmem:[%s2295_s0 + $0x68] sm:$0xff] }
  0x4a   :  { %1646 = vmatprep.subr.bf16.mxu1 %v1781_v25  ;;  %v30_v25 = vld [vmem:[%s2295_s0 + $0x78] sm:$0xff] }
  0x4c   :  { %1625 = vmatpush3.bf16.msra.mxu0 %v1782_v26  ;;  %v27_v26 = vld [vmem:[%s2295_s0 + $0x60] sm:$0xff] }
  0x4d   :  { %1647 = vmatpush3.bf16.msra.mxu1 %v1783_v27  ;;  %1626 = vmatprep.subr.bf16.mxu0 %v1784_v28  ;;  %v44_v27 = vpack.c.bf16 %v28_v24, %v28_v24  ;;  %v46_v28 = vpack.c.bf16 %v30_v25, %v30_v25 }
  0x4e   :  { %1648 = vmatprep.subr.bf16.mxu1 %v1785_v29  ;;  %v43_v29 = vpack.c.bf16 %v27_v26, %v27_v26 }
  0x50   :  { %1627 = vmatpush3.bf16.msra.mxu0 %v1786_v30  ;;  %v29_v30 = vld [vmem:[%s2295_s0 + $0x70] sm:$0xff] }
  0x51   :  { %1649 = vmatpush3.bf16.msra.mxu1 %v1787_v31  ;;  %1628 = vmatprep.subr.bf16.mxu0 %v1788_v32  ;;  %v45_v31 = vpack.c.bf16 %v29_v30, %v29_v30 }
  0x52   :  { %1650 = vmatprep.subr.bf16.mxu1 %v1789_v33 }
  0x54   :  { %1629 = vmatpush3.bf16.msra.mxu0 %v1790_v34  ;;  %v1403_v34 = vld [vmem:[%s2296_s2] ss:$0 sm:$0xff] }
  0x55   :  { %1651 = vmatpush3.bf16.msra.mxu1 %v1791_v35  ;;  %1630 = vmatprep.subr.bf16.mxu0 %v1792_v36 }
  0x56   :  { %1652 = vmatprep.subr.bf16.mxu1 %v1793_v37 }
  0x58   :  { %1631 = vmatpush3.bf16.msra.mxu0 %v1794_v38 }
  0x59   :  { %1653 = vmatpush3.bf16.msra.mxu1 %v1795_v39  ;;  %1632 = vmatprep.subr.bf16.mxu0 %v1796_v40 }
  0x5a   :  { %1654 = vmatprep.subr.bf16.mxu1 %v1797_v41 }
  0x5c   :  { %1633 = vmatpush3.bf16.msra.mxu0 %v1798_v42 }
  0x5d   :  { %1655 = vmatpush3.bf16.msra.mxu1 %v1799_v43  ;;  %1634 = vmatprep.subr.bf16.mxu0 %v1800_v44 }
  0x5e   :  { %1656 = vmatprep.subr.bf16.mxu1 %v1801_v45 }
  0x60   :  { %1635 = vmatpush3.bf16.msra.mxu0 %v1802_v46 }
  0x61   :  { %1657 = vmatpush3.bf16.msra.mxu1 %v1803_v47  ;;  %1664 = vmatprep.subr.bf16.mxu0 %v1804_v56 }
  0x62   :  { %1686 = vmatprep.subr.bf16.mxu1 %v1805_v57 }
  0x63   :  { %1271 = vmatmul.mubr.bf16.vlgmr.msra.gmra.mrb[8].mxu0 %v39_v54 }
  0x64   :  { %1311 = vmatmul.mubr.bf16.vlgmr.msra.gmra.mrb[8].mxu1 %v41_v55  ;;  %1665 = vmatpush3.bf16.msra.mxu0 %v1806_v58 }
  0x65   :  { %1687 = vmatpush3.bf16.msra.mxu1 %v1807_v59  ;;  %1666 = vmatprep.subr.bf16.mxu0 %v1808_v60 }
  0x66   :  { %1688 = vmatprep.subr.bf16.mxu1 %v1809_v61  ;;  %1350 = vmatprep.mubr.bf16.mxu0 %v44_v27 }
  0x67   :  { %1390 = vmatprep.mubr.bf16.mxu1 %v46_v28 }
  0x68   :  { %1667 = vmatpush3.bf16.msra.mxu0 %v1810_v62 }
  0x69   :  { %1689 = vmatpush3.bf16.msra.mxu1 %v1811_v63  ;;  %1668 = vmatprep.subr.bf16.mxu0 %v1812_v0 }
  0x6a   :  { %1690 = vmatprep.subr.bf16.mxu1 %v1813_v1 }
  0x6c   :  { %1669 = vmatpush3.bf16.msra.mxu0 %v1814_v2 }
  0x6d   :  { %1691 = vmatpush3.bf16.msra.mxu1 %v1815_v3  ;;  %1670 = vmatprep.subr.bf16.mxu0 %v1816_v4 }
  0x6e   :  { %1692 = vmatprep.subr.bf16.mxu1 %v1817_v5 }
  0x70   :  { %1671 = vmatpush3.bf16.msra.mxu0 %v1818_v6 }
  0x71   :  { %1693 = vmatpush3.bf16.msra.mxu1 %v1819_v7  ;;  %1672 = vmatprep.subr.bf16.mxu0 %v1820_v8 }
  0x72   :  { %1694 = vmatprep.subr.bf16.mxu1 %v1821_v9 }
  0x74   :  { %1673 = vmatpush3.bf16.msra.mxu0 %v1822_v10 }
  0x75   :  { %1695 = vmatpush3.bf16.msra.mxu1 %v1823_v11  ;;  %1674 = vmatprep.subr.bf16.mxu0 %v1824_v12 }
  0x76   :  { %1696 = vmatprep.subr.bf16.mxu1 %v1825_v13 }
  0x78   :  { %1675 = vmatpush3.bf16.msra.mxu0 %v1826_v14 }
  0x79   :  { %1697 = vmatpush3.bf16.msra.mxu1 %v1827_v15  ;;  %1676 = vmatprep.subr.bf16.mxu0 %v1828_v16 }
  0x7a   :  { %1698 = vmatprep.subr.bf16.mxu1 %v1829_v17 }
  0x7c   :  { %1677 = vmatpush3.bf16.msra.mxu0 %v1830_v18 }
  0x7d   :  { %1699 = vmatpush3.bf16.msra.mxu1 %v1831_v19  ;;  %1678 = vmatprep.subr.bf16.mxu0 %v1832_v20 }
  0x7e   :  { %1700 = vmatprep.subr.bf16.mxu1 %v1833_v21 }
  0x80   :  { %1679 = vmatpush3.bf16.msra.mxu0 %v1834_v22 }
  0x81   :  { %1701 = vmatpush3.bf16.msra.mxu1 %v1835_v23 }
  0x83   :  { %1351 = vmatmul.mubr.bf16.vlgmr.msra.gmra.mrb[12].mxu0 %v43_v29 }
  0x84   :  { %1391 = vmatmul.mubr.bf16.vlgmr.msra.gmra.mrb[12].mxu1 %v45_v31 }
  0xf6   :  { %v1548_v32 = vpop.f32.mrb[0].mxu0 }
  0xf7   :  { %v1570_v33 = vpop.f32.mrb[0].mxu1  ;;  %v1549_v35 = vpop.f32.mrb[1].mxu0 }
  0xf8   :  { %v1571_v36 = vpop.f32.mrb[1].mxu1  ;;  %v1550_v37 = vadd.f32 %v1549_v35, %v1548_v32  ;;  %v1551_v39 = vpop.f32.mrb[2].mxu0 }
  0xf9   :  { %v1572_v38 = vadd.f32 %v1571_v36, %v1570_v33  ;;  %v1573_v40 = vpop.f32.mrb[2].mxu1  ;;  %v1552_v41 = vpop.f32.mrb[3].mxu0 }
  0xfa   :  { %v1574_v42 = vpop.f32.mrb[3].mxu1  ;;  %v1113_v43 = vadd.f32 %v1550_v37, %v1403_v34 }
  0xfc   :  { %v1153_v44 = vadd.f32 %v1572_v38, %v1113_v43 }
 0x116   :  { %v1592_v45 = vpop.f32.mrb[4].mxu0 }
 0x117   :  { %v1614_v46 = vpop.f32.mrb[4].mxu1  ;;  %v1593_v47 = vpop.f32.mrb[5].mxu0 }
 0x118   :  { %v1594_v48 = vadd.f32 %v1593_v47, %v1592_v45  ;;  %v1615_v49 = vpop.f32.mrb[5].mxu1  ;;  %v1595_v50 = vpop.f32.mrb[6].mxu0 }
 0x119   :  { %v1616_v51 = vadd.f32 %v1615_v49, %v1614_v46  ;;  %v1617_v52 = vpop.f32.mrb[6].mxu1  ;;  %v1596_v53 = vpop.f32.mrb[7].mxu0 }
 0x11a   :  { %v1193_v54 = vadd.f32 %v1594_v48, %v1153_v44  ;;  %v1618_v55 = vpop.f32.mrb[7].mxu1 }
 0x11c   :  { %v1233_v56 = vadd.f32 %v1616_v51, %v1193_v54 }
 0x136   :  { %v1636_v57 = vpop.f32.mrb[8].mxu0 }
 0x137   :  { %v1658_v58 = vpop.f32.mrb[8].mxu1  ;;  %v1637_v59 = vpop.f32.mrb[9].mxu0 }
 0x138   :  { %v1638_v60 = vadd.f32 %v1637_v59, %v1636_v57  ;;  %v1659_v61 = vpop.f32.mrb[9].mxu1  ;;  %v1639_v62 = vpop.f32.mrb[10].mxu0 }
 0x139   :  { %v1660_v63 = vadd.f32 %v1659_v61, %v1658_v58  ;;  %v1661_v0 = vpop.f32.mrb[10].mxu1  ;;  %v1640_v1 = vpop.f32.mrb[11].mxu0 }
 0x13a   :  { %v1273_v2 = vadd.f32 %v1638_v60, %v1233_v56  ;;  %v1662_v3 = vpop.f32.mrb[11].mxu1 }
 0x13c   :  { %v1313_v4 = vadd.f32 %v1660_v63, %v1273_v2 }
 0x156   :  { %v1680_v5 = vpop.f32.mrb[12].mxu0 }
 0x157   :  { %v1702_v6 = vpop.f32.mrb[12].mxu1  ;;  %v1681_v7 = vpop.f32.mrb[13].mxu0 }
 0x158   :  { %v1703_v8 = vpop.f32.mrb[13].mxu1  ;;  %v1682_v9 = vadd.f32 %v1681_v7, %v1680_v5  ;;  %v1683_v11 = vpop.f32.mrb[14].mxu0 }
 0x159   :  { %v1704_v10 = vadd.f32 %v1703_v8, %v1702_v6  ;;  %v1705_v12 = vpop.f32.mrb[14].mxu1  ;;  %v1684_v13 = vpop.f32.mrb[15].mxu0 }
 0x15a   :  { %v1706_v14 = vpop.f32.mrb[15].mxu1  ;;  %v1353_v15 = vadd.f32 %v1682_v9, %v1313_v4 }
 0x15c   :  { %v1393_v16 = vadd.f32 %v1704_v10, %v1353_v15 }
 0x15e   :  { %1398 = vst [vmem:[%s2297_s3] sm:$0xff] %v1393_v16 }

// kernel: net_forward.8
= control target key start
LH: loop header
LB: loop body
LE: loop exit
PB: predicated region body
PF: predicated region fallthrough
CT: control target
= control target key end

     0   :  { %8 = vsyncpa [#allocation3], 0  ;;  %s4317_s0 = inlined_call_operand.vmem [shape: f32[8,1280], index: 0, kind: input, shape index: {}]   ;;  %s4318_s1 = inlined_call_operand.hbm [shape: bf16[1280,2048], index: 1, kind: input, shape index: {}]   ;;  %s4319_s2 = inlined_call_operand.hbm [shape: f32[1,2048], index: 2, kind: input, shape index: {}]   ;;  %s4320_s3 = inlined_call_operand.vmem [shape: f32[8,2048], index: 3, kind: output, shape index: {}]  }
   0x1   :  { %10 = vsyncpa [#allocation3 + $0x1], 0 }
   0x2   :  { %11 = vsyncpa [#allocation5], 0 }
   0x3   :  { %13 = vsyncpa [#allocation5 + $0x1], 0  ;;  %s3801_s12 = smov 0   ;;  %s3803_s13 = smov 0  }
   0x4   :  { %s3805_s14 = smov 0   ;;  %s3807_s15 = smov 0  }
   0x5 LB: > { %s2758_s16 = sadd.s32 4294967295, %s3774_s15   ;;  %s3821_s17 = sadd.s32 1, %s3774_s15   ;;  %s3774_s15 = sphi %s3807_s15, %s4330_s15   ;;  %s3770_s14 = sphi %s3805_s14, %s4329_s14   ;;  %s3766_s13 = sphi %s3803_s13, %s4328_s13   ;;  %s3762_s12 = sphi %s3801_s12, %s4327_s12  }
   0x6   : > { %s44_s18 = ssub.s32 %s3774_s15, %s3821_s17  ;;  %s47_s19 = sadd.s32 1, %s3770_s14 }
   0x7   : > { %p45_p0 = scmp.eq.s32.totalorder %s44_s18, 0  ;;  %p54_p1 = scmp.ne.s32.totalorder %s3770_s14, %s3766_s13 }
   0x8   : > { %p55_p2 = scmp.eq.s32.totalorder %s3774_s15, 0  ;;  %p60_p3 = scmp.ne.s32.totalorder %s3766_s13, %s3762_s12 }
   0x9   : > { %s3831_s20 = scalar_select %p45_p0, %s3770_s14, %s47_s19  }
   0xa   : > { %p56_p4 = por %p55_p2, %p54_p1  ;;  %p61_p5 = scmp.eq.s32.totalorder %s2758_s16, 0 }
   0xb   : > { %p3144_p6 = scmp.lt.s32.totalorder %s3774_s15, 4  ;;  %s3841_s22 = sand.u32 1, %s3770_s14  }
   0xc   : > { %p3836_p7 = por %p61_p5, %p60_p3  ;;  %s3131_s23 = smul.u32 2560, %s3841_s22 }
   0xd   : > { %s3093_s24 = sshll.u32 %s3774_s15, 8  ;;  %p3845_p8 = pnand %p3144_p6, %p56_p4 }
   0xe   : > { %s4322_s21 = scalar_select %p3836_p7, 1, 0 }
   0xf   : > { %s3852_s28 = scalar_lea.hbm %s4318_s1, %s3093_s24  ;;  %s143_s29 = scalar_lea.vmem [#allocation2], %s3131_s23 }
  0x10   : > { %s150_s30 = sshll.u32 %s143_s29, 4  ;;  %s140_s4 = scalar_lea.sflag [#allocation3], %s3841_s22  ;;  %s3854_s30 = int_to_ptr.vmem [resolvable:$true] %s150_s30 }
  0x11   : > { %s3676_s5 = scalar_lea.hbm %s3852_s28, 40960  ;;  %p3678_p10 = pneg %p3845_p8 }
  0x12   : > { %p3677_p9 = scmp.ne.s32.totalorder %s3852_s28, %s3676_s5  ;;  %s3681_s8 = scalar_lea.hbm %s4318_s1, 163840 }
  0x13   : > { %p3682_p13 = scmp.lt.u32.totalorder %s3852_s28, %s4318_s1  ;;  %p3683_p0 = scmp.lt.u32.totalorder %s3681_s8, %s3676_s5 }
  0x14   : > { %p3679_p11 = pnand %p3678_p10, %p3677_p9  ;;  %p3685_p2 = scmp.lt.u32.totalorder %s3676_s5, %s3852_s28 }
  0x15   : > { %p3684_p1 = por %p3683_p0, %p3682_p13 }
  0x16   : > { %p3680_p12 = pneg %p3679_p11 }
  0x17   : > { %p3686_p3 = por %p3685_p2, %p3684_p1 }
  0x19   : > { %p3687_p4 = pnand %p3686_p3, %p3680_p12 }
  0x1b   : > { %3690 = shalt.err (!%p3687_p4)
}
  0x1c   : > { %s3691_s11 = scalar_lea.vmem %s3854_s30, 40960  ;;  %s3776_s12 = smov [#allocation2]  }
  0x1d   : > { %p3692_p5 = scmp.ne.s32.totalorder %s3854_s30, %s3691_s11  ;;  %s3696_s18 = sshll.u32 %s3776_s12, 4  ;;  %s3697_s18 = int_to_ptr.vmem [resolvable:$false] %s3696_s18 }
  0x1e   : > { %s3698_s19 = scalar_lea.vmem %s3697_s18, 81920  ;;  %p3699_p11 = scmp.lt.s32.totalorder %s3854_s30, %s3697_s18 }
  0x1f   : > { %p3694_p6 = pnand %p3692_p5, %p3678_p10  ;;  %p3700_p13 = scmp.lt.s32.totalorder %s3698_s19, %s3691_s11 }
  0x21   : > { %p3695_p9 = pneg %p3694_p6  ;;  %p3701_p0 = por %p3700_p13, %p3699_p11 }
  0x23   : > { %p3702_p1 = pnand %p3701_p0, %p3695_p9 }
  0x25   : > { %3705 = shalt.err (!%p3702_p1)
}
  0x26   : > { %s3777_s23 = smov 1024   ;;  %s3778_s24 = smov 256  }
  0x27   : > { %s3779_s26 = smov 16   ;;  %p2767_p12 = scmp.ge.s32.totalorder %s3774_s15, 1 }
  0x28   : > { %3140 = dma.hbm_to_vmem [thread:$0]  (!%p3845_p8), %s3852_s28, 40960, %s3854_s30, %s140_s4, %s3777_s23, %s3778_s24, %s3779_s26  }
  0x29   : > { %p177_p2 = scmp.lt.s32.totalorder %s3774_s15, 5  ;;  %s2764_s27 = sshll.u32 %s3841_s22, 2 }
  0x2a   : > { %s3094_s5 = sshll.u32 %s3774_s15, 6  ;;  %s164_s6 = scalar_lea.vmem [#allocation4], %s2764_s27 }
  0x2b   : > { %p3887_p3 = pnand %p2767_p12, %p177_p2  ;;  %s172_s7 = sshll.u32 %s164_s6, 4  ;;  %s173_s7 = int_to_ptr.vmem [resolvable:$true] %s172_s7 }
  0x2c   : > { %s3895_s10 = scalar_lea.hbm %s4319_s2, %s3094_s5  ;;  %s161_s28 = scalar_lea.sflag [#allocation5], %s3841_s22 }
  0x2d   : > { %s4324_s29 = scalar_select %p3887_p3, 1, 0 }
  0x2e   : > { %s3706_s30 = scalar_lea.hbm %s3895_s10, 64  ;;  %s3711_s12 = scalar_lea.hbm %s4319_s2, 256 }
  0x2f   : > { %p3707_p4 = scmp.ne.s32.totalorder %s3895_s10, %s3706_s30  ;;  %p3712_p9 = scmp.lt.u32.totalorder %s3895_s10, %s4319_s2 }
  0x30   : > { %p3713_p11 = scmp.lt.u32.totalorder %s3711_s12, %s3706_s30  ;;  %p3715_p0 = scmp.lt.u32.totalorder %s3706_s30, %s3895_s10 }
  0x31   : > { %p3709_p5 = pnand %p3707_p4, %p3678_p10 }
  0x32   : > { %p3714_p13 = por %p3713_p11, %p3712_p9 }
  0x33   : > { %p3710_p6 = pneg %p3709_p5 }
  0x34   : > { %p3716_p1 = por %p3715_p0, %p3714_p13 }
  0x36   : > { %p3717_p12 = pnand %p3716_p1, %p3710_p6 }
  0x38   : > { %3720 = shalt.err (!%p3717_p12)
}
  0x39   : > { %s3721_s22 = scalar_lea.vmem %s173_s7, 64  ;;  %s3780_s23 = smov [#allocation4]  }
  0x3a   : > { %p3722_p2 = scmp.ne.s32.totalorder %s173_s7, %s3721_s22  ;;  %s3726_s24 = sshll.u32 %s3780_s23, 4  ;;  %s3727_s24 = int_to_ptr.vmem [resolvable:$false] %s3726_s24 }
  0x3b   : > { %s3728_s26 = scalar_lea.vmem %s3727_s24, 128  ;;  %p3729_p7 = scmp.lt.s32.totalorder %s173_s7, %s3727_s24 }
  0x3c   : > { %p3724_p4 = pnand %p3722_p2, %p3678_p10  ;;  %p3730_p3 = scmp.lt.s32.totalorder %s3728_s26, %s3721_s22 }
  0x3e   : > { %p3725_p5 = pneg %p3724_p4  ;;  %p3731_p9 = por %p3730_p3, %p3729_p7 }
  0x40   : > { %p3732_p11 = pnand %p3731_p9, %p3725_p5 }
  0x42   : > { %3735 = shalt.err (!%p3732_p11)
}
  0x43   : > { %3143 = dma.hbm_to_vmem [thread:$0]  (!%p3845_p8), %s3895_s10, 64, %s173_s7, %s161_s28  }
  0x44   : > { %p4325_p6 = scmp.ne.s32.totalorder %s4324_s29, 0 }
  0x45   : > { %s183_s27 = sand.u32 (!%p4325_p6), 1, %s3766_s13   ;;  %p4326_p10 = scmp.ne.s32.totalorder (!%p4325_p6), %s4322_s21, 0 }
  0x46   : > { %181 = sbr.rel (%p4325_p6) target bundleno = 655 (0x28f), region = 32  ;;  %s184_s6 = scalar_lea.sflag (!%p4325_p6), [#allocation3], %s183_s27 }
  0x47   : > { %s3132_s5 = smul.u32 (!%p4325_p6), 2560, %s183_s27 }
  0x49   : > { %s3920_s8 = scalar_lea.vmem (!%p4325_p6), [#allocation2], %s3132_s5 }
  0x4d   : > { %3753 = dma.done.wait (%p4326_p10), %s184_s6, 40960  }
  0x4e   : > { %3755 = vsyncadd (%p4326_p10), %s184_s6, 4294926336  ;;  %s2768_s9 = sshll.u32 %s183_s27, 2  ;;  %s193_s25 = scalar_lea.sflag [#allocation5], %s183_s27 }
  0x4f   : > { %s3926_s30 = scalar_lea.vmem [#allocation4], %s2768_s9 }
  0x50   : > { %3757 = dma.done.wait (%p4326_p10), %s193_s25, 64  }
  0x51   : > { %3759 = vsyncadd (%p4326_p10), %s193_s25, 4294967232  ;;  %v3180_v0 = vld [vmem:[%s3920_s8 + $0x4] ss:$16 sps:$4 sm:$0xff]   ;;  %v3182_v1 = vld [vmem:[%s3920_s8 + $0xc] ss:$16 sps:$4 sm:$0xff]  }
  0x52   : > { %2194 = vmatprep.subr.bf16.mxu0 %v3180_v0  ;;  %v3184_v2 = vld [vmem:[%s3920_s8] ss:$16 sps:$4 sm:$0xff]   ;;  %v3185_v3 = vld [vmem:[%s3920_s8 + $0x8] ss:$16 sps:$4 sm:$0xff]   ;;  %2399 = vmatprep.subr.bf16.mxu1 %v3182_v1  ;;  %v3186_v4 = vld [vmem:[%s3920_s8 + $0x24] ss:$16 sps:$4 sm:$0xff]  }
  0x53   : > { %2195 = vmatpush1.bf16.msra.mxu0 %v3184_v2  ;;  %2400 = vmatpush1.bf16.msra.mxu1 %v3185_v3  ;;  %v3188_v5 = vld [vmem:[%s3920_s8 + $0x2c] ss:$16 sps:$4 sm:$0xff]   ;;  %v3190_v6 = vld [vmem:[%s3920_s8 + $0x20] ss:$16 sps:$4 sm:$0xff]   ;;  %v3191_v7 = vld [vmem:[%s3920_s8 + $0x28] ss:$16 sps:$4 sm:$0xff]  }
  0x54   : > { %2196 = vmatprep.subr.bf16.mxu0 %v3186_v4  ;;  %2401 = vmatprep.subr.bf16.mxu1 %v3188_v5  ;;  %v3192_v8 = vld [vmem:[%s3920_s8 + $0x44] ss:$16 sps:$4 sm:$0xff]   ;;  %v3194_v9 = vld [vmem:[%s3920_s8 + $0x4c] ss:$16 sps:$4 sm:$0xff]   ;;  %v3196_v10 = vld [vmem:[%s3920_s8 + $0x40] ss:$16 sps:$4 sm:$0xff]  }
  0x55   : > { %v3197_v11 = vld [vmem:[%s3920_s8 + $0x48] ss:$16 sps:$4 sm:$0xff]   ;;  %v3198_v12 = vld [vmem:[%s3920_s8 + $0x64] ss:$16 sps:$4 sm:$0xff]   ;;  %v3200_v13 = vld [vmem:[%s3920_s8 + $0x6c] ss:$16 sps:$4 sm:$0xff]  }
  0x56   : > { %v3202_v14 = vld [vmem:[%s3920_s8 + $0x60] ss:$16 sps:$4 sm:$0xff]   ;;  %v3203_v15 = vld [vmem:[%s3920_s8 + $0x68] ss:$16 sps:$4 sm:$0xff]   ;;  %v3204_v16 = vld [vmem:[%s3920_s8 + $0x84] ss:$16 sps:$4 sm:$0xff]  }
  0x57   : > { %2197 = vmatpush1.bf16.msra.mxu0 %v3190_v6  ;;  %2402 = vmatpush1.bf16.msra.mxu1 %v3191_v7  ;;  %v3206_v17 = vld [vmem:[%s3920_s8 + $0x8c] ss:$16 sps:$4 sm:$0xff]   ;;  %v3208_v18 = vld [vmem:[%s3920_s8 + $0x80] ss:$16 sps:$4 sm:$0xff]   ;;  %v3209_v19 = vld [vmem:[%s3920_s8 + $0x88] ss:$16 sps:$4 sm:$0xff]  }
  0x58   : > { %2198 = vmatprep.subr.bf16.mxu0 %v3192_v8  ;;  %2403 = vmatprep.subr.bf16.mxu1 %v3194_v9  ;;  %v3210_v20 = vld [vmem:[%s3920_s8 + $0xa4] ss:$16 sps:$4 sm:$0xff]   ;;  %v3212_v21 = vld [vmem:[%s3920_s8 + $0xac] ss:$16 sps:$4 sm:$0xff]   ;;  %v3214_v22 = vld [vmem:[%s3920_s8 + $0xa0] ss:$16 sps:$4 sm:$0xff]  }
  0x59   : > { %v3215_v23 = vld [vmem:[%s3920_s8 + $0xa8] ss:$16 sps:$4 sm:$0xff]   ;;  %v3216_v24 = vld [vmem:[%s3920_s8 + $0xc4] ss:$16 sps:$4 sm:$0xff]   ;;  %v3218_v25 = vld [vmem:[%s3920_s8 + $0xcc] ss:$16 sps:$4 sm:$0xff]  }
  0x5a   : > { %v3220_v26 = vld [vmem:[%s3920_s8 + $0xc0] ss:$16 sps:$4 sm:$0xff]   ;;  %v3221_v27 = vld [vmem:[%s3920_s8 + $0xc8] ss:$16 sps:$4 sm:$0xff]   ;;  %v3222_v28 = vld [vmem:[%s3920_s8 + $0xe4] ss:$16 sps:$4 sm:$0xff]  }
  0x5b   : > { %2199 = vmatpush1.bf16.msra.mxu0 %v3196_v10  ;;  %2404 = vmatpush1.bf16.msra.mxu1 %v3197_v11  ;;  %v3224_v29 = vld [vmem:[%s3920_s8 + $0xec] ss:$16 sps:$4 sm:$0xff]   ;;  %v3226_v30 = vld [vmem:[%s3920_s8 + $0xe0] ss:$16 sps:$4 sm:$0xff]   ;;  %v3227_v31 = vld [vmem:[%s3920_s8 + $0xe8] ss:$16 sps:$4 sm:$0xff]  }
  0x5c   : > { %2200 = vmatprep.subr.bf16.mxu0 %v3198_v12  ;;  %2405 = vmatprep.subr.bf16.mxu1 %v3200_v13  ;;  %v3228_v32 = vld [vmem:[%s3920_s8 + $0x104] ss:$16 sps:$4 sm:$0xff]   ;;  %v3230_v33 = vld [vmem:[%s3920_s8 + $0x10c] ss:$16 sps:$4 sm:$0xff]   ;;  %v3232_v34 = vld [vmem:[%s3920_s8 + $0x100] ss:$16 sps:$4 sm:$0xff]  }
  0x5d   : > { %v3233_v35 = vld [vmem:[%s3920_s8 + $0x108] ss:$16 sps:$4 sm:$0xff]   ;;  %v3234_v36 = vld [vmem:[%s3920_s8 + $0x124] ss:$16 sps:$4 sm:$0xff]   ;;  %v3236_v37 = vld [vmem:[%s3920_s8 + $0x12c] ss:$16 sps:$4 sm:$0xff]  }
  0x5e   : > { %v3238_v38 = vld [vmem:[%s3920_s8 + $0x120] ss:$16 sps:$4 sm:$0xff]   ;;  %v3239_v39 = vld [vmem:[%s3920_s8 + $0x128] ss:$16 sps:$4 sm:$0xff]   ;;  %v3240_v40 = vld [vmem:[%s3920_s8 + $0x144] ss:$16 sps:$4 sm:$0xff]  }
  0x5f   : > { %2201 = vmatpush1.bf16.msra.mxu0 %v3202_v14  ;;  %2406 = vmatpush1.bf16.msra.mxu1 %v3203_v15  ;;  %v3242_v41 = vld [vmem:[%s3920_s8 + $0x14c] ss:$16 sps:$4 sm:$0xff]   ;;  %v3244_v42 = vld [vmem:[%s3920_s8 + $0x140] ss:$16 sps:$4 sm:$0xff]   ;;  %v3245_v43 = vld [vmem:[%s3920_s8 + $0x148] ss:$16 sps:$4 sm:$0xff]  }
  0x60   : > { %2202 = vmatprep.subr.bf16.mxu0 %v3204_v16  ;;  %2407 = vmatprep.subr.bf16.mxu1 %v3206_v17  ;;  %v3246_v44 = vld [vmem:[%s3920_s8 + $0x164] ss:$16 sps:$4 sm:$0xff]   ;;  %v3248_v45 = vld [vmem:[%s3920_s8 + $0x16c] ss:$16 sps:$4 sm:$0xff]   ;;  %v3250_v47 = vld [vmem:[%s3920_s8 + $0x160] ss:$16 sps:$4 sm:$0xff]  }
  0x61   : > { %v233_v46 = vld [vmem:[%s4317_s0 + $0x8] sm:$0xff]  ;;  %v3252_v50 = vld [vmem:[%s3920_s8 + $0x184] ss:$16 sps:$4 sm:$0xff]   ;;  %v3256_v52 = vld [vmem:[%s3920_s8 + $0x180] ss:$16 sps:$4 sm:$0xff]  }
  0x62   : > { %v243_v48 = vpack.c.bf16 %v233_v46, %v233_v46  ;;  %v3251_v49 = vld [vmem:[%s3920_s8 + $0x168] ss:$16 sps:$4 sm:$0xff]   ;;  %v3254_v51 = vld [vmem:[%s3920_s8 + $0x18c] ss:$16 sps:$4 sm:$0xff]   ;;  %v3258_v54 = vld [vmem:[%s3920_s8 + $0x1a4] ss:$16 sps:$4 sm:$0xff]  }
  0x63   : > { %2203 = vmatpush1.bf16.msra.mxu0 %v3208_v18  ;;  %2408 = vmatpush1.bf16.msra.mxu1 %v3209_v19  ;;  %v3257_v53 = vld [vmem:[%s3920_s8 + $0x188] ss:$16 sps:$4 sm:$0xff]   ;;  %v3260_v55 = vld [vmem:[%s3920_s8 + $0x1ac] ss:$16 sps:$4 sm:$0xff]   ;;  %v3262_v56 = vld [vmem:[%s3920_s8 + $0x1a0] ss:$16 sps:$4 sm:$0xff]  }
  0x64   : > { %2204 = vmatprep.subr.bf16.mxu0 %v3210_v20  ;;  %2409 = vmatprep.subr.bf16.mxu1 %v3212_v21  ;;  %v3263_v57 = vld [vmem:[%s3920_s8 + $0x1a8] ss:$16 sps:$4 sm:$0xff]   ;;  %v3264_v58 = vld [vmem:[%s3920_s8 + $0x1c4] ss:$16 sps:$4 sm:$0xff]   ;;  %v3266_v59 = vld [vmem:[%s3920_s8 + $0x1cc] ss:$16 sps:$4 sm:$0xff]  }
  0x65   : > { %2226 = vmatprep.mubr.bf16.mxu0 %v243_v48  ;;  %2431 = vmatprep.mubr.bf16.mxu1 %v243_v48  ;;  %v3268_v60 = vld [vmem:[%s3920_s8 + $0x1c0] ss:$16 sps:$4 sm:$0xff]   ;;  %v3269_v61 = vld [vmem:[%s3920_s8 + $0x1c8] ss:$16 sps:$4 sm:$0xff]   ;;  %v3270_v62 = vld [vmem:[%s3920_s8 + $0x1e4] ss:$16 sps:$4 sm:$0xff]  }
  0x66   : > { %v3272_v63 = vld [vmem:[%s3920_s8 + $0x1ec] ss:$16 sps:$4 sm:$0xff]   ;;  %v3274_v0 = vld [vmem:[%s3920_s8 + $0x1e0] ss:$16 sps:$4 sm:$0xff]   ;;  %v3275_v1 = vld [vmem:[%s3920_s8 + $0x1e8] ss:$16 sps:$4 sm:$0xff]  }
  0x67   : > { %2205 = vmatpush1.bf16.msra.mxu0 %v3214_v22  ;;  %2410 = vmatpush1.bf16.msra.mxu1 %v3215_v23  ;;  %v232_v2 = vld [vmem:[%s4317_s0] sm:$0xff]  ;;  %v3281_v4 = vld [vmem:[%s3920_s8 + $0x20c] ss:$16 sps:$4 sm:$0xff]   ;;  %v3279_v7 = vld [vmem:[%s3920_s8 + $0x208] ss:$16 sps:$4 sm:$0xff]  }
  0x68   : > { %2206 = vmatprep.subr.bf16.mxu0 %v3216_v24  ;;  %2411 = vmatprep.subr.bf16.mxu1 %v3218_v25  ;;  %v3278_v3 = vld [vmem:[%s3920_s8 + $0x204] ss:$16 sps:$4 sm:$0xff]   ;;  %v242_v5 = vpack.c.bf16 %v232_v2, %v232_v2  ;;  %v3276_v6 = vld [vmem:[%s3920_s8 + $0x200] ss:$16 sps:$4 sm:$0xff]   ;;  %v3287_v9 = vld [vmem:[%s3920_s8 + $0x22c] ss:$16 sps:$4 sm:$0xff]  }
  0x69   : > { %v3284_v8 = vld [vmem:[%s3920_s8 + $0x224] ss:$16 sps:$4 sm:$0xff]   ;;  %v3282_v10 = vld [vmem:[%s3920_s8 + $0x220] ss:$16 sps:$4 sm:$0xff]   ;;  %v3285_v11 = vld [vmem:[%s3920_s8 + $0x228] ss:$16 sps:$4 sm:$0xff]  }
  0x6a   : > { %v3290_v12 = vld [vmem:[%s3920_s8 + $0x244] ss:$16 sps:$4 sm:$0xff]   ;;  %v3293_v13 = vld [vmem:[%s3920_s8 + $0x24c] ss:$16 sps:$4 sm:$0xff]   ;;  %v3288_v14 = vld [vmem:[%s3920_s8 + $0x240] ss:$16 sps:$4 sm:$0xff]  }
  0x6b   : > { %2207 = vmatpush1.bf16.msra.mxu0 %v3220_v26  ;;  %2412 = vmatpush1.bf16.msra.mxu1 %v3221_v27  ;;  %v3291_v15 = vld [vmem:[%s3920_s8 + $0x248] ss:$16 sps:$4 sm:$0xff]   ;;  %v3296_v16 = vld [vmem:[%s3920_s8 + $0x264] ss:$16 sps:$4 sm:$0xff]   ;;  %v3299_v17 = vld [vmem:[%s3920_s8 + $0x26c] ss:$16 sps:$4 sm:$0xff]  }
  0x6c   : > { %2208 = vmatprep.subr.bf16.mxu0 %v3222_v28  ;;  %2413 = vmatprep.subr.bf16.mxu1 %v3224_v29  ;;  %v3294_v18 = vld [vmem:[%s3920_s8 + $0x260] ss:$16 sps:$4 sm:$0xff]   ;;  %v3297_v19 = vld [vmem:[%s3920_s8 + $0x268] ss:$16 sps:$4 sm:$0xff]   ;;  %v3302_v20 = vld [vmem:[%s3920_s8 + $0x284] ss:$16 sps:$4 sm:$0xff]  }
  0x6d   : > { %v3305_v21 = vld [vmem:[%s3920_s8 + $0x28c] ss:$16 sps:$4 sm:$0xff]   ;;  %v3300_v22 = vld [vmem:[%s3920_s8 + $0x280] ss:$16 sps:$4 sm:$0xff]   ;;  %v3303_v23 = vld [vmem:[%s3920_s8 + $0x288] ss:$16 sps:$4 sm:$0xff]  }
  0x6e   : > { %v3308_v24 = vld [vmem:[%s3920_s8 + $0x2a4] ss:$16 sps:$4 sm:$0xff]   ;;  %v3311_v25 = vld [vmem:[%s3920_s8 + $0x2ac] ss:$16 sps:$4 sm:$0xff]   ;;  %v3306_v26 = vld [vmem:[%s3920_s8 + $0x2a0] ss:$16 sps:$4 sm:$0xff]  }
  0x6f   : > { %2209 = vmatpush1.bf16.msra.mxu0 %v3226_v30  ;;  %2414 = vmatpush1.bf16.msra.mxu1 %v3227_v31  ;;  %v3309_v27 = vld [vmem:[%s3920_s8 + $0x2a8] ss:$16 sps:$4 sm:$0xff]   ;;  %v3314_v28 = vld [vmem:[%s3920_s8 + $0x2c4] ss:$16 sps:$4 sm:$0xff]   ;;  %v3317_v29 = vld [vmem:[%s3920_s8 + $0x2cc] ss:$16 sps:$4 sm:$0xff]  }
  0x70   : > { %2210 = vmatprep.subr.bf16.mxu0 %v3228_v32  ;;  %2415 = vmatprep.subr.bf16.mxu1 %v3230_v33  ;;  %v235_v30 = vld [vmem:[%s4317_s0 + $0x18] sm:$0xff]  ;;  %v3312_v31 = vld [vmem:[%s3920_s8 + $0x2c0] ss:$16 sps:$4 sm:$0xff]   ;;  %v3338_v46 = vld [vmem:[%s3920_s8 + $0x344] ss:$16 sps:$4 sm:$0xff]  }
  0x71   : > { %v245_v32 = vpack.c.bf16 %v235_v30, %v235_v30  ;;  %v3315_v33 = vld [vmem:[%s3920_s8 + $0x2c8] ss:$16 sps:$4 sm:$0xff]   ;;  %v3336_v48 = vld [vmem:[%s3920_s8 + $0x340] ss:$16 sps:$4 sm:$0xff]   ;;  %v3368_v2 = vld [vmem:[%s3920_s8 + $0x3e4] ss:$16 sps:$4 sm:$0xff]  }
  0x72   : > { %v3404_v30 = vld [vmem:[%s3920_s8 + $0x4a4] ss:$16 sps:$4 sm:$0xff]  }
  0x73   : > { %2211 = vmatpush1.bf16.msra.mxu0 %v3232_v34  ;;  %2416 = vmatpush1.bf16.msra.mxu1 %v3233_v35  ;;  %v3320_v34 = vld [vmem:[%s3920_s8 + $0x2e4] ss:$16 sps:$4 sm:$0xff]   ;;  %v3323_v35 = vld [vmem:[%s3920_s8 + $0x2ec] ss:$16 sps:$4 sm:$0xff]  }
  0x74   : > { %2212 = vmatprep.subr.bf16.mxu0 %v3234_v36  ;;  %2417 = vmatprep.subr.bf16.mxu1 %v3236_v37  ;;  %v3318_v36 = vld [vmem:[%s3920_s8 + $0x2e0] ss:$16 sps:$4 sm:$0xff]   ;;  %v3321_v37 = vld [vmem:[%s3920_s8 + $0x2e8] ss:$16 sps:$4 sm:$0xff]  }
  0x77   : > { %2213 = vmatpush1.bf16.msra.mxu0 %v3238_v38  ;;  %2418 = vmatpush1.bf16.msra.mxu1 %v3239_v39  ;;  %v3326_v38 = vld [vmem:[%s3920_s8 + $0x304] ss:$16 sps:$4 sm:$0xff]   ;;  %v3329_v39 = vld [vmem:[%s3920_s8 + $0x30c] ss:$16 sps:$4 sm:$0xff]  }
  0x78   : > { %2214 = vmatprep.subr.bf16.mxu0 %v3240_v40  ;;  %2419 = vmatprep.subr.bf16.mxu1 %v3242_v41  ;;  %v3324_v40 = vld [vmem:[%s3920_s8 + $0x300] ss:$16 sps:$4 sm:$0xff]   ;;  %v3327_v41 = vld [vmem:[%s3920_s8 + $0x308] ss:$16 sps:$4 sm:$0xff]  }
  0x7b   : > { %2215 = vmatpush1.bf16.msra.mxu0 %v3244_v42  ;;  %2420 = vmatpush1.bf16.msra.mxu1 %v3245_v43  ;;  %v3332_v42 = vld [vmem:[%s3920_s8 + $0x324] ss:$16 sps:$4 sm:$0xff]   ;;  %v3335_v43 = vld [vmem:[%s3920_s8 + $0x32c] ss:$16 sps:$4 sm:$0xff]  }
  0x7c   : > { %2216 = vmatprep.subr.bf16.mxu0 %v3246_v44  ;;  %2421 = vmatprep.subr.bf16.mxu1 %v3248_v45  ;;  %v3330_v44 = vld [vmem:[%s3920_s8 + $0x320] ss:$16 sps:$4 sm:$0xff]   ;;  %v3333_v45 = vld [vmem:[%s3920_s8 + $0x328] ss:$16 sps:$4 sm:$0xff]  }
  0x7f   : > { %2217 = vmatpush1.bf16.msra.mxu0 %v3250_v47  ;;  %2422 = vmatpush1.bf16.msra.mxu1 %v3251_v49  ;;  %v3341_v47 = vld [vmem:[%s3920_s8 + $0x34c] ss:$16 sps:$4 sm:$0xff]   ;;  %v3339_v49 = vld [vmem:[%s3920_s8 + $0x348] ss:$16 sps:$4 sm:$0xff]  }
  0x80   : > { %2218 = vmatprep.subr.bf16.mxu0 %v3252_v50  ;;  %2423 = vmatprep.subr.bf16.mxu1 %v3254_v51  ;;  %v3344_v50 = vld [vmem:[%s3920_s8 + $0x364] ss:$16 sps:$4 sm:$0xff]   ;;  %v3347_v51 = vld [vmem:[%s3920_s8 + $0x36c] ss:$16 sps:$4 sm:$0xff]  }
  0x83   : > { %2219 = vmatpush1.bf16.msra.mxu0 %v3256_v52  ;;  %2424 = vmatpush1.bf16.msra.mxu1 %v3257_v53  ;;  %v3342_v52 = vld [vmem:[%s3920_s8 + $0x360] ss:$16 sps:$4 sm:$0xff]   ;;  %v3345_v53 = vld [vmem:[%s3920_s8 + $0x368] ss:$16 sps:$4 sm:$0xff]  }
  0x84   : > { %2220 = vmatprep.subr.bf16.mxu0 %v3258_v54  ;;  %2425 = vmatprep.subr.bf16.mxu1 %v3260_v55  ;;  %v3350_v54 = vld [vmem:[%s3920_s8 + $0x384] ss:$16 sps:$4 sm:$0xff]   ;;  %v3353_v55 = vld [vmem:[%s3920_s8 + $0x38c] ss:$16 sps:$4 sm:$0xff]  }
  0x87   : > { %2221 = vmatpush1.bf16.msra.mxu0 %v3262_v56  ;;  %2426 = vmatpush1.bf16.msra.mxu1 %v3263_v57  ;;  %v3348_v56 = vld [vmem:[%s3920_s8 + $0x380] ss:$16 sps:$4 sm:$0xff]   ;;  %v3351_v57 = vld [vmem:[%s3920_s8 + $0x388] ss:$16 sps:$4 sm:$0xff]  }
  0x88   : > { %2222 = vmatprep.subr.bf16.mxu0 %v3264_v58  ;;  %2427 = vmatprep.subr.bf16.mxu1 %v3266_v59  ;;  %v3356_v58 = vld [vmem:[%s3920_s8 + $0x3a4] ss:$16 sps:$4 sm:$0xff]   ;;  %v3359_v59 = vld [vmem:[%s3920_s8 + $0x3ac] ss:$16 sps:$4 sm:$0xff]  }
  0x8b   : > { %2223 = vmatpush1.bf16.msra.mxu0 %v3268_v60  ;;  %2428 = vmatpush1.bf16.msra.mxu1 %v3269_v61  ;;  %v3354_v60 = vld [vmem:[%s3920_s8 + $0x3a0] ss:$16 sps:$4 sm:$0xff]   ;;  %v3357_v61 = vld [vmem:[%s3920_s8 + $0x3a8] ss:$16 sps:$4 sm:$0xff]  }
  0x8c   : > { %2224 = vmatprep.subr.bf16.mxu0 %v3270_v62  ;;  %2429 = vmatprep.subr.bf16.mxu1 %v3272_v63  ;;  %v3362_v62 = vld [vmem:[%s3920_s8 + $0x3c4] ss:$16 sps:$4 sm:$0xff]   ;;  %v3365_v63 = vld [vmem:[%s3920_s8 + $0x3cc] ss:$16 sps:$4 sm:$0xff]  }
  0x8f   : > { %2225 = vmatpush1.bf16.msra.mxu0 %v3274_v0  ;;  %2430 = vmatpush1.bf16.msra.mxu1 %v3275_v1  ;;  %v3360_v0 = vld [vmem:[%s3920_s8 + $0x3c0] ss:$16 sps:$4 sm:$0xff]   ;;  %v3363_v1 = vld [vmem:[%s3920_s8 + $0x3c8] ss:$16 sps:$4 sm:$0xff]  }
  0x90   : > { %2235 = vmatprep.subr.bf16.mxu0 %v3278_v3  ;;  %2440 = vmatprep.subr.bf16.mxu1 %v3281_v4  ;;  %v3371_v3 = vld [vmem:[%s3920_s8 + $0x3ec] ss:$16 sps:$4 sm:$0xff]   ;;  %v3366_v4 = vld [vmem:[%s3920_s8 + $0x3e0] ss:$16 sps:$4 sm:$0xff]  }
  0x92   : > { %2227 = vmatmul.mubr.bf16.vlgmr.msra.gmra.mrb[0].mxu0 %v242_v5  ;;  %2432 = vmatmul.mubr.bf16.vlgmr.msra.gmra.mrb[0].mxu1 %v242_v5  ;;  %v3369_v5 = vld [vmem:[%s3920_s8 + $0x3e8] ss:$16 sps:$4 sm:$0xff]  }
  0x93   : > { %2236 = vmatpush1.bf16.msra.mxu0 %v3276_v6  ;;  %2441 = vmatpush1.bf16.msra.mxu1 %v3279_v7  ;;  %v3374_v6 = vld [vmem:[%s3920_s8 + $0x404] ss:$16 sps:$4 sm:$0xff]  }
  0x94   : > { %2237 = vmatprep.subr.bf16.mxu0 %v3284_v8  ;;  %2442 = vmatprep.subr.bf16.mxu1 %v3287_v9  ;;  %v234_v7 = vld [vmem:[%s4317_s0 + $0x10] sm:$0xff]  ;;  %v3377_v8 = vld [vmem:[%s3920_s8 + $0x40c] ss:$16 sps:$4 sm:$0xff]  }
  0x95   : > { %2267 = vmatprep.mubr.bf16.mxu0 %v245_v32  ;;  %2472 = vmatprep.mubr.bf16.mxu1 %v245_v32  ;;  %v3372_v9 = vld [vmem:[%s3920_s8 + $0x400] ss:$16 sps:$4 sm:$0xff]  }
  0x96   : > { %v3402_v32 = vld [vmem:[%s3920_s8 + $0x4a0] ss:$16 sps:$4 sm:$0xff]  }
  0x97   : > { %2238 = vmatpush1.bf16.msra.mxu0 %v3282_v10  ;;  %2443 = vmatpush1.bf16.msra.mxu1 %v3285_v11  ;;  %v3375_v10 = vld [vmem:[%s3920_s8 + $0x408] ss:$16 sps:$4 sm:$0xff]   ;;  %v244_v11 = vpack.c.bf16 %v234_v7, %v234_v7  ;;  %v3467_v7 = vld [vmem:[%s3920_s8 + $0x5ec] ss:$16 sps:$4 sm:$0xff]  }
  0x98   : > { %2239 = vmatprep.subr.bf16.mxu0 %v3290_v12  ;;  %2444 = vmatprep.subr.bf16.mxu1 %v3293_v13  ;;  %v3380_v12 = vld [vmem:[%s3920_s8 + $0x424] ss:$16 sps:$4 sm:$0xff]   ;;  %v3383_v13 = vld [vmem:[%s3920_s8 + $0x42c] ss:$16 sps:$4 sm:$0xff]  }
  0x9b   : > { %2240 = vmatpush1.bf16.msra.mxu0 %v3288_v14  ;;  %2445 = vmatpush1.bf16.msra.mxu1 %v3291_v15  ;;  %v237_v14 = vld [vmem:[%s4317_s0 + $0x28] sm:$0xff] }
  0x9c   : > { %2241 = vmatprep.subr.bf16.mxu0 %v3296_v16  ;;  %2446 = vmatprep.subr.bf16.mxu1 %v3299_v17  ;;  %v247_v15 = vpack.c.bf16 %v237_v14, %v237_v14  ;;  %v3378_v16 = vld [vmem:[%s3920_s8 + $0x420] ss:$16 sps:$4 sm:$0xff]   ;;  %v3381_v17 = vld [vmem:[%s3920_s8 + $0x428] ss:$16 sps:$4 sm:$0xff]  }
  0x9d   : > { %v3471_v14 = vld [vmem:[%s3920_s8 + $0x608] ss:$16 sps:$4 sm:$0xff]  }
  0x9f   : > { %2242 = vmatpush1.bf16.msra.mxu0 %v3294_v18  ;;  %2447 = vmatpush1.bf16.msra.mxu1 %v3297_v19  ;;  %v3386_v18 = vld [vmem:[%s3920_s8 + $0x444] ss:$16 sps:$4 sm:$0xff]   ;;  %v3389_v19 = vld [vmem:[%s3920_s8 + $0x44c] ss:$16 sps:$4 sm:$0xff]  }
  0xa0   : > { %2243 = vmatprep.subr.bf16.mxu0 %v3302_v20  ;;  %2448 = vmatprep.subr.bf16.mxu1 %v3305_v21  ;;  %v3384_v20 = vld [vmem:[%s3920_s8 + $0x440] ss:$16 sps:$4 sm:$0xff]   ;;  %v3387_v21 = vld [vmem:[%s3920_s8 + $0x448] ss:$16 sps:$4 sm:$0xff]  }
  0xa3   : > { %2244 = vmatpush1.bf16.msra.mxu0 %v3300_v22  ;;  %2449 = vmatpush1.bf16.msra.mxu1 %v3303_v23  ;;  %v3392_v22 = vld [vmem:[%s3920_s8 + $0x464] ss:$16 sps:$4 sm:$0xff]   ;;  %v3395_v23 = vld [vmem:[%s3920_s8 + $0x46c] ss:$16 sps:$4 sm:$0xff]  }
  0xa4   : > { %2245 = vmatprep.subr.bf16.mxu0 %v3308_v24  ;;  %2450 = vmatprep.subr.bf16.mxu1 %v3311_v25  ;;  %v3390_v24 = vld [vmem:[%s3920_s8 + $0x460] ss:$16 sps:$4 sm:$0xff]   ;;  %v3393_v25 = vld [vmem:[%s3920_s8 + $0x468] ss:$16 sps:$4 sm:$0xff]  }
  0xa7   : > { %2246 = vmatpush1.bf16.msra.mxu0 %v3306_v26  ;;  %2451 = vmatpush1.bf16.msra.mxu1 %v3309_v27  ;;  %v3398_v26 = vld [vmem:[%s3920_s8 + $0x484] ss:$16 sps:$4 sm:$0xff]   ;;  %v3401_v27 = vld [vmem:[%s3920_s8 + $0x48c] ss:$16 sps:$4 sm:$0xff]  }
  0xa8   : > { %2247 = vmatprep.subr.bf16.mxu0 %v3314_v28  ;;  %2452 = vmatprep.subr.bf16.mxu1 %v3317_v29  ;;  %v3396_v28 = vld [vmem:[%s3920_s8 + $0x480] ss:$16 sps:$4 sm:$0xff]   ;;  %v3399_v29 = vld [vmem:[%s3920_s8 + $0x488] ss:$16 sps:$4 sm:$0xff]  }
  0xab   : > { %2248 = vmatpush1.bf16.msra.mxu0 %v3312_v31  ;;  %2453 = vmatpush1.bf16.msra.mxu1 %v3315_v33  ;;  %v3407_v31 = vld [vmem:[%s3920_s8 + $0x4ac] ss:$16 sps:$4 sm:$0xff]   ;;  %v3405_v33 = vld [vmem:[%s3920_s8 + $0x4a8] ss:$16 sps:$4 sm:$0xff]  }
  0xac   : > { %2249 = vmatprep.subr.bf16.mxu0 %v3320_v34  ;;  %2454 = vmatprep.subr.bf16.mxu1 %v3323_v35  ;;  %v3410_v34 = vld [vmem:[%s3920_s8 + $0x4c4] ss:$16 sps:$4 sm:$0xff]   ;;  %v3413_v35 = vld [vmem:[%s3920_s8 + $0x4cc] ss:$16 sps:$4 sm:$0xff]  }
  0xaf   : > { %2250 = vmatpush1.bf16.msra.mxu0 %v3318_v36  ;;  %2455 = vmatpush1.bf16.msra.mxu1 %v3321_v37  ;;  %v3408_v36 = vld [vmem:[%s3920_s8 + $0x4c0] ss:$16 sps:$4 sm:$0xff]   ;;  %v3411_v37 = vld [vmem:[%s3920_s8 + $0x4c8] ss:$16 sps:$4 sm:$0xff]  }
  0xb0   : > { %2251 = vmatprep.subr.bf16.mxu0 %v3326_v38  ;;  %2456 = vmatprep.subr.bf16.mxu1 %v3329_v39  ;;  %v3416_v38 = vld [vmem:[%s3920_s8 + $0x4e4] ss:$16 sps:$4 sm:$0xff]   ;;  %v3419_v39 = vld [vmem:[%s3920_s8 + $0x4ec] ss:$16 sps:$4 sm:$0xff]  }
  0xb3   : > { %2252 = vmatpush1.bf16.msra.mxu0 %v3324_v40  ;;  %2457 = vmatpush1.bf16.msra.mxu1 %v3327_v41  ;;  %v3414_v40 = vld [vmem:[%s3920_s8 + $0x4e0] ss:$16 sps:$4 sm:$0xff]   ;;  %v3417_v41 = vld [vmem:[%s3920_s8 + $0x4e8] ss:$16 sps:$4 sm:$0xff]  }
  0xb4   : > { %2253 = vmatprep.subr.bf16.mxu0 %v3332_v42  ;;  %2458 = vmatprep.subr.bf16.mxu1 %v3335_v43  ;;  %v3422_v42 = vld [vmem:[%s3920_s8 + $0x504] ss:$16 sps:$4 sm:$0xff]   ;;  %v3425_v43 = vld [vmem:[%s3920_s8 + $0x50c] ss:$16 sps:$4 sm:$0xff]  }
  0xb7   : > { %2254 = vmatpush1.bf16.msra.mxu0 %v3330_v44  ;;  %2459 = vmatpush1.bf16.msra.mxu1 %v3333_v45  ;;  %v3420_v44 = vld [vmem:[%s3920_s8 + $0x500] ss:$16 sps:$4 sm:$0xff]   ;;  %v3423_v45 = vld [vmem:[%s3920_s8 + $0x508] ss:$16 sps:$4 sm:$0xff]  }
  0xb8   : > { %2255 = vmatprep.subr.bf16.mxu0 %v3338_v46  ;;  %2460 = vmatprep.subr.bf16.mxu1 %v3341_v47  ;;  %v3428_v46 = vld [vmem:[%s3920_s8 + $0x524] ss:$16 sps:$4 sm:$0xff]   ;;  %v3431_v47 = vld [vmem:[%s3920_s8 + $0x52c] ss:$16 sps:$4 sm:$0xff]  }
  0xbb   : > { %2256 = vmatpush1.bf16.msra.mxu0 %v3336_v48  ;;  %2461 = vmatpush1.bf16.msra.mxu1 %v3339_v49  ;;  %v3426_v48 = vld [vmem:[%s3920_s8 + $0x520] ss:$16 sps:$4 sm:$0xff]   ;;  %v3429_v49 = vld [vmem:[%s3920_s8 + $0x528] ss:$16 sps:$4 sm:$0xff]  }
  0xbc   : > { %2257 = vmatprep.subr.bf16.mxu0 %v3344_v50  ;;  %2462 = vmatprep.subr.bf16.mxu1 %v3347_v51  ;;  %v3434_v50 = vld [vmem:[%s3920_s8 + $0x544] ss:$16 sps:$4 sm:$0xff]   ;;  %v3437_v51 = vld [vmem:[%s3920_s8 + $0x54c] ss:$16 sps:$4 sm:$0xff]  }
  0xbf   : > { %2258 = vmatpush1.bf16.msra.mxu0 %v3342_v52  ;;  %2463 = vmatpush1.bf16.msra.mxu1 %v3345_v53  ;;  %v3432_v52 = vld [vmem:[%s3920_s8 + $0x540] ss:$16 sps:$4 sm:$0xff]   ;;  %v3435_v53 = vld [vmem:[%s3920_s8 + $0x548] ss:$16 sps:$4 sm:$0xff]  }
  0xc0   : > { %2259 = vmatprep.subr.bf16.mxu0 %v3350_v54  ;;  %2464 = vmatprep.subr.bf16.mxu1 %v3353_v55  ;;  %v3440_v54 = vld [vmem:[%s3920_s8 + $0x564] ss:$16 sps:$4 sm:$0xff]   ;;  %v3443_v55 = vld [vmem:[%s3920_s8 + $0x56c] ss:$16 sps:$4 sm:$0xff]  }
  0xc3   : > { %2260 = vmatpush1.bf16.msra.mxu0 %v3348_v56  ;;  %2465 = vmatpush1.bf16.msra.mxu1 %v3351_v57  ;;  %v3438_v56 = vld [vmem:[%s3920_s8 + $0x560] ss:$16 sps:$4 sm:$0xff]   ;;  %v3441_v57 = vld [vmem:[%s3920_s8 + $0x568] ss:$16 sps:$4 sm:$0xff]  }
  0xc4   : > { %2261 = vmatprep.subr.bf16.mxu0 %v3356_v58  ;;  %2466 = vmatprep.subr.bf16.mxu1 %v3359_v59  ;;  %v3446_v58 = vld [vmem:[%s3920_s8 + $0x584] ss:$16 sps:$4 sm:$0xff]   ;;  %v3449_v59 = vld [vmem:[%s3920_s8 + $0x58c] ss:$16 sps:$4 sm:$0xff]  }
  0xc7   : > { %2262 = vmatpush1.bf16.msra.mxu0 %v3354_v60  ;;  %2467 = vmatpush1.bf16.msra.mxu1 %v3357_v61  ;;  %v3444_v60 = vld [vmem:[%s3920_s8 + $0x580] ss:$16 sps:$4 sm:$0xff]   ;;  %v3447_v61 = vld [vmem:[%s3920_s8 + $0x588] ss:$16 sps:$4 sm:$0xff]  }
  0xc8   : > { %2263 = vmatprep.subr.bf16.mxu0 %v3362_v62  ;;  %2468 = vmatprep.subr.bf16.mxu1 %v3365_v63  ;;  %v3452_v62 = vld [vmem:[%s3920_s8 + $0x5a4] ss:$16 sps:$4 sm:$0xff]   ;;  %v3455_v63 = vld [vmem:[%s3920_s8 + $0x5ac] ss:$16 sps:$4 sm:$0xff]  }
  0xcb   : > { %2264 = vmatpush1.bf16.msra.mxu0 %v3360_v0  ;;  %2469 = vmatpush1.bf16.msra.mxu1 %v3363_v1  ;;  %v3450_v0 = vld [vmem:[%s3920_s8 + $0x5a0] ss:$16 sps:$4 sm:$0xff]   ;;  %v3453_v1 = vld [vmem:[%s3920_s8 + $0x5a8] ss:$16 sps:$4 sm:$0xff]  }
  0xcc   : > { %2265 = vmatprep.subr.bf16.mxu0 %v3368_v2  ;;  %2470 = vmatprep.subr.bf16.mxu1 %v3371_v3  ;;  %v3458_v2 = vld [vmem:[%s3920_s8 + $0x5c4] ss:$16 sps:$4 sm:$0xff]   ;;  %v3461_v3 = vld [vmem:[%s3920_s8 + $0x5cc] ss:$16 sps:$4 sm:$0xff]  }
  0xcf   : > { %2266 = vmatpush1.bf16.msra.mxu0 %v3366_v4  ;;  %2471 = vmatpush1.bf16.msra.mxu1 %v3369_v5  ;;  %v3456_v4 = vld [vmem:[%s3920_s8 + $0x5c0] ss:$16 sps:$4 sm:$0xff]   ;;  %v3459_v5 = vld [vmem:[%s3920_s8 + $0x5c8] ss:$16 sps:$4 sm:$0xff]  }
  0xd0   : > { %2276 = vmatprep.subr.bf16.mxu0 %v3374_v6  ;;  %2481 = vmatprep.subr.bf16.mxu1 %v3377_v8  ;;  %v3464_v6 = vld [vmem:[%s3920_s8 + $0x5e4] ss:$16 sps:$4 sm:$0xff]   ;;  %v3462_v8 = vld [vmem:[%s3920_s8 + $0x5e0] ss:$16 sps:$4 sm:$0xff]  }
  0xd2   : > { %2268 = vmatmul.mubr.bf16.vlgmr.msra.gmra.mrb[0].mxu0 %v244_v11  ;;  %2473 = vmatmul.mubr.bf16.vlgmr.msra.gmra.mrb[0].mxu1 %v244_v11  ;;  %v236_v11 = vld [vmem:[%s4317_s0 + $0x20] sm:$0xff] }
  0xd3   : > { %2277 = vmatpush1.bf16.msra.mxu0 %v3372_v9  ;;  %2482 = vmatpush1.bf16.msra.mxu1 %v3375_v10  ;;  %v3465_v9 = vld [vmem:[%s3920_s8 + $0x5e8] ss:$16 sps:$4 sm:$0xff]   ;;  %v3470_v10 = vld [vmem:[%s3920_s8 + $0x604] ss:$16 sps:$4 sm:$0xff]  }
  0xd4   : > { %2278 = vmatprep.subr.bf16.mxu0 %v3380_v12  ;;  %2483 = vmatprep.subr.bf16.mxu1 %v3383_v13  ;;  %v3473_v12 = vld [vmem:[%s3920_s8 + $0x60c] ss:$16 sps:$4 sm:$0xff]   ;;  %v3468_v13 = vld [vmem:[%s3920_s8 + $0x600] ss:$16 sps:$4 sm:$0xff]  }
  0xd5   : > { %2308 = vmatprep.mubr.bf16.mxu0 %v247_v15  ;;  %2513 = vmatprep.mubr.bf16.mxu1 %v247_v15  ;;  %v246_v15 = vpack.c.bf16 %v236_v11, %v236_v11  ;;  %v3563_v11 = vld [vmem:[%s3920_s8 + $0x7ec] ss:$16 sps:$4 sm:$0xff]  }
  0xd7   : > { %2279 = vmatpush1.bf16.msra.mxu0 %v3378_v16  ;;  %2484 = vmatpush1.bf16.msra.mxu1 %v3381_v17  ;;  %v239_v16 = vld [vmem:[%s4317_s0 + $0x38] sm:$0xff]  ;;  %v3476_v17 = vld [vmem:[%s3920_s8 + $0x624] ss:$16 sps:$4 sm:$0xff]  }
  0xd8   : > { %2280 = vmatprep.subr.bf16.mxu0 %v3386_v18  ;;  %2485 = vmatprep.subr.bf16.mxu1 %v3389_v19  ;;  %v3479_v18 = vld [vmem:[%s3920_s8 + $0x62c] ss:$16 sps:$4 sm:$0xff]   ;;  %v249_v19 = vpack.c.bf16 %v239_v16, %v239_v16 }
  0xd9   : > { %v3569_v16 = vld [vmem:[%s3920_s8 + $0x80c] ss:$16 sps:$4 sm:$0xff]  }
  0xdb   : > { %2281 = vmatpush1.bf16.msra.mxu0 %v3384_v20  ;;  %2486 = vmatpush1.bf16.msra.mxu1 %v3387_v21  ;;  %v3474_v20 = vld [vmem:[%s3920_s8 + $0x620] ss:$16 sps:$4 sm:$0xff]   ;;  %v3477_v21 = vld [vmem:[%s3920_s8 + $0x628] ss:$16 sps:$4 sm:$0xff]  }
  0xdc   : > { %2282 = vmatprep.subr.bf16.mxu0 %v3392_v22  ;;  %2487 = vmatprep.subr.bf16.mxu1 %v3395_v23  ;;  %v3482_v22 = vld [vmem:[%s3920_s8 + $0x644] ss:$16 sps:$4 sm:$0xff]   ;;  %v3485_v23 = vld [vmem:[%s3920_s8 + $0x64c] ss:$16 sps:$4 sm:$0xff]  }
  0xdf   : > { %2283 = vmatpush1.bf16.msra.mxu0 %v3390_v24  ;;  %2488 = vmatpush1.bf16.msra.mxu1 %v3393_v25  ;;  %v3480_v24 = vld [vmem:[%s3920_s8 + $0x640] ss:$16 sps:$4 sm:$0xff]   ;;  %v3483_v25 = vld [vmem:[%s3920_s8 + $0x648] ss:$16 sps:$4 sm:$0xff]  }
  0xe0   : > { %2284 = vmatprep.subr.bf16.mxu0 %v3398_v26  ;;  %2489 = vmatprep.subr.bf16.mxu1 %v3401_v27  ;;  %v3488_v26 = vld [vmem:[%s3920_s8 + $0x664] ss:$16 sps:$4 sm:$0xff]   ;;  %v3491_v27 = vld [vmem:[%s3920_s8 + $0x66c] ss:$16 sps:$4 sm:$0xff]  }
  0xe3   : > { %2285 = vmatpush1.bf16.msra.mxu0 %v3396_v28  ;;  %2490 = vmatpush1.bf16.msra.mxu1 %v3399_v29  ;;  %v3486_v28 = vld [vmem:[%s3920_s8 + $0x660] ss:$16 sps:$4 sm:$0xff]   ;;  %v3489_v29 = vld [vmem:[%s3920_s8 + $0x668] ss:$16 sps:$4 sm:$0xff]  }
  0xe4   : > { %2286 = vmatprep.subr.bf16.mxu0 %v3404_v30  ;;  %2491 = vmatprep.subr.bf16.mxu1 %v3407_v31  ;;  %v3494_v30 = vld [vmem:[%s3920_s8 + $0x684] ss:$16 sps:$4 sm:$0xff]   ;;  %v3497_v31 = vld [vmem:[%s3920_s8 + $0x68c] ss:$16 sps:$4 sm:$0xff]  }
  0xe7   : > { %2287 = vmatpush1.bf16.msra.mxu0 %v3402_v32  ;;  %2492 = vmatpush1.bf16.msra.mxu1 %v3405_v33  ;;  %v3492_v32 = vld [vmem:[%s3920_s8 + $0x680] ss:$16 sps:$4 sm:$0xff]   ;;  %v3495_v33 = vld [vmem:[%s3920_s8 + $0x688] ss:$16 sps:$4 sm:$0xff]  }
  0xe8   : > { %2288 = vmatprep.subr.bf16.mxu0 %v3410_v34  ;;  %2493 = vmatprep.subr.bf16.mxu1 %v3413_v35  ;;  %v3500_v34 = vld [vmem:[%s3920_s8 + $0x6a4] ss:$16 sps:$4 sm:$0xff]   ;;  %v3503_v35 = vld [vmem:[%s3920_s8 + $0x6ac] ss:$16 sps:$4 sm:$0xff]  }
  0xeb   : > { %2289 = vmatpush1.bf16.msra.mxu0 %v3408_v36  ;;  %2494 = vmatpush1.bf16.msra.mxu1 %v3411_v37  ;;  %v3498_v36 = vld [vmem:[%s3920_s8 + $0x6a0] ss:$16 sps:$4 sm:$0xff]   ;;  %v3501_v37 = vld [vmem:[%s3920_s8 + $0x6a8] ss:$16 sps:$4 sm:$0xff]  }
  0xec   : > { %2290 = vmatprep.subr.bf16.mxu0 %v3416_v38  ;;  %2495 = vmatprep.subr.bf16.mxu1 %v3419_v39  ;;  %v3506_v38 = vld [vmem:[%s3920_s8 + $0x6c4] ss:$16 sps:$4 sm:$0xff]   ;;  %v3509_v39 = vld [vmem:[%s3920_s8 + $0x6cc] ss:$16 sps:$4 sm:$0xff]  }
  0xef   : > { %2291 = vmatpush1.bf16.msra.mxu0 %v3414_v40  ;;  %2496 = vmatpush1.bf16.msra.mxu1 %v3417_v41  ;;  %v3504_v40 = vld [vmem:[%s3920_s8 + $0x6c0] ss:$16 sps:$4 sm:$0xff]   ;;  %v3507_v41 = vld [vmem:[%s3920_s8 + $0x6c8] ss:$16 sps:$4 sm:$0xff]  }
  0xf0   : > { %2292 = vmatprep.subr.bf16.mxu0 %v3422_v42  ;;  %2497 = vmatprep.subr.bf16.mxu1 %v3425_v43  ;;  %v3512_v42 = vld [vmem:[%s3920_s8 + $0x6e4] ss:$16 sps:$4 sm:$0xff]   ;;  %v3515_v43 = vld [vmem:[%s3920_s8 + $0x6ec] ss:$16 sps:$4 sm:$0xff]  }
  0xf3   : > { %2293 = vmatpush1.bf16.msra.mxu0 %v3420_v44  ;;  %2498 = vmatpush1.bf16.msra.mxu1 %v3423_v45  ;;  %v3510_v44 = vld [vmem:[%s3920_s8 + $0x6e0] ss:$16 sps:$4 sm:$0xff]   ;;  %v3513_v45 = vld [vmem:[%s3920_s8 + $0x6e8] ss:$16 sps:$4 sm:$0xff]  }
  0xf4   : > { %2294 = vmatprep.subr.bf16.mxu0 %v3428_v46  ;;  %2499 = vmatprep.subr.bf16.mxu1 %v3431_v47  ;;  %v3518_v46 = vld [vmem:[%s3920_s8 + $0x704] ss:$16 sps:$4 sm:$0xff]   ;;  %v3521_v47 = vld [vmem:[%s3920_s8 + $0x70c] ss:$16 sps:$4 sm:$0xff]  }
  0xf7   : > { %2295 = vmatpush1.bf16.msra.mxu0 %v3426_v48  ;;  %2500 = vmatpush1.bf16.msra.mxu1 %v3429_v49  ;;  %v3516_v48 = vld [vmem:[%s3920_s8 + $0x700] ss:$16 sps:$4 sm:$0xff]   ;;  %v3519_v49 = vld [vmem:[%s3920_s8 + $0x708] ss:$16 sps:$4 sm:$0xff]  }
  0xf8   : > { %2296 = vmatprep.subr.bf16.mxu0 %v3434_v50  ;;  %2501 = vmatprep.subr.bf16.mxu1 %v3437_v51  ;;  %v3524_v50 = vld [vmem:[%s3920_s8 + $0x724] ss:$16 sps:$4 sm:$0xff]   ;;  %v3527_v51 = vld [vmem:[%s3920_s8 + $0x72c] ss:$16 sps:$4 sm:$0xff]  }
  0xfb   : > { %2297 = vmatpush1.bf16.msra.mxu0 %v3432_v52  ;;  %2502 = vmatpush1.bf16.msra.mxu1 %v3435_v53  ;;  %v3522_v52 = vld [vmem:[%s3920_s8 + $0x720] ss:$16 sps:$4 sm:$0xff]   ;;  %v3525_v53 = vld [vmem:[%s3920_s8 + $0x728] ss:$16 sps:$4 sm:$0xff]  }
  0xfc   : > { %2298 = vmatprep.subr.bf16.mxu0 %v3440_v54  ;;  %2503 = vmatprep.subr.bf16.mxu1 %v3443_v55  ;;  %v3530_v54 = vld [vmem:[%s3920_s8 + $0x744] ss:$16 sps:$4 sm:$0xff]   ;;  %v3533_v55 = vld [vmem:[%s3920_s8 + $0x74c] ss:$16 sps:$4 sm:$0xff]  }
  0xff   : > { %2299 = vmatpush1.bf16.msra.mxu0 %v3438_v56  ;;  %2504 = vmatpush1.bf16.msra.mxu1 %v3441_v57  ;;  %v3528_v56 = vld [vmem:[%s3920_s8 + $0x740] ss:$16 sps:$4 sm:$0xff]   ;;  %v3531_v57 = vld [vmem:[%s3920_s8 + $0x748] ss:$16 sps:$4 sm:$0xff]  }
 0x100   : > { %2300 = vmatprep.subr.bf16.mxu0 %v3446_v58  ;;  %2505 = vmatprep.subr.bf16.mxu1 %v3449_v59  ;;  %v3536_v58 = vld [vmem:[%s3920_s8 + $0x764] ss:$16 sps:$4 sm:$0xff]   ;;  %v3539_v59 = vld [vmem:[%s3920_s8 + $0x76c] ss:$16 sps:$4 sm:$0xff]  }
 0x103   : > { %2301 = vmatpush1.bf16.msra.mxu0 %v3444_v60  ;;  %2506 = vmatpush1.bf16.msra.mxu1 %v3447_v61  ;;  %v3534_v60 = vld [vmem:[%s3920_s8 + $0x760] ss:$16 sps:$4 sm:$0xff]   ;;  %v3537_v61 = vld [vmem:[%s3920_s8 + $0x768] ss:$16 sps:$4 sm:$0xff]  }
 0x104   : > { %2302 = vmatprep.subr.bf16.mxu0 %v3452_v62  ;;  %2507 = vmatprep.subr.bf16.mxu1 %v3455_v63  ;;  %v3542_v62 = vld [vmem:[%s3920_s8 + $0x784] ss:$16 sps:$4 sm:$0xff]   ;;  %v3545_v63 = vld [vmem:[%s3920_s8 + $0x78c] ss:$16 sps:$4 sm:$0xff]  }
 0x107   : > { %2303 = vmatpush1.bf16.msra.mxu0 %v3450_v0  ;;  %2508 = vmatpush1.bf16.msra.mxu1 %v3453_v1  ;;  %v3540_v0 = vld [vmem:[%s3920_s8 + $0x780] ss:$16 sps:$4 sm:$0xff]   ;;  %v3543_v1 = vld [vmem:[%s3920_s8 + $0x788] ss:$16 sps:$4 sm:$0xff]  }
 0x108   : > { %2304 = vmatprep.subr.bf16.mxu0 %v3458_v2  ;;  %2509 = vmatprep.subr.bf16.mxu1 %v3461_v3  ;;  %v3548_v2 = vld [vmem:[%s3920_s8 + $0x7a4] ss:$16 sps:$4 sm:$0xff]   ;;  %v3551_v3 = vld [vmem:[%s3920_s8 + $0x7ac] ss:$16 sps:$4 sm:$0xff]  }
 0x10b   : > { %2305 = vmatpush1.bf16.msra.mxu0 %v3456_v4  ;;  %2510 = vmatpush1.bf16.msra.mxu1 %v3459_v5  ;;  %v3546_v4 = vld [vmem:[%s3920_s8 + $0x7a0] ss:$16 sps:$4 sm:$0xff]   ;;  %v3549_v5 = vld [vmem:[%s3920_s8 + $0x7a8] ss:$16 sps:$4 sm:$0xff]  }
 0x10c   : > { %2306 = vmatprep.subr.bf16.mxu0 %v3464_v6  ;;  %2511 = vmatprep.subr.bf16.mxu1 %v3467_v7  ;;  %v3554_v6 = vld [vmem:[%s3920_s8 + $0x7c4] ss:$16 sps:$4 sm:$0xff]   ;;  %v3557_v7 = vld [vmem:[%s3920_s8 + $0x7cc] ss:$16 sps:$4 sm:$0xff]  }
 0x10f   : > { %2307 = vmatpush1.bf16.msra.mxu0 %v3462_v8  ;;  %2512 = vmatpush1.bf16.msra.mxu1 %v3465_v9  ;;  %v3552_v8 = vld [vmem:[%s3920_s8 + $0x7c0] ss:$16 sps:$4 sm:$0xff]   ;;  %v3555_v9 = vld [vmem:[%s3920_s8 + $0x7c8] ss:$16 sps:$4 sm:$0xff]  }
 0x110   : > { %2317 = vmatprep.subr.bf16.mxu0 %v3470_v10  ;;  %2522 = vmatprep.subr.bf16.mxu1 %v3473_v12  ;;  %v3560_v10 = vld [vmem:[%s3920_s8 + $0x7e4] ss:$16 sps:$4 sm:$0xff]   ;;  %v3558_v12 = vld [vmem:[%s3920_s8 + $0x7e0] ss:$16 sps:$4 sm:$0xff]  }
 0x112   : > { %2309 = vmatmul.mubr.bf16.vlgmr.msra.gmra.mrb[0].mxu0 %v246_v15  ;;  %2514 = vmatmul.mubr.bf16.vlgmr.msra.gmra.mrb[0].mxu1 %v246_v15  ;;  %v3566_v15 = vld [vmem:[%s3920_s8 + $0x804] ss:$16 sps:$4 sm:$0xff]  }
 0x113   : > { %2318 = vmatpush1.bf16.msra.mxu0 %v3468_v13  ;;  %2523 = vmatpush1.bf16.msra.mxu1 %v3471_v14  ;;  %v3561_v13 = vld [vmem:[%s3920_s8 + $0x7e8] ss:$16 sps:$4 sm:$0xff]   ;;  %v238_v14 = vld [vmem:[%s4317_s0 + $0x30] sm:$0xff] }
 0x114   : > { %2319 = vmatprep.subr.bf16.mxu0 %v3476_v17  ;;  %2524 = vmatprep.subr.bf16.mxu1 %v3479_v18  ;;  %v248_v17 = vpack.c.bf16 %v238_v14, %v238_v14  ;;  %v241_v18 = vld [vmem:[%s4317_s0 + $0x48] sm:$0xff]  ;;  %v3656_v14 = vld [vmem:[%s3920_s8 + $0x9e4] ss:$16 sps:$4 sm:$0xff]  }
 0x115   : > { %2349 = vmatprep.mubr.bf16.mxu0 %v249_v19  ;;  %2554 = vmatprep.mubr.bf16.mxu1 %v249_v19  ;;  %v3564_v19 = vld [vmem:[%s3920_s8 + $0x800] ss:$16 sps:$4 sm:$0xff]  }
 0x117   : > { %2320 = vmatpush1.bf16.msra.mxu0 %v3474_v20  ;;  %2525 = vmatpush1.bf16.msra.mxu1 %v3477_v21  ;;  %v3567_v20 = vld [vmem:[%s3920_s8 + $0x808] ss:$16 sps:$4 sm:$0xff]   ;;  %v3572_v21 = vld [vmem:[%s3920_s8 + $0x824] ss:$16 sps:$4 sm:$0xff]  }
 0x118   : > { %2321 = vmatprep.subr.bf16.mxu0 %v3482_v22  ;;  %2526 = vmatprep.subr.bf16.mxu1 %v3485_v23  ;;  %v3575_v22 = vld [vmem:[%s3920_s8 + $0x82c] ss:$16 sps:$4 sm:$0xff]   ;;  %v251_v23 = vpack.c.bf16 %v241_v18, %v241_v18  ;;  %v240_v18 = vld [vmem:[%s4317_s0 + $0x40] sm:$0xff] }
 0x11b   : > { %2322 = vmatpush1.bf16.msra.mxu0 %v3480_v24  ;;  %2527 = vmatpush1.bf16.msra.mxu1 %v3483_v25  ;;  %v3570_v24 = vld [vmem:[%s3920_s8 + $0x820] ss:$16 sps:$4 sm:$0xff]   ;;  %v3573_v25 = vld [vmem:[%s3920_s8 + $0x828] ss:$16 sps:$4 sm:$0xff]  }
 0x11c   : > { %2323 = vmatprep.subr.bf16.mxu0 %v3488_v26  ;;  %2528 = vmatprep.subr.bf16.mxu1 %v3491_v27  ;;  %v3578_v26 = vld [vmem:[%s3920_s8 + $0x844] ss:$16 sps:$4 sm:$0xff]   ;;  %v3581_v27 = vld [vmem:[%s3920_s8 + $0x84c] ss:$16 sps:$4 sm:$0xff]  }
 0x11f   : > { %2324 = vmatpush1.bf16.msra.mxu0 %v3486_v28  ;;  %2529 = vmatpush1.bf16.msra.mxu1 %v3489_v29  ;;  %v3576_v28 = vld [vmem:[%s3920_s8 + $0x840] ss:$16 sps:$4 sm:$0xff]   ;;  %v3579_v29 = vld [vmem:[%s3920_s8 + $0x848] ss:$16 sps:$4 sm:$0xff]  }
 0x120   : > { %2325 = vmatprep.subr.bf16.mxu0 %v3494_v30  ;;  %2530 = vmatprep.subr.bf16.mxu1 %v3497_v31  ;;  %v3584_v30 = vld [vmem:[%s3920_s8 + $0x864] ss:$16 sps:$4 sm:$0xff]   ;;  %v3587_v31 = vld [vmem:[%s3920_s8 + $0x86c] ss:$16 sps:$4 sm:$0xff]  }
 0x123   : > { %2326 = vmatpush1.bf16.msra.mxu0 %v3492_v32  ;;  %2531 = vmatpush1.bf16.msra.mxu1 %v3495_v33  ;;  %v3582_v32 = vld [vmem:[%s3920_s8 + $0x860] ss:$16 sps:$4 sm:$0xff]   ;;  %v3585_v33 = vld [vmem:[%s3920_s8 + $0x868] ss:$16 sps:$4 sm:$0xff]  }
 0x124   : > { %2327 = vmatprep.subr.bf16.mxu0 %v3500_v34  ;;  %2532 = vmatprep.subr.bf16.mxu1 %v3503_v35  ;;  %v3590_v34 = vld [vmem:[%s3920_s8 + $0x884] ss:$16 sps:$4 sm:$0xff]   ;;  %v3593_v35 = vld [vmem:[%s3920_s8 + $0x88c] ss:$16 sps:$4 sm:$0xff]  }
 0x127   : > { %2328 = vmatpush1.bf16.msra.mxu0 %v3498_v36  ;;  %2533 = vmatpush1.bf16.msra.mxu1 %v3501_v37  ;;  %v3588_v36 = vld [vmem:[%s3920_s8 + $0x880] ss:$16 sps:$4 sm:$0xff]   ;;  %v3591_v37 = vld [vmem:[%s3920_s8 + $0x888] ss:$16 sps:$4 sm:$0xff]  }
 0x128   : > { %2329 = vmatprep.subr.bf16.mxu0 %v3506_v38  ;;  %2534 = vmatprep.subr.bf16.mxu1 %v3509_v39  ;;  %v3596_v38 = vld [vmem:[%s3920_s8 + $0x8a4] ss:$16 sps:$4 sm:$0xff]   ;;  %v3599_v39 = vld [vmem:[%s3920_s8 + $0x8ac] ss:$16 sps:$4 sm:$0xff]  }
 0x12b   : > { %2330 = vmatpush1.bf16.msra.mxu0 %v3504_v40  ;;  %2535 = vmatpush1.bf16.msra.mxu1 %v3507_v41  ;;  %v3594_v40 = vld [vmem:[%s3920_s8 + $0x8a0] ss:$16 sps:$4 sm:$0xff]   ;;  %v3597_v41 = vld [vmem:[%s3920_s8 + $0x8a8] ss:$16 sps:$4 sm:$0xff]  }
 0x12c   : > { %2331 = vmatprep.subr.bf16.mxu0 %v3512_v42  ;;  %2536 = vmatprep.subr.bf16.mxu1 %v3515_v43  ;;  %v3602_v42 = vld [vmem:[%s3920_s8 + $0x8c4] ss:$16 sps:$4 sm:$0xff]   ;;  %v3605_v43 = vld [vmem:[%s3920_s8 + $0x8cc] ss:$16 sps:$4 sm:$0xff]  }
 0x12f   : > { %2332 = vmatpush1.bf16.msra.mxu0 %v3510_v44  ;;  %2537 = vmatpush1.bf16.msra.mxu1 %v3513_v45  ;;  %v3600_v44 = vld [vmem:[%s3920_s8 + $0x8c0] ss:$16 sps:$4 sm:$0xff]   ;;  %v3603_v45 = vld [vmem:[%s3920_s8 + $0x8c8] ss:$16 sps:$4 sm:$0xff]  }
 0x130   : > { %2333 = vmatprep.subr.bf16.mxu0 %v3518_v46  ;;  %2538 = vmatprep.subr.bf16.mxu1 %v3521_v47  ;;  %v3608_v46 = vld [vmem:[%s3920_s8 + $0x8e4] ss:$16 sps:$4 sm:$0xff]   ;;  %v3611_v47 = vld [vmem:[%s3920_s8 + $0x8ec] ss:$16 sps:$4 sm:$0xff]  }
 0x133   : > { %2334 = vmatpush1.bf16.msra.mxu0 %v3516_v48  ;;  %2539 = vmatpush1.bf16.msra.mxu1 %v3519_v49  ;;  %v3606_v48 = vld [vmem:[%s3920_s8 + $0x8e0] ss:$16 sps:$4 sm:$0xff]   ;;  %v3609_v49 = vld [vmem:[%s3920_s8 + $0x8e8] ss:$16 sps:$4 sm:$0xff]  }
 0x134   : > { %2335 = vmatprep.subr.bf16.mxu0 %v3524_v50  ;;  %2540 = vmatprep.subr.bf16.mxu1 %v3527_v51  ;;  %v3614_v50 = vld [vmem:[%s3920_s8 + $0x904] ss:$16 sps:$4 sm:$0xff]   ;;  %v3617_v51 = vld [vmem:[%s3920_s8 + $0x90c] ss:$16 sps:$4 sm:$0xff]  }
 0x137   : > { %2336 = vmatpush1.bf16.msra.mxu0 %v3522_v52  ;;  %2541 = vmatpush1.bf16.msra.mxu1 %v3525_v53  ;;  %v3612_v52 = vld [vmem:[%s3920_s8 + $0x900] ss:$16 sps:$4 sm:$0xff]   ;;  %v3615_v53 = vld [vmem:[%s3920_s8 + $0x908] ss:$16 sps:$4 sm:$0xff]  }
 0x138   : > { %2337 = vmatprep.subr.bf16.mxu0 %v3530_v54  ;;  %2542 = vmatprep.subr.bf16.mxu1 %v3533_v55  ;;  %v3620_v54 = vld [vmem:[%s3920_s8 + $0x924] ss:$16 sps:$4 sm:$0xff]   ;;  %v3623_v55 = vld [vmem:[%s3920_s8 + $0x92c] ss:$16 sps:$4 sm:$0xff]  }
 0x13b   : > { %2338 = vmatpush1.bf16.msra.mxu0 %v3528_v56  ;;  %2543 = vmatpush1.bf16.msra.mxu1 %v3531_v57  ;;  %v3618_v56 = vld [vmem:[%s3920_s8 + $0x920] ss:$16 sps:$4 sm:$0xff]   ;;  %v3621_v57 = vld [vmem:[%s3920_s8 + $0x928] ss:$16 sps:$4 sm:$0xff]  }
 0x13c   : > { %2339 = vmatprep.subr.bf16.mxu0 %v3536_v58  ;;  %2544 = vmatprep.subr.bf16.mxu1 %v3539_v59  ;;  %v3626_v58 = vld [vmem:[%s3920_s8 + $0x944] ss:$16 sps:$4 sm:$0xff]   ;;  %v3629_v59 = vld [vmem:[%s3920_s8 + $0x94c] ss:$16 sps:$4 sm:$0xff]  }
 0x13f   : > { %2340 = vmatpush1.bf16.msra.mxu0 %v3534_v60  ;;  %2545 = vmatpush1.bf16.msra.mxu1 %v3537_v61  ;;  %v3624_v60 = vld [vmem:[%s3920_s8 + $0x940] ss:$16 sps:$4 sm:$0xff]   ;;  %v3627_v61 = vld [vmem:[%s3920_s8 + $0x948] ss:$16 sps:$4 sm:$0xff]  }
 0x140   : > { %2341 = vmatprep.subr.bf16.mxu0 %v3542_v62  ;;  %2546 = vmatprep.subr.bf16.mxu1 %v3545_v63  ;;  %v3632_v62 = vld [vmem:[%s3920_s8 + $0x964] ss:$16 sps:$4 sm:$0xff]   ;;  %v3635_v63 = vld [vmem:[%s3920_s8 + $0x96c] ss:$16 sps:$4 sm:$0xff]  }
 0x143   : > { %2342 = vmatpush1.bf16.msra.mxu0 %v3540_v0  ;;  %2547 = vmatpush1.bf16.msra.mxu1 %v3543_v1  ;;  %v3630_v0 = vld [vmem:[%s3920_s8 + $0x960] ss:$16 sps:$4 sm:$0xff]   ;;  %v3633_v1 = vld [vmem:[%s3920_s8 + $0x968] ss:$16 sps:$4 sm:$0xff]  }
 0x144   : > { %2343 = vmatprep.subr.bf16.mxu0 %v3548_v2  ;;  %2548 = vmatprep.subr.bf16.mxu1 %v3551_v3  ;;  %v3638_v2 = vld [vmem:[%s3920_s8 + $0x984] ss:$16 sps:$4 sm:$0xff]   ;;  %v3641_v3 = vld [vmem:[%s3920_s8 + $0x98c] ss:$16 sps:$4 sm:$0xff]  }
 0x147   : > { %2344 = vmatpush1.bf16.msra.mxu0 %v3546_v4  ;;  %2549 = vmatpush1.bf16.msra.mxu1 %v3549_v5  ;;  %v3636_v4 = vld [vmem:[%s3920_s8 + $0x980] ss:$16 sps:$4 sm:$0xff]   ;;  %v3639_v5 = vld [vmem:[%s3920_s8 + $0x988] ss:$16 sps:$4 sm:$0xff]  }
 0x148   : > { %2345 = vmatprep.subr.bf16.mxu0 %v3554_v6  ;;  %2550 = vmatprep.subr.bf16.mxu1 %v3557_v7  ;;  %v3644_v6 = vld [vmem:[%s3920_s8 + $0x9a4] ss:$16 sps:$4 sm:$0xff]   ;;  %v3647_v7 = vld [vmem:[%s3920_s8 + $0x9ac] ss:$16 sps:$4 sm:$0xff]  }
 0x14b   : > { %2346 = vmatpush1.bf16.msra.mxu0 %v3552_v8  ;;  %2551 = vmatpush1.bf16.msra.mxu1 %v3555_v9  ;;  %v3642_v8 = vld [vmem:[%s3920_s8 + $0x9a0] ss:$16 sps:$4 sm:$0xff]   ;;  %v3645_v9 = vld [vmem:[%s3920_s8 + $0x9a8] ss:$16 sps:$4 sm:$0xff]  }
 0x14c   : > { %2347 = vmatprep.subr.bf16.mxu0 %v3560_v10  ;;  %2552 = vmatprep.subr.bf16.mxu1 %v3563_v11  ;;  %v3650_v10 = vld [vmem:[%s3920_s8 + $0x9c4] ss:$16 sps:$4 sm:$0xff]   ;;  %v3653_v11 = vld [vmem:[%s3920_s8 + $0x9cc] ss:$16 sps:$4 sm:$0xff]  }
 0x14f   : > { %2348 = vmatpush1.bf16.msra.mxu0 %v3558_v12  ;;  %2553 = vmatpush1.bf16.msra.mxu1 %v3561_v13  ;;  %v3648_v12 = vld [vmem:[%s3920_s8 + $0x9c0] ss:$16 sps:$4 sm:$0xff]   ;;  %v3651_v13 = vld [vmem:[%s3920_s8 + $0x9c8] ss:$16 sps:$4 sm:$0xff]  }
 0x150   : > { %2358 = vmatprep.subr.bf16.mxu0 %v3566_v15  ;;  %2563 = vmatprep.subr.bf16.mxu1 %v3569_v16  ;;  %v3659_v15 = vld [vmem:[%s3920_s8 + $0x9ec] ss:$16 sps:$4 sm:$0xff]   ;;  %v3654_v16 = vld [vmem:[%s3920_s8 + $0x9e0] ss:$16 sps:$4 sm:$0xff]  }
 0x152   : > { %2350 = vmatmul.mubr.bf16.vlgmr.msra.gmra.mrb[0].mxu0 %v248_v17  ;;  %2555 = vmatmul.mubr.bf16.vlgmr.msra.gmra.mrb[0].mxu1 %v248_v17  ;;  %v3657_v17 = vld [vmem:[%s3920_s8 + $0x9e8] ss:$16 sps:$4 sm:$0xff]   ;;  %s2769_s8 = sshll.u32 %s2758_s16, 2 }
 0x153   : > { %2359 = vmatpush1.bf16.msra.mxu0 %v3564_v19  ;;  %2564 = vmatpush1.bf16.msra.mxu1 %v3567_v20  ;;  %v250_v19 = vpack.c.bf16 %v240_v18, %v240_v18  ;;  %v574_v20 = vlaneseq  ;;  %p227_p7 = scmp.lt.s32.totalorder %s2769_s8, 15 }
 0x154   : > { %2360 = vmatprep.subr.bf16.mxu0 %v3572_v21  ;;  %2565 = vmatprep.subr.bf16.mxu1 %v3575_v22 }
 0x155   : > { %2390 = vmatprep.mubr.bf16.mxu0 %v251_v23  ;;  %2595 = vmatprep.mubr.bf16.mxu1 %v251_v23  ;;  %v575_v21 = vshrl.u32 %v574_v20, 7  ;;  %s4332_s8 = smov (!%p227_p7, %s2769_s8), 15 }
 0x156   : > { %s2770_s15 = sshll.u32 %s4332_s8, 3 }
 0x157   : > { %2361 = vmatpush1.bf16.msra.mxu0 %v3570_v24  ;;  %2566 = vmatpush1.bf16.msra.mxu1 %v3573_v25  ;;  %v576_v22 = vsub.s32 0, %v575_v21  ;;  %v584_v23 = vsub.s32 2, %v575_v21  ;;  %v572_v24 = vld [vmem:[%s3926_s30] sm:$0xf]  ;;  %v580_v25 = vsub.s32 1, %v575_v21  ;;  %s230_s29 = scalar_lea.vmem %s4320_s3, %s2770_s15 }
 0x158   : > { %2362 = vmatprep.subr.bf16.mxu0 %v3578_v26  ;;  %2567 = vmatprep.subr.bf16.mxu1 %v3581_v27  ;;  %v588_v26 = vsub.s32 3, %v575_v21 }
 0x159   : > { %v577_v27 = vrot.slane %v572_v24, %v576_v22 }
 0x15b   : > { %2363 = vmatpush1.bf16.msra.mxu0 %v3576_v28  ;;  %2568 = vmatpush1.bf16.msra.mxu1 %v3579_v29  ;;  %v585_v28 = vrot.slane %v572_v24, %v584_v23  ;;  %v581_v29 = vrot.slane %v572_v24, %v580_v25 }
 0x15c   : > { %2364 = vmatprep.subr.bf16.mxu0 %v3584_v30  ;;  %2569 = vmatprep.subr.bf16.mxu1 %v3587_v31  ;;  %v589_v30 = vrot.slane %v572_v24, %v588_v26 }
 0x15f   : > { %2365 = vmatpush1.bf16.msra.mxu0 %v3582_v32  ;;  %2570 = vmatpush1.bf16.msra.mxu1 %v3585_v33 }
 0x160   : > { %2366 = vmatprep.subr.bf16.mxu0 %v3590_v34  ;;  %2571 = vmatprep.subr.bf16.mxu1 %v3593_v35 }
 0x163   : > { %2367 = vmatpush1.bf16.msra.mxu0 %v3588_v36  ;;  %2572 = vmatpush1.bf16.msra.mxu1 %v3591_v37 }
 0x164   : > { %2368 = vmatprep.subr.bf16.mxu0 %v3596_v38  ;;  %2573 = vmatprep.subr.bf16.mxu1 %v3599_v39 }
 0x167   : > { %2369 = vmatpush1.bf16.msra.mxu0 %v3594_v40  ;;  %2574 = vmatpush1.bf16.msra.mxu1 %v3597_v41 }
 0x168   : > { %2370 = vmatprep.subr.bf16.mxu0 %v3602_v42  ;;  %2575 = vmatprep.subr.bf16.mxu1 %v3605_v43 }
 0x16b   : > { %2371 = vmatpush1.bf16.msra.mxu0 %v3600_v44  ;;  %2576 = vmatpush1.bf16.msra.mxu1 %v3603_v45 }
 0x16c   : > { %2372 = vmatprep.subr.bf16.mxu0 %v3608_v46  ;;  %2577 = vmatprep.subr.bf16.mxu1 %v3611_v47 }
 0x16f   : > { %2373 = vmatpush1.bf16.msra.mxu0 %v3606_v48  ;;  %2578 = vmatpush1.bf16.msra.mxu1 %v3609_v49 }
 0x170   : > { %2374 = vmatprep.subr.bf16.mxu0 %v3614_v50  ;;  %2579 = vmatprep.subr.bf16.mxu1 %v3617_v51 }
 0x173   : > { %2375 = vmatpush1.bf16.msra.mxu0 %v3612_v52  ;;  %2580 = vmatpush1.bf16.msra.mxu1 %v3615_v53 }
 0x174   : > { %2376 = vmatprep.subr.bf16.mxu0 %v3620_v54  ;;  %2581 = vmatprep.subr.bf16.mxu1 %v3623_v55 }
 0x177   : > { %2377 = vmatpush1.bf16.msra.mxu0 %v3618_v56  ;;  %2582 = vmatpush1.bf16.msra.mxu1 %v3621_v57 }
 0x178   : > { %2378 = vmatprep.subr.bf16.mxu0 %v3626_v58  ;;  %2583 = vmatprep.subr.bf16.mxu1 %v3629_v59 }
 0x17b   : > { %2379 = vmatpush1.bf16.msra.mxu0 %v3624_v60  ;;  %2584 = vmatpush1.bf16.msra.mxu1 %v3627_v61 }
 0x17c   : > { %2380 = vmatprep.subr.bf16.mxu0 %v3632_v62  ;;  %2585 = vmatprep.subr.bf16.mxu1 %v3635_v63 }
 0x17f   : > { %2381 = vmatpush1.bf16.msra.mxu0 %v3630_v0  ;;  %2586 = vmatpush1.bf16.msra.mxu1 %v3633_v1 }
 0x180   : > { %2382 = vmatprep.subr.bf16.mxu0 %v3638_v2  ;;  %2587 = vmatprep.subr.bf16.mxu1 %v3641_v3 }
 0x183   : > { %2383 = vmatpush1.bf16.msra.mxu0 %v3636_v4  ;;  %2588 = vmatpush1.bf16.msra.mxu1 %v3639_v5 }
 0x184   : > { %2384 = vmatprep.subr.bf16.mxu0 %v3644_v6  ;;  %2589 = vmatprep.subr.bf16.mxu1 %v3647_v7 }
 0x187   : > { %2385 = vmatpush1.bf16.msra.mxu0 %v3642_v8  ;;  %2590 = vmatpush1.bf16.msra.mxu1 %v3645_v9 }
 0x188   : > { %2386 = vmatprep.subr.bf16.mxu0 %v3650_v10  ;;  %2591 = vmatprep.subr.bf16.mxu1 %v3653_v11 }
 0x18b   : > { %2387 = vmatpush1.bf16.msra.mxu0 %v3648_v12  ;;  %2592 = vmatpush1.bf16.msra.mxu1 %v3651_v13 }
 0x18c   : > { %2388 = vmatprep.subr.bf16.mxu0 %v3656_v14  ;;  %2593 = vmatprep.subr.bf16.mxu1 %v3659_v15 }
 0x18f   : > { %2389 = vmatpush1.bf16.msra.mxu0 %v3654_v16  ;;  %2594 = vmatpush1.bf16.msra.mxu1 %v3657_v17 }
 0x192   : > { %2391 = vmatmul.mubr.bf16.vlgmr.msra.gmra.mrb[0].mxu0 %v250_v19  ;;  %2596 = vmatmul.mubr.bf16.vlgmr.msra.gmra.mrb[0].mxu1 %v250_v19 }
 0x265   : > { %v2392_v31 = vpop.f32.mrb[0].mxu0  ;;  %v2597_v32 = vpop.f32.mrb[0].mxu1 }
 0x266   : > { %v4283_v33 = vadd.f32 %v2392_v31, %v577_v27  ;;  %v4285_v34 = vadd.f32 %v2597_v32, %v585_v28  ;;  %v2394_v35 = vpop.f32.mrb[1].mxu0  ;;  %v2599_v36 = vpop.f32.mrb[1].mxu1 }
 0x267   : > { %v4287_v37 = vadd.f32 %v2394_v35, %v581_v29  ;;  %v4289_v38 = vadd.f32 %v2599_v36, %v589_v30  ;;  %v2396_v39 = vpop.f32.mrb[2].mxu0  ;;  %v2601_v40 = vpop.f32.mrb[2].mxu1 }
 0x268   : > { %v2608_v41 = vand.u32 2147483647, %v4283_v33  ;;  %v2610_v42 = vand.u32 2147483647, %v4285_v34  ;;  %v2397_v47 = vpop.f32.mrb[3].mxu0  ;;  %v2602_v48 = vpop.f32.mrb[3].mxu1 }
 0x269   : > { %v2609_v43 = vand.u32 2147483647, %v4287_v37  ;;  %v2611_v44 = vand.u32 2147483647, %v4289_v38  ;;  %v2604_v9 = vmax.f32 %v4283_v33, 0.0  ;;  %v2606_v14 = vmax.f32 %v4285_v34, 0.0 }
 0x26a   : > { %v2612_v45 = vsub.f32 0.0, %v2608_v41  ;;  %v2614_v46 = vsub.f32 0.0, %v2610_v42  ;;  %v2605_v26 = vmax.f32 %v4287_v37, 0.0  ;;  %v2607_v32 = vmax.f32 %v4289_v38, 0.0 }
 0x26b   : > { %v2613_v49 = vsub.f32 0.0, %v2609_v43  ;;  %v2615_v50 = vsub.f32 0.0, %v2611_v44 }
 0x26c   : > { %v2616_v51 = vmul.f32 1.442695, %v2612_v45  ;;  %v2620_v52 = vmul.f32 1.442695, %v2614_v46 }
 0x26d   : > { %v2618_v53 = vmul.f32 1.442695, %v2613_v49  ;;  %v2622_v54 = vmul.f32 1.442695, %v2615_v50 }
 0x26e   : > { %3660 = vpow2.f32 %v2616_v51 }
 0x26f   : > { %3662 = vpow2.f32 %v2620_v52 }
 0x270   : > { %3664 = vpow2.f32 %v2618_v53 }
 0x271   : > { %3666 = vpow2.f32 %v2622_v54 }
 0x278   : > { %v3661_v55 = vpop.eup %3660 }
 0x279   : > { %v3663_v56 = vpop.eup %3662  ;;  %v2624_v57 = vadd.f32 1.0, %v3661_v55  ;;  %v2627_v63 = vmul.f32 -0.5, %v3661_v55  ;;  %v2630_v4 = vand.u32 2147483647, %v3661_v55 }
 0x27a   : > { %v3665_v58 = vpop.eup %3664  ;;  %v2642_v59 = vadd.f32 1.0, %v3663_v56  ;;  %v2645_v0 = vmul.f32 -0.5, %v3663_v56  ;;  %v2648_v6 = vand.u32 2147483647, %v3663_v56 }
 0x27b   : > { %v3667_v60 = vpop.eup %3666  ;;  %3668 = vlog2.f32 %v2624_v57  ;;  %v2633_v61 = vadd.f32 1.0, %v3665_v58  ;;  %v2636_v1 = vmul.f32 -0.5, %v3665_v58  ;;  %v2628_v2 = vadd.f32 1.0, %v2627_v63 }
 0x27c   : > { %3670 = vlog2.f32 %v2642_v59  ;;  %v2651_v62 = vadd.f32 1.0, %v3667_v60  ;;  %v2654_v3 = vmul.f32 -0.5, %v3667_v60  ;;  %v2646_v5 = vadd.f32 1.0, %v2645_v0 }
 0x27d   : > { %3672 = vlog2.f32 %v2633_v61  ;;  %v2637_v7 = vadd.f32 1.0, %v2636_v1  ;;  %v2639_v10 = vand.u32 2147483647, %v3665_v58  ;;  %v2629_v13 = vmul.f32 %v3661_v55, %v2628_v2 }
 0x27e   : > { %3674 = vlog2.f32 %v2651_v62  ;;  %v2655_v15 = vadd.f32 1.0, %v2654_v3  ;;  %vm2631_vm0 = vcmp.lt.f32.partialorder %v2630_v4, 0.0004427343  ;;  %v2647_v18 = vmul.f32 %v3663_v56, %v2646_v5 }
 0x27f   : > { %v2657_v19 = vand.u32 2147483647, %v3667_v60  ;;  %vm2649_vm1 = vcmp.lt.f32.partialorder %v2648_v6, 0.0004427343  ;;  %v2638_v22 = vmul.f32 %v3665_v58, %v2637_v7  ;;  %vm2640_vm2 = vcmp.lt.f32.partialorder %v2639_v10, 0.0004427343 }
 0x280   : > { %v2656_v30 = vmul.f32 %v3667_v60, %v2655_v15 }
 0x281   : > { %vm2658_vm3 = vcmp.lt.f32.partialorder %v2657_v19, 0.0004427343 }
 0x285   : > { %v3669_v8 = vpop.eup %3668 }
 0x286   : > { %v3671_v11 = vpop.eup %3670  ;;  %v2626_v12 = vmul.f32 0.6931472, %v3669_v8 }
 0x287   : > { %v3673_v16 = vpop.eup %3672  ;;  %v2644_v17 = vmul.f32 0.6931472, %v3671_v11 }
 0x288   : > { %v2632_v20 = vsel %vm2631_vm0, %v2629_v13, %v2626_v12  ;;  %v2635_v21 = vmul.f32 0.6931472, %v3673_v16  ;;  %v3675_v23 = vpop.eup %3674 }
 0x289   : > { %v2660_v24 = vadd.f32 %v2632_v20, %v2604_v9  ;;  %v2650_v25 = vsel %vm2649_vm1, %v2647_v18, %v2644_v17  ;;  %v2653_v29 = vmul.f32 0.6931472, %v3675_v23 }
 0x28a   : > { %v2662_v27 = vadd.f32 %v2650_v25, %v2606_v14  ;;  %v2641_v28 = vsel %vm2640_vm2, %v2638_v22, %v2635_v21 }
 0x28b   : > { %2664 = vst [vmem:[%s230_s29] sm:$0xff] %v2660_v24  ;;  %v2661_v31 = vadd.f32 %v2641_v28, %v2605_v26  ;;  %v2659_v33 = vsel %vm2658_vm3, %v2656_v30, %v2653_v29 }
 0x28c   : > { %2666 = vst [vmem:[%s230_s29 + $0x10] sm:$0xff] %v2662_v27  ;;  %v2663_v34 = vadd.f32 %v2659_v33, %v2607_v32 }
 0x28d   : > { %2665 = vst [vmem:[%s230_s29 + $0x8] sm:$0xff] %v2661_v31 }
 0x28e   : > { %2667 = vst [vmem:[%s230_s29 + $0x18] sm:$0xff] %v2663_v34 }
 0x28f PF: > { %p16_p8 = scmp.ge.s32.totalorder %s3821_s17, 6   ;;  %s4327_s12 = smov %s3766_s13 }
 0x290   : > { %s4328_s13 = smov %s3770_s14  ;;  %s4329_s14 = smov %s3831_s20 }
 0x291   : > { %s4330_s15 = smov %s3821_s17  ;;  %18 = sbr.rel (!%p16_p8) target bundleno = 5 (0x5), region = 85 }
 0x298   :  { %2690 = vsyncpa [#allocation3], 1 }
 0x299   :  { %2692 = vsyncpa [#allocation3 + $0x1], 1 }
 0x29a   :  { %2693 = vsyncpa [#allocation5], 1 }
 0x29b   :  { %2695 = vsyncpa [#allocation5 + $0x1], 1 }

// kernel: net_forward.7
= control target key start
LH: loop header
LB: loop body
LE: loop exit
PB: predicated region body
PF: predicated region fallthrough
CT: control target
= control target key end

     0   :  { %8 = vsyncpa [#allocation3], 0  ;;  %s6566_s0 = inlined_call_operand.vmem [shape: f32[8,1536], index: 0, kind: input, shape index: {}]   ;;  %s6567_s1 = inlined_call_operand.hbm [shape: bf16[1536,1280], index: 1, kind: input, shape index: {}]   ;;  %s6568_s2 = inlined_call_operand.hbm [shape: f32[1,1280], index: 2, kind: input, shape index: {}]   ;;  %s6569_s3 = inlined_call_operand.vmem [shape: f32[8,1280], index: 3, kind: output, shape index: {}]  }
   0x1   :  { %10 = vsyncpa [#allocation3 + $0x1], 0 }
   0x2   :  { %11 = vsyncpa [#allocation5], 0 }
   0x3   :  { %13 = vsyncpa [#allocation5 + $0x1], 0  ;;  %s5794_s12 = smov 0   ;;  %s5796_s13 = smov 0  }
   0x4   :  { %s5798_s14 = smov 0   ;;  %s5800_s15 = smov 0  }
   0x5 LB: > { %s4258_s16 = sadd.s32 4294967295, %s5767_s15   ;;  %s5814_s17 = sadd.s32 1, %s5767_s15   ;;  %s5767_s15 = sphi %s5800_s15, %s6581_s15   ;;  %s5763_s14 = sphi %s5798_s14, %s6580_s14   ;;  %s5759_s13 = sphi %s5796_s13, %s6579_s13   ;;  %s5755_s12 = sphi %s5794_s12, %s6578_s12  }
   0x6   : > { %s44_s18 = ssub.s32 %s5767_s15, %s5814_s17  ;;  %s47_s19 = sadd.s32 1, %s5763_s14 }
   0x7   : > { %p45_p0 = scmp.eq.s32.totalorder %s44_s18, 0  ;;  %p54_p1 = scmp.ne.s32.totalorder %s5763_s14, %s5759_s13 }
   0x8   : > { %p55_p2 = scmp.eq.s32.totalorder %s5767_s15, 0  ;;  %p60_p3 = scmp.ne.s32.totalorder %s5759_s13, %s5755_s12 }
   0x9   : > { %s5824_s20 = scalar_select %p45_p0, %s5763_s14, %s47_s19  }
   0xa   : > { %p56_p4 = por %p55_p2, %p54_p1  ;;  %p61_p5 = scmp.eq.s32.totalorder %s4258_s16, 0 }
   0xb   : > { %p4941_p6 = scmp.lt.s32.totalorder %s5767_s15, 2  ;;  %s5834_s22 = sand.u32 1, %s5763_s14  }
   0xc   : > { %p5829_p7 = por %p61_p5, %p60_p3  ;;  %s4926_s23 = smul.u32 3840, %s5834_s22 }
   0xd   : > { %s4748_s24 = smul.u32 320, %s5767_s15  ;;  %p5838_p8 = pnand %p4941_p6, %p56_p4 }
   0xe   : > { %s6571_s21 = scalar_select %p5829_p7, 1, 0 }
   0xf   : > { %s5845_s28 = scalar_lea.hbm %s6567_s1, %s4748_s24  ;;  %s143_s29 = scalar_lea.vmem [#allocation2], %s4926_s23 }
  0x10   : > { %s150_s30 = sshll.u32 %s143_s29, 4  ;;  %s140_s4 = scalar_lea.sflag [#allocation3], %s5834_s22  ;;  %s5847_s30 = int_to_ptr.vmem [resolvable:$true] %s150_s30 }
  0x11   : > { %s5669_s5 = scalar_lea.hbm %s5845_s28, 61440  ;;  %p5671_p10 = pneg %p5838_p8 }
  0x12   : > { %p5670_p9 = scmp.ne.s32.totalorder %s5845_s28, %s5669_s5  ;;  %s5674_s8 = scalar_lea.hbm %s6567_s1, 122880 }
  0x13   : > { %p5675_p13 = scmp.lt.u32.totalorder %s5845_s28, %s6567_s1  ;;  %p5676_p0 = scmp.lt.u32.totalorder %s5674_s8, %s5669_s5 }
  0x14   : > { %p5672_p11 = pnand %p5671_p10, %p5670_p9  ;;  %p5678_p2 = scmp.lt.u32.totalorder %s5669_s5, %s5845_s28 }
  0x15   : > { %p5677_p1 = por %p5676_p0, %p5675_p13 }
  0x16   : > { %p5673_p12 = pneg %p5672_p11 }
  0x17   : > { %p5679_p3 = por %p5678_p2, %p5677_p1 }
  0x19   : > { %p5680_p4 = pnand %p5679_p3, %p5673_p12 }
  0x1b   : > { %5683 = shalt.err (!%p5680_p4)
}
  0x1c   : > { %s5684_s11 = scalar_lea.vmem %s5847_s30, 61440  ;;  %s5769_s12 = smov [#allocation2]  }
  0x1d   : > { %p5685_p5 = scmp.ne.s32.totalorder %s5847_s30, %s5684_s11  ;;  %s5689_s18 = sshll.u32 %s5769_s12, 4  ;;  %s5690_s18 = int_to_ptr.vmem [resolvable:$false] %s5689_s18 }
  0x1e   : > { %s5691_s19 = scalar_lea.vmem %s5690_s18, 122880  ;;  %p5692_p11 = scmp.lt.s32.totalorder %s5847_s30, %s5690_s18 }
  0x1f   : > { %p5687_p6 = pnand %p5685_p5, %p5671_p10  ;;  %p5693_p13 = scmp.lt.s32.totalorder %s5691_s19, %s5684_s11 }
  0x21   : > { %p5688_p9 = pneg %p5687_p6  ;;  %p5694_p0 = por %p5693_p13, %p5692_p11 }
  0x23   : > { %p5695_p1 = pnand %p5694_p0, %p5688_p9 }
  0x25   : > { %5698 = shalt.err (!%p5695_p1)
}
  0x26   : > { %s5770_s23 = smov 640   ;;  %s5771_s24 = smov 320  }
  0x27   : > { %s5772_s26 = smov 20   ;;  %p4264_p12 = scmp.ge.s32.totalorder %s5767_s15, 1 }
  0x28   : > { %4937 = dma.hbm_to_vmem [thread:$0]  (!%p5838_p8), %s5845_s28, 61440, %s5847_s30, %s140_s4, %s5770_s23, %s5771_s24, %s5772_s26  }
  0x29   : > { %p177_p2 = scmp.lt.s32.totalorder %s5767_s15, 3  ;;  %s4927_s27 = smul.u32 5, %s5834_s22 }
  0x2a   : > { %s4749_s5 = smul.u32 80, %s5767_s15  ;;  %s161_s28 = scalar_lea.sflag [#allocation5], %s5834_s22 }
  0x2b   : > { %p5880_p3 = pnand %p4264_p12, %p177_p2  ;;  %s164_s9 = scalar_lea.vmem [#allocation4], %s4927_s27 }
  0x2c   : > { %s5888_s8 = scalar_lea.hbm %s6568_s2, %s4749_s5  ;;  %s172_s10 = sshll.u32 %s164_s9, 4  ;;  %s173_s10 = int_to_ptr.vmem [resolvable:$true] %s172_s10 }
  0x2d   : > { %s6573_s29 = scalar_select %p5880_p3, 1, 0 }
  0x2e   : > { %s5699_s30 = scalar_lea.hbm %s5888_s8, 80  ;;  %s5704_s12 = scalar_lea.hbm %s6568_s2, 160 }
  0x2f   : > { %p5700_p4 = scmp.ne.s32.totalorder %s5888_s8, %s5699_s30  ;;  %p5705_p9 = scmp.lt.u32.totalorder %s5888_s8, %s6568_s2 }
  0x30   : > { %p5706_p11 = scmp.lt.u32.totalorder %s5704_s12, %s5699_s30  ;;  %p5708_p0 = scmp.lt.u32.totalorder %s5699_s30, %s5888_s8 }
  0x31   : > { %p5702_p5 = pnand %p5700_p4, %p5671_p10 }
  0x32   : > { %p5707_p13 = por %p5706_p11, %p5705_p9 }
  0x33   : > { %p5703_p6 = pneg %p5702_p5 }
  0x34   : > { %p5709_p1 = por %p5708_p0, %p5707_p13 }
  0x36   : > { %p5710_p12 = pnand %p5709_p1, %p5703_p6 }
  0x38   : > { %5713 = shalt.err (!%p5710_p12)
}
  0x39   : > { %s5714_s22 = scalar_lea.vmem %s173_s10, 80  ;;  %s5773_s23 = smov [#allocation4]  }
  0x3a   : > { %p5715_p2 = scmp.ne.s32.totalorder %s173_s10, %s5714_s22  ;;  %s5719_s24 = sshll.u32 %s5773_s23, 4  ;;  %s5720_s24 = int_to_ptr.vmem [resolvable:$false] %s5719_s24 }
  0x3b   : > { %s5721_s26 = scalar_lea.vmem %s5720_s24, 160  ;;  %p5722_p7 = scmp.lt.s32.totalorder %s173_s10, %s5720_s24 }
  0x3c   : > { %p5717_p4 = pnand %p5715_p2, %p5671_p10  ;;  %p5723_p3 = scmp.lt.s32.totalorder %s5721_s26, %s5714_s22 }
  0x3e   : > { %p5718_p5 = pneg %p5717_p4  ;;  %p5724_p9 = por %p5723_p3, %p5722_p7 }
  0x40   : > { %p5725_p11 = pnand %p5724_p9, %p5718_p5 }
  0x42   : > { %5728 = shalt.err (!%p5725_p11)
}
  0x43   : > { %4940 = dma.hbm_to_vmem [thread:$0]  (!%p5838_p8), %s5888_s8, 80, %s173_s10, %s161_s28  }
  0x44   : > { %p6574_p6 = scmp.ne.s32.totalorder %s6573_s29, 0 }
  0x45   : > { %s183_s27 = sand.u32 (!%p6574_p6), 1, %s5759_s13   ;;  %p6575_p10 = scmp.ne.s32.totalorder (!%p6574_p6), %s6571_s21, 0 }
  0x46   : > { %181 = sbr.rel (%p6574_p6) target bundleno = 818 (0x332), region = 32  ;;  %s184_s6 = scalar_lea.sflag (!%p6574_p6), [#allocation3], %s183_s27 }
  0x47   : > { %s4928_s5 = smul.u32 (!%p6574_p6), 3840, %s183_s27 }
  0x49   : > { %s5913_s7 = scalar_lea.vmem (!%p6574_p6), [#allocation2], %s4928_s5 }
  0x4d   : > { %5746 = dma.done.wait (%p6575_p10), %s184_s6, 61440  }
  0x4e   : > { %5748 = vsyncadd (%p6575_p10), %s184_s6, 4294905856  ;;  %s4929_s9 = smul.u32 5, %s183_s27  ;;  %s193_s25 = scalar_lea.sflag [#allocation5], %s183_s27 }
  0x50   : > { %s5919_s30 = scalar_lea.vmem [#allocation4], %s4929_s9 }
  0x51   : > { %5750 = dma.done.wait (%p6575_p10), %s193_s25, 80  }
  0x52   : > { %5752 = vsyncadd (%p6575_p10), %s193_s25, 4294967216  ;;  %v4977_v0 = vld [vmem:[%s5913_s7 + $0x4] ss:$20 sps:$4 sm:$0xff]   ;;  %v4979_v1 = vld [vmem:[%s5913_s7 + $0xc] ss:$20 sps:$4 sm:$0xff]  }
  0x53   : > { %3356 = vmatprep.subr.bf16.mxu0 %v4977_v0  ;;  %v4981_v2 = vld [vmem:[%s5913_s7] ss:$20 sps:$4 sm:$0xff]   ;;  %v4982_v3 = vld [vmem:[%s5913_s7 + $0x8] ss:$20 sps:$4 sm:$0xff]   ;;  %3602 = vmatprep.subr.bf16.mxu1 %v4979_v1  ;;  %v4988_v7 = vld [vmem:[%s5913_s7 + $0x30] ss:$20 sps:$4 sm:$0xff]  }
  0x54   : > { %v4983_v4 = vld [vmem:[%s5913_s7 + $0x2c] ss:$20 sps:$4 sm:$0xff]   ;;  %3357 = vmatpush1.bf16.msra.mxu0 %v4981_v2  ;;  %3603 = vmatpush1.bf16.msra.mxu1 %v4982_v3  ;;  %v4985_v5 = vld [vmem:[%s5913_s7 + $0x34] ss:$20 sps:$4 sm:$0xff]   ;;  %v4991_v9 = vld [vmem:[%s5913_s7 + $0x5c] ss:$20 sps:$4 sm:$0xff]  }
  0x55   : > { %v4987_v6 = vld [vmem:[%s5913_s7 + $0x28] ss:$20 sps:$4 sm:$0xff]   ;;  %3358 = vmatprep.subr.bf16.mxu0 %v4983_v4  ;;  %3604 = vmatprep.subr.bf16.mxu1 %v4985_v5  ;;  %v4993_v10 = vld [vmem:[%s5913_s7 + $0x50] ss:$20 sps:$4 sm:$0xff]   ;;  %v4994_v11 = vld [vmem:[%s5913_s7 + $0x58] ss:$20 sps:$4 sm:$0xff]  }
  0x56   : > { %v4989_v8 = vld [vmem:[%s5913_s7 + $0x54] ss:$20 sps:$4 sm:$0xff]   ;;  %v4995_v12 = vld [vmem:[%s5913_s7 + $0x7c] ss:$20 sps:$4 sm:$0xff]   ;;  %v4997_v13 = vld [vmem:[%s5913_s7 + $0x84] ss:$20 sps:$4 sm:$0xff]  }
  0x57   : > { %v4999_v14 = vld [vmem:[%s5913_s7 + $0x78] ss:$20 sps:$4 sm:$0xff]   ;;  %v5000_v15 = vld [vmem:[%s5913_s7 + $0x80] ss:$20 sps:$4 sm:$0xff]   ;;  %v5006_v19 = vld [vmem:[%s5913_s7 + $0xa8] ss:$20 sps:$4 sm:$0xff]  }
  0x58   : > { %3359 = vmatpush1.bf16.msra.mxu0 %v4987_v6  ;;  %3605 = vmatpush1.bf16.msra.mxu1 %v4988_v7  ;;  %v5001_v16 = vld [vmem:[%s5913_s7 + $0xa4] ss:$20 sps:$4 sm:$0xff]   ;;  %v5003_v17 = vld [vmem:[%s5913_s7 + $0xac] ss:$20 sps:$4 sm:$0xff]   ;;  %v5009_v21 = vld [vmem:[%s5913_s7 + $0xd4] ss:$20 sps:$4 sm:$0xff]  }
  0x59   : > { %3360 = vmatprep.subr.bf16.mxu0 %v4989_v8  ;;  %3606 = vmatprep.subr.bf16.mxu1 %v4991_v9  ;;  %v5005_v18 = vld [vmem:[%s5913_s7 + $0xa0] ss:$20 sps:$4 sm:$0xff]   ;;  %v5011_v22 = vld [vmem:[%s5913_s7 + $0xc8] ss:$20 sps:$4 sm:$0xff]   ;;  %v5012_v23 = vld [vmem:[%s5913_s7 + $0xd0] ss:$20 sps:$4 sm:$0xff]  }
  0x5a   : > { %v5007_v20 = vld [vmem:[%s5913_s7 + $0xcc] ss:$20 sps:$4 sm:$0xff]   ;;  %v5013_v24 = vld [vmem:[%s5913_s7 + $0xf4] ss:$20 sps:$4 sm:$0xff]   ;;  %v5015_v25 = vld [vmem:[%s5913_s7 + $0xfc] ss:$20 sps:$4 sm:$0xff]  }
  0x5b   : > { %v5017_v26 = vld [vmem:[%s5913_s7 + $0xf0] ss:$20 sps:$4 sm:$0xff]   ;;  %v5018_v27 = vld [vmem:[%s5913_s7 + $0xf8] ss:$20 sps:$4 sm:$0xff]   ;;  %v5024_v31 = vld [vmem:[%s5913_s7 + $0x120] ss:$20 sps:$4 sm:$0xff]  }
  0x5c   : > { %3361 = vmatpush1.bf16.msra.mxu0 %v4993_v10  ;;  %3607 = vmatpush1.bf16.msra.mxu1 %v4994_v11  ;;  %v5019_v28 = vld [vmem:[%s5913_s7 + $0x11c] ss:$20 sps:$4 sm:$0xff]   ;;  %v5021_v29 = vld [vmem:[%s5913_s7 + $0x124] ss:$20 sps:$4 sm:$0xff]   ;;  %v5027_v33 = vld [vmem:[%s5913_s7 + $0x14c] ss:$20 sps:$4 sm:$0xff]  }
  0x5d   : > { %3362 = vmatprep.subr.bf16.mxu0 %v4995_v12  ;;  %3608 = vmatprep.subr.bf16.mxu1 %v4997_v13  ;;  %v5023_v30 = vld [vmem:[%s5913_s7 + $0x118] ss:$20 sps:$4 sm:$0xff]   ;;  %v5029_v34 = vld [vmem:[%s5913_s7 + $0x140] ss:$20 sps:$4 sm:$0xff]   ;;  %v5030_v35 = vld [vmem:[%s5913_s7 + $0x148] ss:$20 sps:$4 sm:$0xff]  }
  0x5e   : > { %v5025_v32 = vld [vmem:[%s5913_s7 + $0x144] ss:$20 sps:$4 sm:$0xff]   ;;  %v5031_v36 = vld [vmem:[%s5913_s7 + $0x16c] ss:$20 sps:$4 sm:$0xff]   ;;  %v5033_v37 = vld [vmem:[%s5913_s7 + $0x174] ss:$20 sps:$4 sm:$0xff]  }
  0x5f   : > { %v5035_v38 = vld [vmem:[%s5913_s7 + $0x168] ss:$20 sps:$4 sm:$0xff]   ;;  %v5036_v39 = vld [vmem:[%s5913_s7 + $0x170] ss:$20 sps:$4 sm:$0xff]   ;;  %v5042_v43 = vld [vmem:[%s5913_s7 + $0x198] ss:$20 sps:$4 sm:$0xff]  }
  0x60   : > { %3363 = vmatpush1.bf16.msra.mxu0 %v4999_v14  ;;  %3609 = vmatpush1.bf16.msra.mxu1 %v5000_v15  ;;  %v5037_v40 = vld [vmem:[%s5913_s7 + $0x194] ss:$20 sps:$4 sm:$0xff]   ;;  %v5039_v41 = vld [vmem:[%s5913_s7 + $0x19c] ss:$20 sps:$4 sm:$0xff]   ;;  %v5045_v45 = vld [vmem:[%s5913_s7 + $0x1c4] ss:$20 sps:$4 sm:$0xff]  }
  0x61   : > { %3364 = vmatprep.subr.bf16.mxu0 %v5001_v16  ;;  %3610 = vmatprep.subr.bf16.mxu1 %v5003_v17  ;;  %v5041_v42 = vld [vmem:[%s5913_s7 + $0x190] ss:$20 sps:$4 sm:$0xff]   ;;  %v234_v46 = vld [vmem:[%s6566_s0 + $0x8] sm:$0xff]  ;;  %v5048_v49 = vld [vmem:[%s5913_s7 + $0x1c0] ss:$20 sps:$4 sm:$0xff]  }
  0x62   : > { %v5043_v44 = vld [vmem:[%s5913_s7 + $0x1bc] ss:$20 sps:$4 sm:$0xff]   ;;  %v5047_v47 = vld [vmem:[%s5913_s7 + $0x1b8] ss:$20 sps:$4 sm:$0xff]   ;;  %v5975_v48 = vpack.c.bf16 %v234_v46, %v234_v46  ;;  %v5053_v52 = vld [vmem:[%s5913_s7 + $0x1e0] ss:$20 sps:$4 sm:$0xff]  }
  0x63   : > { %v5049_v50 = vld [vmem:[%s5913_s7 + $0x1e4] ss:$20 sps:$4 sm:$0xff]   ;;  %v5051_v51 = vld [vmem:[%s5913_s7 + $0x1ec] ss:$20 sps:$4 sm:$0xff]   ;;  %v5054_v53 = vld [vmem:[%s5913_s7 + $0x1e8] ss:$20 sps:$4 sm:$0xff]  }
  0x64   : > { %3365 = vmatpush1.bf16.msra.mxu0 %v5005_v18  ;;  %3611 = vmatpush1.bf16.msra.mxu1 %v5006_v19  ;;  %v5055_v54 = vld [vmem:[%s5913_s7 + $0x20c] ss:$20 sps:$4 sm:$0xff]   ;;  %v5057_v55 = vld [vmem:[%s5913_s7 + $0x214] ss:$20 sps:$4 sm:$0xff]   ;;  %v5060_v57 = vld [vmem:[%s5913_s7 + $0x210] ss:$20 sps:$4 sm:$0xff]  }
  0x65   : > { %3366 = vmatprep.subr.bf16.mxu0 %v5007_v20  ;;  %3612 = vmatprep.subr.bf16.mxu1 %v5009_v21  ;;  %v5059_v56 = vld [vmem:[%s5913_s7 + $0x208] ss:$20 sps:$4 sm:$0xff]   ;;  %v5065_v60 = vld [vmem:[%s5913_s7 + $0x230] ss:$20 sps:$4 sm:$0xff]   ;;  %v5066_v61 = vld [vmem:[%s5913_s7 + $0x238] ss:$20 sps:$4 sm:$0xff]  }
  0x66   : > { %3388 = vmatprep.mubr.bf16.mxu0 %v5975_v48  ;;  %3634 = vmatprep.mubr.bf16.mxu1 %v5975_v48  ;;  %v5061_v58 = vld [vmem:[%s5913_s7 + $0x234] ss:$20 sps:$4 sm:$0xff]   ;;  %v5063_v59 = vld [vmem:[%s5913_s7 + $0x23c] ss:$20 sps:$4 sm:$0xff]   ;;  %v5069_v63 = vld [vmem:[%s5913_s7 + $0x264] ss:$20 sps:$4 sm:$0xff]  }
  0x67   : > { %v5067_v62 = vld [vmem:[%s5913_s7 + $0x25c] ss:$20 sps:$4 sm:$0xff]   ;;  %v5071_v0 = vld [vmem:[%s5913_s7 + $0x258] ss:$20 sps:$4 sm:$0xff]   ;;  %v5072_v1 = vld [vmem:[%s5913_s7 + $0x260] ss:$20 sps:$4 sm:$0xff]  }
  0x68   : > { %3367 = vmatpush1.bf16.msra.mxu0 %v5011_v22  ;;  %3613 = vmatpush1.bf16.msra.mxu1 %v5012_v23  ;;  %v233_v2 = vld [vmem:[%s6566_s0] sm:$0xff]  ;;  %v5076_v7 = vld [vmem:[%s5913_s7 + $0x288] ss:$20 sps:$4 sm:$0xff]   ;;  %v5088_v15 = vld [vmem:[%s5913_s7 + $0x2d8] ss:$20 sps:$4 sm:$0xff]  }
  0x69   : > { %3368 = vmatprep.subr.bf16.mxu0 %v5013_v24  ;;  %3614 = vmatprep.subr.bf16.mxu1 %v5015_v25  ;;  %v5075_v3 = vld [vmem:[%s5913_s7 + $0x284] ss:$20 sps:$4 sm:$0xff]   ;;  %v5078_v4 = vld [vmem:[%s5913_s7 + $0x28c] ss:$20 sps:$4 sm:$0xff]   ;;  %v6001_v5 = vpack.c.bf16 %v233_v2, %v233_v2  ;;  %v5084_v9 = vld [vmem:[%s5913_s7 + $0x2b4] ss:$20 sps:$4 sm:$0xff]  }
  0x6a   : > { %v5073_v6 = vld [vmem:[%s5913_s7 + $0x280] ss:$20 sps:$4 sm:$0xff]   ;;  %v5079_v10 = vld [vmem:[%s5913_s7 + $0x2a8] ss:$20 sps:$4 sm:$0xff]   ;;  %v5082_v11 = vld [vmem:[%s5913_s7 + $0x2b0] ss:$20 sps:$4 sm:$0xff]  }
  0x6b   : > { %v5081_v8 = vld [vmem:[%s5913_s7 + $0x2ac] ss:$20 sps:$4 sm:$0xff]   ;;  %v5087_v12 = vld [vmem:[%s5913_s7 + $0x2d4] ss:$20 sps:$4 sm:$0xff]   ;;  %v5090_v13 = vld [vmem:[%s5913_s7 + $0x2dc] ss:$20 sps:$4 sm:$0xff]  }
  0x6c   : > { %3369 = vmatpush1.bf16.msra.mxu0 %v5017_v26  ;;  %3615 = vmatpush1.bf16.msra.mxu1 %v5018_v27  ;;  %v5085_v14 = vld [vmem:[%s5913_s7 + $0x2d0] ss:$20 sps:$4 sm:$0xff]   ;;  %v5091_v18 = vld [vmem:[%s5913_s7 + $0x2f8] ss:$20 sps:$4 sm:$0xff]   ;;  %v5094_v19 = vld [vmem:[%s5913_s7 + $0x300] ss:$20 sps:$4 sm:$0xff]  }
  0x6d   : > { %3370 = vmatprep.subr.bf16.mxu0 %v5019_v28  ;;  %3616 = vmatprep.subr.bf16.mxu1 %v5021_v29  ;;  %v5093_v16 = vld [vmem:[%s5913_s7 + $0x2fc] ss:$20 sps:$4 sm:$0xff]   ;;  %v5096_v17 = vld [vmem:[%s5913_s7 + $0x304] ss:$20 sps:$4 sm:$0xff]   ;;  %v5102_v21 = vld [vmem:[%s5913_s7 + $0x32c] ss:$20 sps:$4 sm:$0xff]  }
  0x6e   : > { %v5099_v20 = vld [vmem:[%s5913_s7 + $0x324] ss:$20 sps:$4 sm:$0xff]   ;;  %v5097_v22 = vld [vmem:[%s5913_s7 + $0x320] ss:$20 sps:$4 sm:$0xff]   ;;  %v5100_v23 = vld [vmem:[%s5913_s7 + $0x328] ss:$20 sps:$4 sm:$0xff]  }
  0x6f   : > { %v5105_v24 = vld [vmem:[%s5913_s7 + $0x34c] ss:$20 sps:$4 sm:$0xff]   ;;  %v5108_v25 = vld [vmem:[%s5913_s7 + $0x354] ss:$20 sps:$4 sm:$0xff]   ;;  %v5106_v27 = vld [vmem:[%s5913_s7 + $0x350] ss:$20 sps:$4 sm:$0xff]  }
  0x70   : > { %3371 = vmatpush1.bf16.msra.mxu0 %v5023_v30  ;;  %3617 = vmatpush1.bf16.msra.mxu1 %v5024_v31  ;;  %v5103_v26 = vld [vmem:[%s5913_s7 + $0x348] ss:$20 sps:$4 sm:$0xff]   ;;  %v5109_v31 = vld [vmem:[%s5913_s7 + $0x370] ss:$20 sps:$4 sm:$0xff]   ;;  %v5160_v2 = vld [vmem:[%s5913_s7 + $0x4b8] ss:$20 sps:$4 sm:$0xff]  }
  0x71   : > { %3372 = vmatprep.subr.bf16.mxu0 %v5025_v32  ;;  %3618 = vmatprep.subr.bf16.mxu1 %v5027_v33  ;;  %v5111_v28 = vld [vmem:[%s5913_s7 + $0x374] ss:$20 sps:$4 sm:$0xff]   ;;  %v5114_v29 = vld [vmem:[%s5913_s7 + $0x37c] ss:$20 sps:$4 sm:$0xff]   ;;  %v5112_v33 = vld [vmem:[%s5913_s7 + $0x378] ss:$20 sps:$4 sm:$0xff]  }
  0x72   : > { %v236_v30 = vld [vmem:[%s6566_s0 + $0x18] sm:$0xff]  ;;  %v5135_v46 = vld [vmem:[%s5913_s7 + $0x414] ss:$20 sps:$4 sm:$0xff]  }
  0x73   : > { %v6033_v32 = vpack.c.bf16 %v236_v30, %v236_v30  ;;  %v5193_v30 = vld [vmem:[%s5913_s7 + $0x5a0] ss:$20 sps:$4 sm:$0xff]  }
  0x74   : > { %3373 = vmatpush1.bf16.msra.mxu0 %v5029_v34  ;;  %3619 = vmatpush1.bf16.msra.mxu1 %v5030_v35  ;;  %v5117_v34 = vld [vmem:[%s5913_s7 + $0x39c] ss:$20 sps:$4 sm:$0xff]   ;;  %v5120_v35 = vld [vmem:[%s5913_s7 + $0x3a4] ss:$20 sps:$4 sm:$0xff]  }
  0x75   : > { %3374 = vmatprep.subr.bf16.mxu0 %v5031_v36  ;;  %3620 = vmatprep.subr.bf16.mxu1 %v5033_v37  ;;  %v5115_v36 = vld [vmem:[%s5913_s7 + $0x398] ss:$20 sps:$4 sm:$0xff]   ;;  %v5118_v37 = vld [vmem:[%s5913_s7 + $0x3a0] ss:$20 sps:$4 sm:$0xff]  }
  0x78   : > { %3375 = vmatpush1.bf16.msra.mxu0 %v5035_v38  ;;  %3621 = vmatpush1.bf16.msra.mxu1 %v5036_v39  ;;  %v5123_v38 = vld [vmem:[%s5913_s7 + $0x3c4] ss:$20 sps:$4 sm:$0xff]   ;;  %v5126_v39 = vld [vmem:[%s5913_s7 + $0x3cc] ss:$20 sps:$4 sm:$0xff]  }
  0x79   : > { %3376 = vmatprep.subr.bf16.mxu0 %v5037_v40  ;;  %3622 = vmatprep.subr.bf16.mxu1 %v5039_v41  ;;  %v5121_v40 = vld [vmem:[%s5913_s7 + $0x3c0] ss:$20 sps:$4 sm:$0xff]   ;;  %v5124_v41 = vld [vmem:[%s5913_s7 + $0x3c8] ss:$20 sps:$4 sm:$0xff]  }
  0x7c   : > { %3377 = vmatpush1.bf16.msra.mxu0 %v5041_v42  ;;  %3623 = vmatpush1.bf16.msra.mxu1 %v5042_v43  ;;  %v5129_v42 = vld [vmem:[%s5913_s7 + $0x3ec] ss:$20 sps:$4 sm:$0xff]   ;;  %v5132_v43 = vld [vmem:[%s5913_s7 + $0x3f4] ss:$20 sps:$4 sm:$0xff]  }
  0x7d   : > { %3378 = vmatprep.subr.bf16.mxu0 %v5043_v44  ;;  %3624 = vmatprep.subr.bf16.mxu1 %v5045_v45  ;;  %v5127_v44 = vld [vmem:[%s5913_s7 + $0x3e8] ss:$20 sps:$4 sm:$0xff]   ;;  %v5130_v45 = vld [vmem:[%s5913_s7 + $0x3f0] ss:$20 sps:$4 sm:$0xff]  }
  0x80   : > { %3379 = vmatpush1.bf16.msra.mxu0 %v5047_v47  ;;  %3625 = vmatpush1.bf16.msra.mxu1 %v5048_v49  ;;  %v5138_v47 = vld [vmem:[%s5913_s7 + $0x41c] ss:$20 sps:$4 sm:$0xff]  }
  0x81   : > { %3380 = vmatprep.subr.bf16.mxu0 %v5049_v50  ;;  %3626 = vmatprep.subr.bf16.mxu1 %v5051_v51  ;;  %v5133_v49 = vld [vmem:[%s5913_s7 + $0x410] ss:$20 sps:$4 sm:$0xff]   ;;  %v5136_v50 = vld [vmem:[%s5913_s7 + $0x418] ss:$20 sps:$4 sm:$0xff]  }
  0x82   : > { %v5141_v51 = vld [vmem:[%s5913_s7 + $0x43c] ss:$20 sps:$4 sm:$0xff]  }
  0x84   : > { %3381 = vmatpush1.bf16.msra.mxu0 %v5053_v52  ;;  %3627 = vmatpush1.bf16.msra.mxu1 %v5054_v53  ;;  %v5144_v52 = vld [vmem:[%s5913_s7 + $0x444] ss:$20 sps:$4 sm:$0xff]  }
  0x85   : > { %3382 = vmatprep.subr.bf16.mxu0 %v5055_v54  ;;  %3628 = vmatprep.subr.bf16.mxu1 %v5057_v55  ;;  %v5139_v53 = vld [vmem:[%s5913_s7 + $0x438] ss:$20 sps:$4 sm:$0xff]   ;;  %v5142_v54 = vld [vmem:[%s5913_s7 + $0x440] ss:$20 sps:$4 sm:$0xff]  }
  0x86   : > { %v5147_v55 = vld [vmem:[%s5913_s7 + $0x464] ss:$20 sps:$4 sm:$0xff]  }
  0x88   : > { %3383 = vmatpush1.bf16.msra.mxu0 %v5059_v56  ;;  %3629 = vmatpush1.bf16.msra.mxu1 %v5060_v57  ;;  %v5150_v56 = vld [vmem:[%s5913_s7 + $0x46c] ss:$20 sps:$4 sm:$0xff]  }
  0x89   : > { %3384 = vmatprep.subr.bf16.mxu0 %v5061_v58  ;;  %3630 = vmatprep.subr.bf16.mxu1 %v5063_v59  ;;  %v5145_v57 = vld [vmem:[%s5913_s7 + $0x460] ss:$20 sps:$4 sm:$0xff]   ;;  %v5148_v58 = vld [vmem:[%s5913_s7 + $0x468] ss:$20 sps:$4 sm:$0xff]  }
  0x8a   : > { %v5153_v59 = vld [vmem:[%s5913_s7 + $0x48c] ss:$20 sps:$4 sm:$0xff]  }
  0x8c   : > { %3385 = vmatpush1.bf16.msra.mxu0 %v5065_v60  ;;  %3631 = vmatpush1.bf16.msra.mxu1 %v5066_v61  ;;  %v5156_v60 = vld [vmem:[%s5913_s7 + $0x494] ss:$20 sps:$4 sm:$0xff]  }
  0x8d   : > { %3386 = vmatprep.subr.bf16.mxu0 %v5067_v62  ;;  %3632 = vmatprep.subr.bf16.mxu1 %v5069_v63  ;;  %v5151_v61 = vld [vmem:[%s5913_s7 + $0x488] ss:$20 sps:$4 sm:$0xff]   ;;  %v5154_v62 = vld [vmem:[%s5913_s7 + $0x490] ss:$20 sps:$4 sm:$0xff]  }
  0x8e   : > { %v5159_v63 = vld [vmem:[%s5913_s7 + $0x4b4] ss:$20 sps:$4 sm:$0xff]  }
  0x90   : > { %3387 = vmatpush1.bf16.msra.mxu0 %v5071_v0  ;;  %3633 = vmatpush1.bf16.msra.mxu1 %v5072_v1  ;;  %v5162_v0 = vld [vmem:[%s5913_s7 + $0x4bc] ss:$20 sps:$4 sm:$0xff]  }
  0x91   : > { %3397 = vmatprep.subr.bf16.mxu0 %v5075_v3  ;;  %3643 = vmatprep.subr.bf16.mxu1 %v5078_v4  ;;  %v5157_v1 = vld [vmem:[%s5913_s7 + $0x4b0] ss:$20 sps:$4 sm:$0xff]  }
  0x92   : > { %v5165_v3 = vld [vmem:[%s5913_s7 + $0x4dc] ss:$20 sps:$4 sm:$0xff]   ;;  %v5168_v4 = vld [vmem:[%s5913_s7 + $0x4e4] ss:$20 sps:$4 sm:$0xff]  }
  0x93   : > { %3389 = vmatmul.mubr.bf16.vlgmr.msra.gmra.mrb[0].mxu0 %v6001_v5  ;;  %3635 = vmatmul.mubr.bf16.vlgmr.msra.gmra.mrb[0].mxu1 %v6001_v5 }
  0x94   : > { %3398 = vmatpush1.bf16.msra.mxu0 %v5073_v6  ;;  %3644 = vmatpush1.bf16.msra.mxu1 %v5076_v7  ;;  %v5163_v6 = vld [vmem:[%s5913_s7 + $0x4d8] ss:$20 sps:$4 sm:$0xff]   ;;  %v5166_v7 = vld [vmem:[%s5913_s7 + $0x4e0] ss:$20 sps:$4 sm:$0xff]  }
  0x95   : > { %3399 = vmatprep.subr.bf16.mxu0 %v5081_v8  ;;  %3645 = vmatprep.subr.bf16.mxu1 %v5084_v9  ;;  %v5171_v8 = vld [vmem:[%s5913_s7 + $0x504] ss:$20 sps:$4 sm:$0xff]   ;;  %v235_v9 = vld [vmem:[%s6566_s0 + $0x10] sm:$0xff] }
  0x96   : > { %3429 = vmatprep.mubr.bf16.mxu0 %v6033_v32  ;;  %3675 = vmatprep.mubr.bf16.mxu1 %v6033_v32 }
  0x98   : > { %3400 = vmatpush1.bf16.msra.mxu0 %v5079_v10  ;;  %3646 = vmatpush1.bf16.msra.mxu1 %v5082_v11  ;;  %v5174_v10 = vld [vmem:[%s5913_s7 + $0x50c] ss:$20 sps:$4 sm:$0xff]  }
  0x99   : > { %3401 = vmatprep.subr.bf16.mxu0 %v5087_v12  ;;  %3647 = vmatprep.subr.bf16.mxu1 %v5090_v13  ;;  %v5169_v11 = vld [vmem:[%s5913_s7 + $0x500] ss:$20 sps:$4 sm:$0xff]   ;;  %v5172_v12 = vld [vmem:[%s5913_s7 + $0x508] ss:$20 sps:$4 sm:$0xff]   ;;  %v6081_v13 = vpack.c.bf16 %v235_v9, %v235_v9  ;;  %v5253_v9 = vld [vmem:[%s5913_s7 + $0x730] ss:$20 sps:$4 sm:$0xff]  }
  0x9c   : > { %3402 = vmatpush1.bf16.msra.mxu0 %v5085_v14  ;;  %3648 = vmatpush1.bf16.msra.mxu1 %v5088_v15  ;;  %v5177_v14 = vld [vmem:[%s5913_s7 + $0x52c] ss:$20 sps:$4 sm:$0xff]   ;;  %v5180_v15 = vld [vmem:[%s5913_s7 + $0x534] ss:$20 sps:$4 sm:$0xff]  }
  0x9d   : > { %3403 = vmatprep.subr.bf16.mxu0 %v5093_v16  ;;  %3649 = vmatprep.subr.bf16.mxu1 %v5096_v17  ;;  %v238_v16 = vld [vmem:[%s6566_s0 + $0x28] sm:$0xff] }
  0x9e   : > { %v6088_v17 = vpack.c.bf16 %v238_v16, %v238_v16  ;;  %v5267_v16 = vld [vmem:[%s5913_s7 + $0x784] ss:$20 sps:$4 sm:$0xff]  }
  0xa0   : > { %3404 = vmatpush1.bf16.msra.mxu0 %v5091_v18  ;;  %3650 = vmatpush1.bf16.msra.mxu1 %v5094_v19  ;;  %v5175_v18 = vld [vmem:[%s5913_s7 + $0x528] ss:$20 sps:$4 sm:$0xff]   ;;  %v5178_v19 = vld [vmem:[%s5913_s7 + $0x530] ss:$20 sps:$4 sm:$0xff]  }
  0xa1   : > { %3405 = vmatprep.subr.bf16.mxu0 %v5099_v20  ;;  %3651 = vmatprep.subr.bf16.mxu1 %v5102_v21  ;;  %v5183_v20 = vld [vmem:[%s5913_s7 + $0x554] ss:$20 sps:$4 sm:$0xff]   ;;  %v5186_v21 = vld [vmem:[%s5913_s7 + $0x55c] ss:$20 sps:$4 sm:$0xff]  }
  0xa4   : > { %3406 = vmatpush1.bf16.msra.mxu0 %v5097_v22  ;;  %3652 = vmatpush1.bf16.msra.mxu1 %v5100_v23  ;;  %v5181_v22 = vld [vmem:[%s5913_s7 + $0x550] ss:$20 sps:$4 sm:$0xff]   ;;  %v5184_v23 = vld [vmem:[%s5913_s7 + $0x558] ss:$20 sps:$4 sm:$0xff]  }
  0xa5   : > { %3407 = vmatprep.subr.bf16.mxu0 %v5105_v24  ;;  %3653 = vmatprep.subr.bf16.mxu1 %v5108_v25  ;;  %v5189_v24 = vld [vmem:[%s5913_s7 + $0x57c] ss:$20 sps:$4 sm:$0xff]   ;;  %v5192_v25 = vld [vmem:[%s5913_s7 + $0x584] ss:$20 sps:$4 sm:$0xff]  }
  0xa8   : > { %3408 = vmatpush1.bf16.msra.mxu0 %v5103_v26  ;;  %3654 = vmatpush1.bf16.msra.mxu1 %v5106_v27  ;;  %v5187_v26 = vld [vmem:[%s5913_s7 + $0x578] ss:$20 sps:$4 sm:$0xff]   ;;  %v5190_v27 = vld [vmem:[%s5913_s7 + $0x580] ss:$20 sps:$4 sm:$0xff]  }
  0xa9   : > { %3409 = vmatprep.subr.bf16.mxu0 %v5111_v28  ;;  %3655 = vmatprep.subr.bf16.mxu1 %v5114_v29  ;;  %v5195_v28 = vld [vmem:[%s5913_s7 + $0x5a4] ss:$20 sps:$4 sm:$0xff]   ;;  %v5198_v29 = vld [vmem:[%s5913_s7 + $0x5ac] ss:$20 sps:$4 sm:$0xff]  }
  0xac   : > { %3410 = vmatpush1.bf16.msra.mxu0 %v5109_v31  ;;  %3656 = vmatpush1.bf16.msra.mxu1 %v5112_v33  ;;  %v5196_v31 = vld [vmem:[%s5913_s7 + $0x5a8] ss:$20 sps:$4 sm:$0xff]   ;;  %v5201_v33 = vld [vmem:[%s5913_s7 + $0x5cc] ss:$20 sps:$4 sm:$0xff]  }
  0xad   : > { %3411 = vmatprep.subr.bf16.mxu0 %v5117_v34  ;;  %3657 = vmatprep.subr.bf16.mxu1 %v5120_v35  ;;  %v5204_v34 = vld [vmem:[%s5913_s7 + $0x5d4] ss:$20 sps:$4 sm:$0xff]  }
  0xae   : > { %v5199_v35 = vld [vmem:[%s5913_s7 + $0x5c8] ss:$20 sps:$4 sm:$0xff]  }
  0xb0   : > { %3412 = vmatpush1.bf16.msra.mxu0 %v5115_v36  ;;  %3658 = vmatpush1.bf16.msra.mxu1 %v5118_v37  ;;  %v5202_v36 = vld [vmem:[%s5913_s7 + $0x5d0] ss:$20 sps:$4 sm:$0xff]   ;;  %v5207_v37 = vld [vmem:[%s5913_s7 + $0x5f4] ss:$20 sps:$4 sm:$0xff]  }
  0xb1   : > { %3413 = vmatprep.subr.bf16.mxu0 %v5123_v38  ;;  %3659 = vmatprep.subr.bf16.mxu1 %v5126_v39  ;;  %v5210_v38 = vld [vmem:[%s5913_s7 + $0x5fc] ss:$20 sps:$4 sm:$0xff]  }
  0xb2   : > { %v5205_v39 = vld [vmem:[%s5913_s7 + $0x5f0] ss:$20 sps:$4 sm:$0xff]  }
  0xb4   : > { %3414 = vmatpush1.bf16.msra.mxu0 %v5121_v40  ;;  %3660 = vmatpush1.bf16.msra.mxu1 %v5124_v41  ;;  %v5208_v40 = vld [vmem:[%s5913_s7 + $0x5f8] ss:$20 sps:$4 sm:$0xff]   ;;  %v5213_v41 = vld [vmem:[%s5913_s7 + $0x61c] ss:$20 sps:$4 sm:$0xff]  }
  0xb5   : > { %3415 = vmatprep.subr.bf16.mxu0 %v5129_v42  ;;  %3661 = vmatprep.subr.bf16.mxu1 %v5132_v43  ;;  %v5216_v42 = vld [vmem:[%s5913_s7 + $0x624] ss:$20 sps:$4 sm:$0xff]  }
  0xb6   : > { %v5211_v43 = vld [vmem:[%s5913_s7 + $0x618] ss:$20 sps:$4 sm:$0xff]  }
  0xb8   : > { %3416 = vmatpush1.bf16.msra.mxu0 %v5127_v44  ;;  %3662 = vmatpush1.bf16.msra.mxu1 %v5130_v45  ;;  %v5214_v44 = vld [vmem:[%s5913_s7 + $0x620] ss:$20 sps:$4 sm:$0xff]   ;;  %v5219_v45 = vld [vmem:[%s5913_s7 + $0x644] ss:$20 sps:$4 sm:$0xff]  }
  0xb9   : > { %3417 = vmatprep.subr.bf16.mxu0 %v5135_v46  ;;  %3663 = vmatprep.subr.bf16.mxu1 %v5138_v47  ;;  %v5222_v46 = vld [vmem:[%s5913_s7 + $0x64c] ss:$20 sps:$4 sm:$0xff]  }
  0xba   : > { %v5217_v47 = vld [vmem:[%s5913_s7 + $0x640] ss:$20 sps:$4 sm:$0xff]  }
  0xbc   : > { %3418 = vmatpush1.bf16.msra.mxu0 %v5133_v49  ;;  %3664 = vmatpush1.bf16.msra.mxu1 %v5136_v50  ;;  %v5220_v49 = vld [vmem:[%s5913_s7 + $0x648] ss:$20 sps:$4 sm:$0xff]   ;;  %v5225_v50 = vld [vmem:[%s5913_s7 + $0x66c] ss:$20 sps:$4 sm:$0xff]  }
  0xbd   : > { %3419 = vmatprep.subr.bf16.mxu0 %v5141_v51  ;;  %3665 = vmatprep.subr.bf16.mxu1 %v5144_v52  ;;  %v5228_v51 = vld [vmem:[%s5913_s7 + $0x674] ss:$20 sps:$4 sm:$0xff]  }
  0xbe   : > { %v5223_v52 = vld [vmem:[%s5913_s7 + $0x668] ss:$20 sps:$4 sm:$0xff]  }
  0xc0   : > { %3420 = vmatpush1.bf16.msra.mxu0 %v5139_v53  ;;  %3666 = vmatpush1.bf16.msra.mxu1 %v5142_v54  ;;  %v5226_v53 = vld [vmem:[%s5913_s7 + $0x670] ss:$20 sps:$4 sm:$0xff]   ;;  %v5231_v54 = vld [vmem:[%s5913_s7 + $0x694] ss:$20 sps:$4 sm:$0xff]  }
  0xc1   : > { %3421 = vmatprep.subr.bf16.mxu0 %v5147_v55  ;;  %3667 = vmatprep.subr.bf16.mxu1 %v5150_v56  ;;  %v5234_v55 = vld [vmem:[%s5913_s7 + $0x69c] ss:$20 sps:$4 sm:$0xff]  }
  0xc2   : > { %v5229_v56 = vld [vmem:[%s5913_s7 + $0x690] ss:$20 sps:$4 sm:$0xff]  }
  0xc4   : > { %3422 = vmatpush1.bf16.msra.mxu0 %v5145_v57  ;;  %3668 = vmatpush1.bf16.msra.mxu1 %v5148_v58  ;;  %v5232_v57 = vld [vmem:[%s5913_s7 + $0x698] ss:$20 sps:$4 sm:$0xff]   ;;  %v5237_v58 = vld [vmem:[%s5913_s7 + $0x6bc] ss:$20 sps:$4 sm:$0xff]  }
  0xc5   : > { %3423 = vmatprep.subr.bf16.mxu0 %v5153_v59  ;;  %3669 = vmatprep.subr.bf16.mxu1 %v5156_v60  ;;  %v5240_v59 = vld [vmem:[%s5913_s7 + $0x6c4] ss:$20 sps:$4 sm:$0xff]  }
  0xc6   : > { %v5235_v60 = vld [vmem:[%s5913_s7 + $0x6b8] ss:$20 sps:$4 sm:$0xff]  }
  0xc8   : > { %3424 = vmatpush1.bf16.msra.mxu0 %v5151_v61  ;;  %3670 = vmatpush1.bf16.msra.mxu1 %v5154_v62  ;;  %v5238_v61 = vld [vmem:[%s5913_s7 + $0x6c0] ss:$20 sps:$4 sm:$0xff]   ;;  %v5243_v62 = vld [vmem:[%s5913_s7 + $0x6e4] ss:$20 sps:$4 sm:$0xff]  }
  0xc9   : > { %3425 = vmatprep.subr.bf16.mxu0 %v5159_v63  ;;  %3671 = vmatprep.subr.bf16.mxu1 %v5162_v0  ;;  %v5246_v63 = vld [vmem:[%s5913_s7 + $0x6ec] ss:$20 sps:$4 sm:$0xff]  }
  0xca   : > { %v5241_v0 = vld [vmem:[%s5913_s7 + $0x6e0] ss:$20 sps:$4 sm:$0xff]  }
  0xcc   : > { %3426 = vmatpush1.bf16.msra.mxu0 %v5157_v1  ;;  %3672 = vmatpush1.bf16.msra.mxu1 %v5160_v2  ;;  %v5244_v1 = vld [vmem:[%s5913_s7 + $0x6e8] ss:$20 sps:$4 sm:$0xff]   ;;  %v5249_v2 = vld [vmem:[%s5913_s7 + $0x70c] ss:$20 sps:$4 sm:$0xff]  }
  0xcd   : > { %3427 = vmatprep.subr.bf16.mxu0 %v5165_v3  ;;  %3673 = vmatprep.subr.bf16.mxu1 %v5168_v4  ;;  %v5252_v3 = vld [vmem:[%s5913_s7 + $0x714] ss:$20 sps:$4 sm:$0xff]  }
  0xce   : > { %v5247_v4 = vld [vmem:[%s5913_s7 + $0x708] ss:$20 sps:$4 sm:$0xff]  }
  0xd0   : > { %3428 = vmatpush1.bf16.msra.mxu0 %v5163_v6  ;;  %3674 = vmatpush1.bf16.msra.mxu1 %v5166_v7  ;;  %v5250_v6 = vld [vmem:[%s5913_s7 + $0x710] ss:$20 sps:$4 sm:$0xff]   ;;  %v5255_v7 = vld [vmem:[%s5913_s7 + $0x734] ss:$20 sps:$4 sm:$0xff]  }
  0xd1   : > { %3438 = vmatprep.subr.bf16.mxu0 %v5171_v8  ;;  %3684 = vmatprep.subr.bf16.mxu1 %v5174_v10  ;;  %v5258_v8 = vld [vmem:[%s5913_s7 + $0x73c] ss:$20 sps:$4 sm:$0xff]   ;;  %v5256_v10 = vld [vmem:[%s5913_s7 + $0x738] ss:$20 sps:$4 sm:$0xff]  }
  0xd3   : > { %3430 = vmatmul.mubr.bf16.vlgmr.msra.gmra.mrb[0].mxu0 %v6081_v13  ;;  %3676 = vmatmul.mubr.bf16.vlgmr.msra.gmra.mrb[0].mxu1 %v6081_v13 }
  0xd4   : > { %3439 = vmatpush1.bf16.msra.mxu0 %v5169_v11  ;;  %3685 = vmatpush1.bf16.msra.mxu1 %v5172_v12  ;;  %v5261_v11 = vld [vmem:[%s5913_s7 + $0x75c] ss:$20 sps:$4 sm:$0xff]   ;;  %v5264_v12 = vld [vmem:[%s5913_s7 + $0x764] ss:$20 sps:$4 sm:$0xff]  }
  0xd5   : > { %3440 = vmatprep.subr.bf16.mxu0 %v5177_v14  ;;  %3686 = vmatprep.subr.bf16.mxu1 %v5180_v15  ;;  %v5259_v14 = vld [vmem:[%s5913_s7 + $0x758] ss:$20 sps:$4 sm:$0xff]   ;;  %v5262_v15 = vld [vmem:[%s5913_s7 + $0x760] ss:$20 sps:$4 sm:$0xff]  }
  0xd6   : > { %3470 = vmatprep.mubr.bf16.mxu0 %v6088_v17  ;;  %3716 = vmatprep.mubr.bf16.mxu1 %v6088_v17 }
  0xd8   : > { %3441 = vmatpush1.bf16.msra.mxu0 %v5175_v18  ;;  %3687 = vmatpush1.bf16.msra.mxu1 %v5178_v19  ;;  %v237_v18 = vld [vmem:[%s6566_s0 + $0x20] sm:$0xff] }
  0xd9   : > { %3442 = vmatprep.subr.bf16.mxu0 %v5183_v20  ;;  %3688 = vmatprep.subr.bf16.mxu1 %v5186_v21  ;;  %v5270_v19 = vld [vmem:[%s5913_s7 + $0x78c] ss:$20 sps:$4 sm:$0xff]   ;;  %v5268_v21 = vld [vmem:[%s5913_s7 + $0x788] ss:$20 sps:$4 sm:$0xff]  }
  0xda   : > { %v5265_v20 = vld [vmem:[%s5913_s7 + $0x780] ss:$20 sps:$4 sm:$0xff]  }
  0xdc   : > { %3443 = vmatpush1.bf16.msra.mxu0 %v5181_v22  ;;  %3689 = vmatpush1.bf16.msra.mxu1 %v5184_v23  ;;  %v6159_v22 = vpack.c.bf16 %v237_v18, %v237_v18  ;;  %v240_v23 = vld [vmem:[%s6566_s0 + $0x38] sm:$0xff]  ;;  %v5351_v18 = vld [vmem:[%s5913_s7 + $0x9b4] ss:$20 sps:$4 sm:$0xff]  }
  0xdd   : > { %3444 = vmatprep.subr.bf16.mxu0 %v5189_v24  ;;  %3690 = vmatprep.subr.bf16.mxu1 %v5192_v25  ;;  %v5273_v24 = vld [vmem:[%s5913_s7 + $0x7ac] ss:$20 sps:$4 sm:$0xff]   ;;  %v5276_v25 = vld [vmem:[%s5913_s7 + $0x7b4] ss:$20 sps:$4 sm:$0xff]  }
  0xe0   : > { %3445 = vmatpush1.bf16.msra.mxu0 %v5187_v26  ;;  %3691 = vmatpush1.bf16.msra.mxu1 %v5190_v27  ;;  %v6166_v26 = vpack.c.bf16 %v240_v23, %v240_v23  ;;  %v5271_v27 = vld [vmem:[%s5913_s7 + $0x7a8] ss:$20 sps:$4 sm:$0xff]  }
  0xe1   : > { %3446 = vmatprep.subr.bf16.mxu0 %v5195_v28  ;;  %3692 = vmatprep.subr.bf16.mxu1 %v5198_v29  ;;  %v5274_v28 = vld [vmem:[%s5913_s7 + $0x7b0] ss:$20 sps:$4 sm:$0xff]   ;;  %v5279_v29 = vld [vmem:[%s5913_s7 + $0x7d4] ss:$20 sps:$4 sm:$0xff]  }
  0xe2   : > { %v5357_v23 = vld [vmem:[%s5913_s7 + $0x9dc] ss:$20 sps:$4 sm:$0xff]  }
  0xe4   : > { %3447 = vmatpush1.bf16.msra.mxu0 %v5193_v30  ;;  %3693 = vmatpush1.bf16.msra.mxu1 %v5196_v31  ;;  %v5282_v30 = vld [vmem:[%s5913_s7 + $0x7dc] ss:$20 sps:$4 sm:$0xff]  }
  0xe5   : > { %3448 = vmatprep.subr.bf16.mxu0 %v5201_v33  ;;  %3694 = vmatprep.subr.bf16.mxu1 %v5204_v34  ;;  %v5277_v31 = vld [vmem:[%s5913_s7 + $0x7d0] ss:$20 sps:$4 sm:$0xff]   ;;  %v5280_v33 = vld [vmem:[%s5913_s7 + $0x7d8] ss:$20 sps:$4 sm:$0xff]  }
  0xe6   : > { %v5285_v34 = vld [vmem:[%s5913_s7 + $0x7fc] ss:$20 sps:$4 sm:$0xff]  }
  0xe8   : > { %3449 = vmatpush1.bf16.msra.mxu0 %v5199_v35  ;;  %3695 = vmatpush1.bf16.msra.mxu1 %v5202_v36  ;;  %v5288_v35 = vld [vmem:[%s5913_s7 + $0x804] ss:$20 sps:$4 sm:$0xff]  }
  0xe9   : > { %3450 = vmatprep.subr.bf16.mxu0 %v5207_v37  ;;  %3696 = vmatprep.subr.bf16.mxu1 %v5210_v38  ;;  %v5283_v36 = vld [vmem:[%s5913_s7 + $0x7f8] ss:$20 sps:$4 sm:$0xff]   ;;  %v5286_v37 = vld [vmem:[%s5913_s7 + $0x800] ss:$20 sps:$4 sm:$0xff]  }
  0xea   : > { %v5291_v38 = vld [vmem:[%s5913_s7 + $0x824] ss:$20 sps:$4 sm:$0xff]  }
  0xec   : > { %3451 = vmatpush1.bf16.msra.mxu0 %v5205_v39  ;;  %3697 = vmatpush1.bf16.msra.mxu1 %v5208_v40  ;;  %v5294_v39 = vld [vmem:[%s5913_s7 + $0x82c] ss:$20 sps:$4 sm:$0xff]  }
  0xed   : > { %3452 = vmatprep.subr.bf16.mxu0 %v5213_v41  ;;  %3698 = vmatprep.subr.bf16.mxu1 %v5216_v42  ;;  %v5289_v40 = vld [vmem:[%s5913_s7 + $0x820] ss:$20 sps:$4 sm:$0xff]   ;;  %v5292_v41 = vld [vmem:[%s5913_s7 + $0x828] ss:$20 sps:$4 sm:$0xff]  }
  0xee   : > { %v5297_v42 = vld [vmem:[%s5913_s7 + $0x84c] ss:$20 sps:$4 sm:$0xff]  }
  0xf0   : > { %3453 = vmatpush1.bf16.msra.mxu0 %v5211_v43  ;;  %3699 = vmatpush1.bf16.msra.mxu1 %v5214_v44  ;;  %v5300_v43 = vld [vmem:[%s5913_s7 + $0x854] ss:$20 sps:$4 sm:$0xff]  }
  0xf1   : > { %3454 = vmatprep.subr.bf16.mxu0 %v5219_v45  ;;  %3700 = vmatprep.subr.bf16.mxu1 %v5222_v46  ;;  %v5295_v44 = vld [vmem:[%s5913_s7 + $0x848] ss:$20 sps:$4 sm:$0xff]   ;;  %v5298_v45 = vld [vmem:[%s5913_s7 + $0x850] ss:$20 sps:$4 sm:$0xff]  }
  0xf2   : > { %v5303_v46 = vld [vmem:[%s5913_s7 + $0x874] ss:$20 sps:$4 sm:$0xff]  }
  0xf4   : > { %3455 = vmatpush1.bf16.msra.mxu0 %v5217_v47  ;;  %3701 = vmatpush1.bf16.msra.mxu1 %v5220_v49  ;;  %v5306_v47 = vld [vmem:[%s5913_s7 + $0x87c] ss:$20 sps:$4 sm:$0xff]  }
  0xf5   : > { %3456 = vmatprep.subr.bf16.mxu0 %v5225_v50  ;;  %3702 = vmatprep.subr.bf16.mxu1 %v5228_v51  ;;  %v5301_v49 = vld [vmem:[%s5913_s7 + $0x870] ss:$20 sps:$4 sm:$0xff]   ;;  %v5304_v50 = vld [vmem:[%s5913_s7 + $0x878] ss:$20 sps:$4 sm:$0xff]  }
  0xf6   : > { %v5309_v51 = vld [vmem:[%s5913_s7 + $0x89c] ss:$20 sps:$4 sm:$0xff]  }
  0xf8   : > { %3457 = vmatpush1.bf16.msra.mxu0 %v5223_v52  ;;  %3703 = vmatpush1.bf16.msra.mxu1 %v5226_v53  ;;  %v5312_v52 = vld [vmem:[%s5913_s7 + $0x8a4] ss:$20 sps:$4 sm:$0xff]  }
  0xf9   : > { %3458 = vmatprep.subr.bf16.mxu0 %v5231_v54  ;;  %3704 = vmatprep.subr.bf16.mxu1 %v5234_v55  ;;  %v5307_v53 = vld [vmem:[%s5913_s7 + $0x898] ss:$20 sps:$4 sm:$0xff]   ;;  %v5310_v54 = vld [vmem:[%s5913_s7 + $0x8a0] ss:$20 sps:$4 sm:$0xff]  }
  0xfa   : > { %v5315_v55 = vld [vmem:[%s5913_s7 + $0x8c4] ss:$20 sps:$4 sm:$0xff]  }
  0xfc   : > { %3459 = vmatpush1.bf16.msra.mxu0 %v5229_v56  ;;  %3705 = vmatpush1.bf16.msra.mxu1 %v5232_v57  ;;  %v5318_v56 = vld [vmem:[%s5913_s7 + $0x8cc] ss:$20 sps:$4 sm:$0xff]  }
  0xfd   : > { %3460 = vmatprep.subr.bf16.mxu0 %v5237_v58  ;;  %3706 = vmatprep.subr.bf16.mxu1 %v5240_v59  ;;  %v5313_v57 = vld [vmem:[%s5913_s7 + $0x8c0] ss:$20 sps:$4 sm:$0xff]   ;;  %v5316_v58 = vld [vmem:[%s5913_s7 + $0x8c8] ss:$20 sps:$4 sm:$0xff]  }
  0xfe   : > { %v5321_v59 = vld [vmem:[%s5913_s7 + $0x8ec] ss:$20 sps:$4 sm:$0xff]  }
 0x100   : > { %3461 = vmatpush1.bf16.msra.mxu0 %v5235_v60  ;;  %3707 = vmatpush1.bf16.msra.mxu1 %v5238_v61  ;;  %v5324_v60 = vld [vmem:[%s5913_s7 + $0x8f4] ss:$20 sps:$4 sm:$0xff]  }
 0x101   : > { %3462 = vmatprep.subr.bf16.mxu0 %v5243_v62  ;;  %3708 = vmatprep.subr.bf16.mxu1 %v5246_v63  ;;  %v5319_v61 = vld [vmem:[%s5913_s7 + $0x8e8] ss:$20 sps:$4 sm:$0xff]   ;;  %v5322_v62 = vld [vmem:[%s5913_s7 + $0x8f0] ss:$20 sps:$4 sm:$0xff]  }
 0x102   : > { %v5327_v63 = vld [vmem:[%s5913_s7 + $0x914] ss:$20 sps:$4 sm:$0xff]  }
 0x104   : > { %3463 = vmatpush1.bf16.msra.mxu0 %v5241_v0  ;;  %3709 = vmatpush1.bf16.msra.mxu1 %v5244_v1  ;;  %v5330_v0 = vld [vmem:[%s5913_s7 + $0x91c] ss:$20 sps:$4 sm:$0xff]  }
 0x105   : > { %3464 = vmatprep.subr.bf16.mxu0 %v5249_v2  ;;  %3710 = vmatprep.subr.bf16.mxu1 %v5252_v3  ;;  %v5325_v1 = vld [vmem:[%s5913_s7 + $0x910] ss:$20 sps:$4 sm:$0xff]   ;;  %v5328_v2 = vld [vmem:[%s5913_s7 + $0x918] ss:$20 sps:$4 sm:$0xff]  }
 0x106   : > { %v5333_v3 = vld [vmem:[%s5913_s7 + $0x93c] ss:$20 sps:$4 sm:$0xff]  }
 0x108   : > { %3465 = vmatpush1.bf16.msra.mxu0 %v5247_v4  ;;  %3711 = vmatpush1.bf16.msra.mxu1 %v5250_v6  ;;  %v5336_v4 = vld [vmem:[%s5913_s7 + $0x944] ss:$20 sps:$4 sm:$0xff]  }
 0x109   : > { %3466 = vmatprep.subr.bf16.mxu0 %v5255_v7  ;;  %3712 = vmatprep.subr.bf16.mxu1 %v5258_v8  ;;  %v5331_v6 = vld [vmem:[%s5913_s7 + $0x938] ss:$20 sps:$4 sm:$0xff]   ;;  %v5334_v7 = vld [vmem:[%s5913_s7 + $0x940] ss:$20 sps:$4 sm:$0xff]  }
 0x10a   : > { %v5339_v8 = vld [vmem:[%s5913_s7 + $0x964] ss:$20 sps:$4 sm:$0xff]  }
 0x10c   : > { %3467 = vmatpush1.bf16.msra.mxu0 %v5253_v9  ;;  %3713 = vmatpush1.bf16.msra.mxu1 %v5256_v10  ;;  %v5342_v9 = vld [vmem:[%s5913_s7 + $0x96c] ss:$20 sps:$4 sm:$0xff]  }
 0x10d   : > { %3468 = vmatprep.subr.bf16.mxu0 %v5261_v11  ;;  %3714 = vmatprep.subr.bf16.mxu1 %v5264_v12  ;;  %v5337_v10 = vld [vmem:[%s5913_s7 + $0x960] ss:$20 sps:$4 sm:$0xff]   ;;  %v5340_v11 = vld [vmem:[%s5913_s7 + $0x968] ss:$20 sps:$4 sm:$0xff]  }
 0x10e   : > { %v5345_v12 = vld [vmem:[%s5913_s7 + $0x98c] ss:$20 sps:$4 sm:$0xff]  }
 0x110   : > { %3469 = vmatpush1.bf16.msra.mxu0 %v5259_v14  ;;  %3715 = vmatpush1.bf16.msra.mxu1 %v5262_v15  ;;  %v5348_v14 = vld [vmem:[%s5913_s7 + $0x994] ss:$20 sps:$4 sm:$0xff]  }
 0x111   : > { %3479 = vmatprep.subr.bf16.mxu0 %v5267_v16  ;;  %3725 = vmatprep.subr.bf16.mxu1 %v5270_v19  ;;  %v5343_v15 = vld [vmem:[%s5913_s7 + $0x988] ss:$20 sps:$4 sm:$0xff]   ;;  %v5346_v16 = vld [vmem:[%s5913_s7 + $0x990] ss:$20 sps:$4 sm:$0xff]  }
 0x112   : > { %v5354_v19 = vld [vmem:[%s5913_s7 + $0x9bc] ss:$20 sps:$4 sm:$0xff]  }
 0x113   : > { %3471 = vmatmul.mubr.bf16.vlgmr.msra.gmra.mrb[0].mxu0 %v6159_v22  ;;  %3717 = vmatmul.mubr.bf16.vlgmr.msra.gmra.mrb[0].mxu1 %v6159_v22 }
 0x114   : > { %3480 = vmatpush1.bf16.msra.mxu0 %v5265_v20  ;;  %3726 = vmatpush1.bf16.msra.mxu1 %v5268_v21  ;;  %v5349_v20 = vld [vmem:[%s5913_s7 + $0x9b0] ss:$20 sps:$4 sm:$0xff]   ;;  %v5352_v21 = vld [vmem:[%s5913_s7 + $0x9b8] ss:$20 sps:$4 sm:$0xff]  }
 0x115   : > { %3481 = vmatprep.subr.bf16.mxu0 %v5273_v24  ;;  %3727 = vmatprep.subr.bf16.mxu1 %v5276_v25  ;;  %v5360_v24 = vld [vmem:[%s5913_s7 + $0x9e4] ss:$20 sps:$4 sm:$0xff]  }
 0x116   : > { %3511 = vmatprep.mubr.bf16.mxu0 %v6166_v26  ;;  %3757 = vmatprep.mubr.bf16.mxu1 %v6166_v26  ;;  %v5355_v25 = vld [vmem:[%s5913_s7 + $0x9d8] ss:$20 sps:$4 sm:$0xff]  }
 0x118   : > { %3482 = vmatpush1.bf16.msra.mxu0 %v5271_v27  ;;  %3728 = vmatpush1.bf16.msra.mxu1 %v5274_v28  ;;  %v5358_v27 = vld [vmem:[%s5913_s7 + $0x9e0] ss:$20 sps:$4 sm:$0xff]  }
 0x119   : > { %3483 = vmatprep.subr.bf16.mxu0 %v5279_v29  ;;  %3729 = vmatprep.subr.bf16.mxu1 %v5282_v30  ;;  %v239_v28 = vld [vmem:[%s6566_s0 + $0x30] sm:$0xff]  ;;  %v5363_v29 = vld [vmem:[%s5913_s7 + $0xa04] ss:$20 sps:$4 sm:$0xff]   ;;  %v5366_v30 = vld [vmem:[%s5913_s7 + $0xa0c] ss:$20 sps:$4 sm:$0xff]  }
 0x11c   : > { %3484 = vmatpush1.bf16.msra.mxu0 %v5277_v31  ;;  %3730 = vmatpush1.bf16.msra.mxu1 %v5280_v33  ;;  %v6235_v31 = vpack.c.bf16 %v239_v28, %v239_v28  ;;  %v242_v33 = vld [vmem:[%s6566_s0 + $0x48] sm:$0xff] }
 0x11d   : > { %3485 = vmatprep.subr.bf16.mxu0 %v5285_v34  ;;  %3731 = vmatprep.subr.bf16.mxu1 %v5288_v35  ;;  %v5361_v34 = vld [vmem:[%s5913_s7 + $0xa00] ss:$20 sps:$4 sm:$0xff]   ;;  %v5364_v35 = vld [vmem:[%s5913_s7 + $0xa08] ss:$20 sps:$4 sm:$0xff]  }
 0x11e   : > { %v5444_v28 = vld [vmem:[%s5913_s7 + $0xc14] ss:$20 sps:$4 sm:$0xff]  }
 0x120   : > { %3486 = vmatpush1.bf16.msra.mxu0 %v5283_v36  ;;  %3732 = vmatpush1.bf16.msra.mxu1 %v5286_v37  ;;  %v5369_v36 = vld [vmem:[%s5913_s7 + $0xa2c] ss:$20 sps:$4 sm:$0xff]   ;;  %v5372_v37 = vld [vmem:[%s5913_s7 + $0xa34] ss:$20 sps:$4 sm:$0xff]  }
 0x121   : > { %3487 = vmatprep.subr.bf16.mxu0 %v5291_v38  ;;  %3733 = vmatprep.subr.bf16.mxu1 %v5294_v39  ;;  %v6244_v38 = vpack.c.bf16 %v242_v33, %v242_v33  ;;  %v5367_v39 = vld [vmem:[%s5913_s7 + $0xa28] ss:$20 sps:$4 sm:$0xff]  }
 0x122   : > { %v5447_v33 = vld [vmem:[%s5913_s7 + $0xc34] ss:$20 sps:$4 sm:$0xff]  }
 0x124   : > { %3488 = vmatpush1.bf16.msra.mxu0 %v5289_v40  ;;  %3734 = vmatpush1.bf16.msra.mxu1 %v5292_v41  ;;  %v5370_v40 = vld [vmem:[%s5913_s7 + $0xa30] ss:$20 sps:$4 sm:$0xff]   ;;  %v5375_v41 = vld [vmem:[%s5913_s7 + $0xa54] ss:$20 sps:$4 sm:$0xff]  }
 0x125   : > { %3489 = vmatprep.subr.bf16.mxu0 %v5297_v42  ;;  %3735 = vmatprep.subr.bf16.mxu1 %v5300_v43  ;;  %v5378_v42 = vld [vmem:[%s5913_s7 + $0xa5c] ss:$20 sps:$4 sm:$0xff]  }
 0x126   : > { %v5373_v43 = vld [vmem:[%s5913_s7 + $0xa50] ss:$20 sps:$4 sm:$0xff]  }
 0x128   : > { %3490 = vmatpush1.bf16.msra.mxu0 %v5295_v44  ;;  %3736 = vmatpush1.bf16.msra.mxu1 %v5298_v45  ;;  %v5376_v44 = vld [vmem:[%s5913_s7 + $0xa58] ss:$20 sps:$4 sm:$0xff]   ;;  %v5381_v45 = vld [vmem:[%s5913_s7 + $0xa7c] ss:$20 sps:$4 sm:$0xff]  }
 0x129   : > { %3491 = vmatprep.subr.bf16.mxu0 %v5303_v46  ;;  %3737 = vmatprep.subr.bf16.mxu1 %v5306_v47  ;;  %v5384_v46 = vld [vmem:[%s5913_s7 + $0xa84] ss:$20 sps:$4 sm:$0xff]  }
 0x12a   : > { %v5379_v47 = vld [vmem:[%s5913_s7 + $0xa78] ss:$20 sps:$4 sm:$0xff]  }
 0x12c   : > { %3492 = vmatpush1.bf16.msra.mxu0 %v5301_v49  ;;  %3738 = vmatpush1.bf16.msra.mxu1 %v5304_v50  ;;  %v5382_v49 = vld [vmem:[%s5913_s7 + $0xa80] ss:$20 sps:$4 sm:$0xff]   ;;  %v5387_v50 = vld [vmem:[%s5913_s7 + $0xaa4] ss:$20 sps:$4 sm:$0xff]  }
 0x12d   : > { %3493 = vmatprep.subr.bf16.mxu0 %v5309_v51  ;;  %3739 = vmatprep.subr.bf16.mxu1 %v5312_v52  ;;  %v5390_v51 = vld [vmem:[%s5913_s7 + $0xaac] ss:$20 sps:$4 sm:$0xff]  }
 0x12e   : > { %v5385_v52 = vld [vmem:[%s5913_s7 + $0xaa0] ss:$20 sps:$4 sm:$0xff]  }
 0x130   : > { %3494 = vmatpush1.bf16.msra.mxu0 %v5307_v53  ;;  %3740 = vmatpush1.bf16.msra.mxu1 %v5310_v54  ;;  %v5388_v53 = vld [vmem:[%s5913_s7 + $0xaa8] ss:$20 sps:$4 sm:$0xff]   ;;  %v5393_v54 = vld [vmem:[%s5913_s7 + $0xacc] ss:$20 sps:$4 sm:$0xff]  }
 0x131   : > { %3495 = vmatprep.subr.bf16.mxu0 %v5315_v55  ;;  %3741 = vmatprep.subr.bf16.mxu1 %v5318_v56  ;;  %v5396_v55 = vld [vmem:[%s5913_s7 + $0xad4] ss:$20 sps:$4 sm:$0xff]  }
 0x132   : > { %v5391_v56 = vld [vmem:[%s5913_s7 + $0xac8] ss:$20 sps:$4 sm:$0xff]  }
 0x134   : > { %3496 = vmatpush1.bf16.msra.mxu0 %v5313_v57  ;;  %3742 = vmatpush1.bf16.msra.mxu1 %v5316_v58  ;;  %v5394_v57 = vld [vmem:[%s5913_s7 + $0xad0] ss:$20 sps:$4 sm:$0xff]   ;;  %v5399_v58 = vld [vmem:[%s5913_s7 + $0xaf4] ss:$20 sps:$4 sm:$0xff]  }
 0x135   : > { %3497 = vmatprep.subr.bf16.mxu0 %v5321_v59  ;;  %3743 = vmatprep.subr.bf16.mxu1 %v5324_v60  ;;  %v5402_v59 = vld [vmem:[%s5913_s7 + $0xafc] ss:$20 sps:$4 sm:$0xff]  }
 0x136   : > { %v5397_v60 = vld [vmem:[%s5913_s7 + $0xaf0] ss:$20 sps:$4 sm:$0xff]  }
 0x138   : > { %3498 = vmatpush1.bf16.msra.mxu0 %v5319_v61  ;;  %3744 = vmatpush1.bf16.msra.mxu1 %v5322_v62  ;;  %v5400_v61 = vld [vmem:[%s5913_s7 + $0xaf8] ss:$20 sps:$4 sm:$0xff]   ;;  %v5405_v62 = vld [vmem:[%s5913_s7 + $0xb1c] ss:$20 sps:$4 sm:$0xff]  }
 0x139   : > { %3499 = vmatprep.subr.bf16.mxu0 %v5327_v63  ;;  %3745 = vmatprep.subr.bf16.mxu1 %v5330_v0  ;;  %v5408_v63 = vld [vmem:[%s5913_s7 + $0xb24] ss:$20 sps:$4 sm:$0xff]  }
 0x13a   : > { %v5403_v0 = vld [vmem:[%s5913_s7 + $0xb18] ss:$20 sps:$4 sm:$0xff]  }
 0x13c   : > { %3500 = vmatpush1.bf16.msra.mxu0 %v5325_v1  ;;  %3746 = vmatpush1.bf16.msra.mxu1 %v5328_v2  ;;  %v5406_v1 = vld [vmem:[%s5913_s7 + $0xb20] ss:$20 sps:$4 sm:$0xff]   ;;  %v5411_v2 = vld [vmem:[%s5913_s7 + $0xb44] ss:$20 sps:$4 sm:$0xff]  }
 0x13d   : > { %3501 = vmatprep.subr.bf16.mxu0 %v5333_v3  ;;  %3747 = vmatprep.subr.bf16.mxu1 %v5336_v4  ;;  %v5414_v3 = vld [vmem:[%s5913_s7 + $0xb4c] ss:$20 sps:$4 sm:$0xff]  }
 0x13e   : > { %v5409_v4 = vld [vmem:[%s5913_s7 + $0xb40] ss:$20 sps:$4 sm:$0xff]  }
 0x140   : > { %3502 = vmatpush1.bf16.msra.mxu0 %v5331_v6  ;;  %3748 = vmatpush1.bf16.msra.mxu1 %v5334_v7  ;;  %v5412_v6 = vld [vmem:[%s5913_s7 + $0xb48] ss:$20 sps:$4 sm:$0xff]   ;;  %v5417_v7 = vld [vmem:[%s5913_s7 + $0xb6c] ss:$20 sps:$4 sm:$0xff]  }
 0x141   : > { %3503 = vmatprep.subr.bf16.mxu0 %v5339_v8  ;;  %3749 = vmatprep.subr.bf16.mxu1 %v5342_v9  ;;  %v5420_v8 = vld [vmem:[%s5913_s7 + $0xb74] ss:$20 sps:$4 sm:$0xff]  }
 0x142   : > { %v5415_v9 = vld [vmem:[%s5913_s7 + $0xb68] ss:$20 sps:$4 sm:$0xff]  }
 0x144   : > { %3504 = vmatpush1.bf16.msra.mxu0 %v5337_v10  ;;  %3750 = vmatpush1.bf16.msra.mxu1 %v5340_v11  ;;  %v5418_v10 = vld [vmem:[%s5913_s7 + $0xb70] ss:$20 sps:$4 sm:$0xff]   ;;  %v5423_v11 = vld [vmem:[%s5913_s7 + $0xb94] ss:$20 sps:$4 sm:$0xff]  }
 0x145   : > { %3505 = vmatprep.subr.bf16.mxu0 %v5345_v12  ;;  %3751 = vmatprep.subr.bf16.mxu1 %v5348_v14  ;;  %v5426_v12 = vld [vmem:[%s5913_s7 + $0xb9c] ss:$20 sps:$4 sm:$0xff]  }
 0x146   : > { %v5421_v14 = vld [vmem:[%s5913_s7 + $0xb90] ss:$20 sps:$4 sm:$0xff]  }
 0x148   : > { %3506 = vmatpush1.bf16.msra.mxu0 %v5343_v15  ;;  %3752 = vmatpush1.bf16.msra.mxu1 %v5346_v16  ;;  %v5424_v15 = vld [vmem:[%s5913_s7 + $0xb98] ss:$20 sps:$4 sm:$0xff]   ;;  %v5429_v16 = vld [vmem:[%s5913_s7 + $0xbbc] ss:$20 sps:$4 sm:$0xff]  }
 0x149   : > { %3507 = vmatprep.subr.bf16.mxu0 %v5351_v18  ;;  %3753 = vmatprep.subr.bf16.mxu1 %v5354_v19  ;;  %v5432_v18 = vld [vmem:[%s5913_s7 + $0xbc4] ss:$20 sps:$4 sm:$0xff]  }
 0x14a   : > { %v5427_v19 = vld [vmem:[%s5913_s7 + $0xbb8] ss:$20 sps:$4 sm:$0xff]  }
 0x14c   : > { %3508 = vmatpush1.bf16.msra.mxu0 %v5349_v20  ;;  %3754 = vmatpush1.bf16.msra.mxu1 %v5352_v21  ;;  %v5430_v20 = vld [vmem:[%s5913_s7 + $0xbc0] ss:$20 sps:$4 sm:$0xff]   ;;  %v5435_v21 = vld [vmem:[%s5913_s7 + $0xbe4] ss:$20 sps:$4 sm:$0xff]  }
 0x14d   : > { %3509 = vmatprep.subr.bf16.mxu0 %v5357_v23  ;;  %3755 = vmatprep.subr.bf16.mxu1 %v5360_v24  ;;  %v5438_v23 = vld [vmem:[%s5913_s7 + $0xbec] ss:$20 sps:$4 sm:$0xff]  }
 0x14e   : > { %v5433_v24 = vld [vmem:[%s5913_s7 + $0xbe0] ss:$20 sps:$4 sm:$0xff]  }
 0x150   : > { %3510 = vmatpush1.bf16.msra.mxu0 %v5355_v25  ;;  %3756 = vmatpush1.bf16.msra.mxu1 %v5358_v27  ;;  %v5436_v25 = vld [vmem:[%s5913_s7 + $0xbe8] ss:$20 sps:$4 sm:$0xff]   ;;  %v5441_v27 = vld [vmem:[%s5913_s7 + $0xc0c] ss:$20 sps:$4 sm:$0xff]  }
 0x151   : > { %3520 = vmatprep.subr.bf16.mxu0 %v5363_v29  ;;  %3766 = vmatprep.subr.bf16.mxu1 %v5366_v30  ;;  %v5439_v29 = vld [vmem:[%s5913_s7 + $0xc08] ss:$20 sps:$4 sm:$0xff]   ;;  %v5442_v30 = vld [vmem:[%s5913_s7 + $0xc10] ss:$20 sps:$4 sm:$0xff]  }
 0x153   : > { %3512 = vmatmul.mubr.bf16.vlgmr.msra.gmra.mrb[0].mxu0 %v6235_v31  ;;  %3758 = vmatmul.mubr.bf16.vlgmr.msra.gmra.mrb[0].mxu1 %v6235_v31 }
 0x154   : > { %3521 = vmatpush1.bf16.msra.mxu0 %v5361_v34  ;;  %3767 = vmatpush1.bf16.msra.mxu1 %v5364_v35  ;;  %v5450_v34 = vld [vmem:[%s5913_s7 + $0xc3c] ss:$20 sps:$4 sm:$0xff]  }
 0x155   : > { %3522 = vmatprep.subr.bf16.mxu0 %v5369_v36  ;;  %3768 = vmatprep.subr.bf16.mxu1 %v5372_v37  ;;  %v5445_v35 = vld [vmem:[%s5913_s7 + $0xc30] ss:$20 sps:$4 sm:$0xff]   ;;  %v5448_v36 = vld [vmem:[%s5913_s7 + $0xc38] ss:$20 sps:$4 sm:$0xff]  }
 0x156   : > { %3552 = vmatprep.mubr.bf16.mxu0 %v6244_v38  ;;  %3798 = vmatprep.mubr.bf16.mxu1 %v6244_v38  ;;  %v5453_v37 = vld [vmem:[%s5913_s7 + $0xc5c] ss:$20 sps:$4 sm:$0xff]  }
 0x158   : > { %3523 = vmatpush1.bf16.msra.mxu0 %v5367_v39  ;;  %3769 = vmatpush1.bf16.msra.mxu1 %v5370_v40  ;;  %v5456_v39 = vld [vmem:[%s5913_s7 + $0xc64] ss:$20 sps:$4 sm:$0xff]  }
 0x159   : > { %3524 = vmatprep.subr.bf16.mxu0 %v5375_v41  ;;  %3770 = vmatprep.subr.bf16.mxu1 %v5378_v42  ;;  %v5451_v40 = vld [vmem:[%s5913_s7 + $0xc58] ss:$20 sps:$4 sm:$0xff]   ;;  %v5454_v41 = vld [vmem:[%s5913_s7 + $0xc60] ss:$20 sps:$4 sm:$0xff]  }
 0x15a   : > { %v5459_v42 = vld [vmem:[%s5913_s7 + $0xc84] ss:$20 sps:$4 sm:$0xff]  }
 0x15c   : > { %3525 = vmatpush1.bf16.msra.mxu0 %v5373_v43  ;;  %3771 = vmatpush1.bf16.msra.mxu1 %v5376_v44  ;;  %v241_v43 = vld [vmem:[%s6566_s0 + $0x40] sm:$0xff] }
 0x15d   : > { %3526 = vmatprep.subr.bf16.mxu0 %v5381_v45  ;;  %3772 = vmatprep.subr.bf16.mxu1 %v5384_v46  ;;  %v5462_v44 = vld [vmem:[%s5913_s7 + $0xc8c] ss:$20 sps:$4 sm:$0xff]   ;;  %v5460_v46 = vld [vmem:[%s5913_s7 + $0xc88] ss:$20 sps:$4 sm:$0xff]  }
 0x15e   : > { %v5457_v45 = vld [vmem:[%s5913_s7 + $0xc80] ss:$20 sps:$4 sm:$0xff]  }
 0x160   : > { %3527 = vmatpush1.bf16.msra.mxu0 %v5379_v47  ;;  %3773 = vmatpush1.bf16.msra.mxu1 %v5382_v49  ;;  %v6315_v47 = vpack.c.bf16 %v241_v43, %v241_v43  ;;  %v244_v49 = vld [vmem:[%s6566_s0 + $0x58] sm:$0xff]  ;;  %v5537_v43 = vld [vmem:[%s5913_s7 + $0xe8c] ss:$20 sps:$4 sm:$0xff]  }
 0x161   : > { %3528 = vmatprep.subr.bf16.mxu0 %v5387_v50  ;;  %3774 = vmatprep.subr.bf16.mxu1 %v5390_v51  ;;  %v5465_v50 = vld [vmem:[%s5913_s7 + $0xcac] ss:$20 sps:$4 sm:$0xff]   ;;  %v5468_v51 = vld [vmem:[%s5913_s7 + $0xcb4] ss:$20 sps:$4 sm:$0xff]  }
 0x164   : > { %3529 = vmatpush1.bf16.msra.mxu0 %v5385_v52  ;;  %3775 = vmatpush1.bf16.msra.mxu1 %v5388_v53  ;;  %v5463_v52 = vld [vmem:[%s5913_s7 + $0xca8] ss:$20 sps:$4 sm:$0xff]   ;;  %v6323_v53 = vpack.c.bf16 %v244_v49, %v244_v49 }
 0x165   : > { %3530 = vmatprep.subr.bf16.mxu0 %v5393_v54  ;;  %3776 = vmatprep.subr.bf16.mxu1 %v5396_v55  ;;  %v5466_v54 = vld [vmem:[%s5913_s7 + $0xcb0] ss:$20 sps:$4 sm:$0xff]   ;;  %v5471_v55 = vld [vmem:[%s5913_s7 + $0xcd4] ss:$20 sps:$4 sm:$0xff]  }
 0x166   : > { %v5543_v49 = vld [vmem:[%s5913_s7 + $0xeb4] ss:$20 sps:$4 sm:$0xff]  }
 0x168   : > { %3531 = vmatpush1.bf16.msra.mxu0 %v5391_v56  ;;  %3777 = vmatpush1.bf16.msra.mxu1 %v5394_v57  ;;  %v5474_v56 = vld [vmem:[%s5913_s7 + $0xcdc] ss:$20 sps:$4 sm:$0xff]  }
 0x169   : > { %3532 = vmatprep.subr.bf16.mxu0 %v5399_v58  ;;  %3778 = vmatprep.subr.bf16.mxu1 %v5402_v59  ;;  %v5469_v57 = vld [vmem:[%s5913_s7 + $0xcd0] ss:$20 sps:$4 sm:$0xff]   ;;  %v5472_v58 = vld [vmem:[%s5913_s7 + $0xcd8] ss:$20 sps:$4 sm:$0xff]  }
 0x16a   : > { %v5477_v59 = vld [vmem:[%s5913_s7 + $0xcfc] ss:$20 sps:$4 sm:$0xff]  }
 0x16c   : > { %3533 = vmatpush1.bf16.msra.mxu0 %v5397_v60  ;;  %3779 = vmatpush1.bf16.msra.mxu1 %v5400_v61  ;;  %v5480_v60 = vld [vmem:[%s5913_s7 + $0xd04] ss:$20 sps:$4 sm:$0xff]  }
 0x16d   : > { %3534 = vmatprep.subr.bf16.mxu0 %v5405_v62  ;;  %3780 = vmatprep.subr.bf16.mxu1 %v5408_v63  ;;  %v5475_v61 = vld [vmem:[%s5913_s7 + $0xcf8] ss:$20 sps:$4 sm:$0xff]   ;;  %v5478_v62 = vld [vmem:[%s5913_s7 + $0xd00] ss:$20 sps:$4 sm:$0xff]  }
 0x16e   : > { %v5483_v63 = vld [vmem:[%s5913_s7 + $0xd24] ss:$20 sps:$4 sm:$0xff]  }
 0x170   : > { %3535 = vmatpush1.bf16.msra.mxu0 %v5403_v0  ;;  %3781 = vmatpush1.bf16.msra.mxu1 %v5406_v1  ;;  %v5486_v0 = vld [vmem:[%s5913_s7 + $0xd2c] ss:$20 sps:$4 sm:$0xff]  }
 0x171   : > { %3536 = vmatprep.subr.bf16.mxu0 %v5411_v2  ;;  %3782 = vmatprep.subr.bf16.mxu1 %v5414_v3  ;;  %v5481_v1 = vld [vmem:[%s5913_s7 + $0xd20] ss:$20 sps:$4 sm:$0xff]   ;;  %v5484_v2 = vld [vmem:[%s5913_s7 + $0xd28] ss:$20 sps:$4 sm:$0xff]  }
 0x172   : > { %v5489_v3 = vld [vmem:[%s5913_s7 + $0xd4c] ss:$20 sps:$4 sm:$0xff]  }
 0x174   : > { %3537 = vmatpush1.bf16.msra.mxu0 %v5409_v4  ;;  %3783 = vmatpush1.bf16.msra.mxu1 %v5412_v6  ;;  %v5492_v4 = vld [vmem:[%s5913_s7 + $0xd54] ss:$20 sps:$4 sm:$0xff]  }
 0x175   : > { %3538 = vmatprep.subr.bf16.mxu0 %v5417_v7  ;;  %3784 = vmatprep.subr.bf16.mxu1 %v5420_v8  ;;  %v5487_v6 = vld [vmem:[%s5913_s7 + $0xd48] ss:$20 sps:$4 sm:$0xff]   ;;  %v5490_v7 = vld [vmem:[%s5913_s7 + $0xd50] ss:$20 sps:$4 sm:$0xff]  }
 0x176   : > { %v5495_v8 = vld [vmem:[%s5913_s7 + $0xd74] ss:$20 sps:$4 sm:$0xff]  }
 0x178   : > { %3539 = vmatpush1.bf16.msra.mxu0 %v5415_v9  ;;  %3785 = vmatpush1.bf16.msra.mxu1 %v5418_v10  ;;  %v5498_v9 = vld [vmem:[%s5913_s7 + $0xd7c] ss:$20 sps:$4 sm:$0xff]  }
 0x179   : > { %3540 = vmatprep.subr.bf16.mxu0 %v5423_v11  ;;  %3786 = vmatprep.subr.bf16.mxu1 %v5426_v12  ;;  %v5493_v10 = vld [vmem:[%s5913_s7 + $0xd70] ss:$20 sps:$4 sm:$0xff]   ;;  %v5496_v11 = vld [vmem:[%s5913_s7 + $0xd78] ss:$20 sps:$4 sm:$0xff]  }
 0x17a   : > { %v5501_v12 = vld [vmem:[%s5913_s7 + $0xd9c] ss:$20 sps:$4 sm:$0xff]  }
 0x17c   : > { %3541 = vmatpush1.bf16.msra.mxu0 %v5421_v14  ;;  %3787 = vmatpush1.bf16.msra.mxu1 %v5424_v15  ;;  %v5504_v14 = vld [vmem:[%s5913_s7 + $0xda4] ss:$20 sps:$4 sm:$0xff]  }
 0x17d   : > { %3542 = vmatprep.subr.bf16.mxu0 %v5429_v16  ;;  %3788 = vmatprep.subr.bf16.mxu1 %v5432_v18  ;;  %v5499_v15 = vld [vmem:[%s5913_s7 + $0xd98] ss:$20 sps:$4 sm:$0xff]   ;;  %v5502_v16 = vld [vmem:[%s5913_s7 + $0xda0] ss:$20 sps:$4 sm:$0xff]  }
 0x17e   : > { %v5507_v18 = vld [vmem:[%s5913_s7 + $0xdc4] ss:$20 sps:$4 sm:$0xff]  }
 0x180   : > { %3543 = vmatpush1.bf16.msra.mxu0 %v5427_v19  ;;  %3789 = vmatpush1.bf16.msra.mxu1 %v5430_v20  ;;  %v5510_v19 = vld [vmem:[%s5913_s7 + $0xdcc] ss:$20 sps:$4 sm:$0xff]  }
 0x181   : > { %3544 = vmatprep.subr.bf16.mxu0 %v5435_v21  ;;  %3790 = vmatprep.subr.bf16.mxu1 %v5438_v23  ;;  %v5505_v20 = vld [vmem:[%s5913_s7 + $0xdc0] ss:$20 sps:$4 sm:$0xff]   ;;  %v5508_v21 = vld [vmem:[%s5913_s7 + $0xdc8] ss:$20 sps:$4 sm:$0xff]  }
 0x182   : > { %v5513_v23 = vld [vmem:[%s5913_s7 + $0xdec] ss:$20 sps:$4 sm:$0xff]  }
 0x184   : > { %3545 = vmatpush1.bf16.msra.mxu0 %v5433_v24  ;;  %3791 = vmatpush1.bf16.msra.mxu1 %v5436_v25  ;;  %v5516_v24 = vld [vmem:[%s5913_s7 + $0xdf4] ss:$20 sps:$4 sm:$0xff]  }
 0x185   : > { %3546 = vmatprep.subr.bf16.mxu0 %v5441_v27  ;;  %3792 = vmatprep.subr.bf16.mxu1 %v5444_v28  ;;  %v5511_v25 = vld [vmem:[%s5913_s7 + $0xde8] ss:$20 sps:$4 sm:$0xff]   ;;  %v5514_v27 = vld [vmem:[%s5913_s7 + $0xdf0] ss:$20 sps:$4 sm:$0xff]  }
 0x186   : > { %v5519_v28 = vld [vmem:[%s5913_s7 + $0xe14] ss:$20 sps:$4 sm:$0xff]  }
 0x188   : > { %3547 = vmatpush1.bf16.msra.mxu0 %v5439_v29  ;;  %3793 = vmatpush1.bf16.msra.mxu1 %v5442_v30  ;;  %v5522_v29 = vld [vmem:[%s5913_s7 + $0xe1c] ss:$20 sps:$4 sm:$0xff]  }
 0x189   : > { %3548 = vmatprep.subr.bf16.mxu0 %v5447_v33  ;;  %3794 = vmatprep.subr.bf16.mxu1 %v5450_v34  ;;  %v5517_v30 = vld [vmem:[%s5913_s7 + $0xe10] ss:$20 sps:$4 sm:$0xff]   ;;  %v5520_v33 = vld [vmem:[%s5913_s7 + $0xe18] ss:$20 sps:$4 sm:$0xff]  }
 0x18a   : > { %v5525_v34 = vld [vmem:[%s5913_s7 + $0xe3c] ss:$20 sps:$4 sm:$0xff]  }
 0x18c   : > { %3549 = vmatpush1.bf16.msra.mxu0 %v5445_v35  ;;  %3795 = vmatpush1.bf16.msra.mxu1 %v5448_v36  ;;  %v5528_v35 = vld [vmem:[%s5913_s7 + $0xe44] ss:$20 sps:$4 sm:$0xff]  }
 0x18d   : > { %3550 = vmatprep.subr.bf16.mxu0 %v5453_v37  ;;  %3796 = vmatprep.subr.bf16.mxu1 %v5456_v39  ;;  %v5523_v36 = vld [vmem:[%s5913_s7 + $0xe38] ss:$20 sps:$4 sm:$0xff]   ;;  %v5526_v37 = vld [vmem:[%s5913_s7 + $0xe40] ss:$20 sps:$4 sm:$0xff]  }
 0x18e   : > { %v5531_v39 = vld [vmem:[%s5913_s7 + $0xe64] ss:$20 sps:$4 sm:$0xff]  }
 0x190   : > { %3551 = vmatpush1.bf16.msra.mxu0 %v5451_v40  ;;  %3797 = vmatpush1.bf16.msra.mxu1 %v5454_v41  ;;  %v5534_v40 = vld [vmem:[%s5913_s7 + $0xe6c] ss:$20 sps:$4 sm:$0xff]  }
 0x191   : > { %3561 = vmatprep.subr.bf16.mxu0 %v5459_v42  ;;  %3807 = vmatprep.subr.bf16.mxu1 %v5462_v44  ;;  %v5529_v41 = vld [vmem:[%s5913_s7 + $0xe60] ss:$20 sps:$4 sm:$0xff]   ;;  %v5532_v42 = vld [vmem:[%s5913_s7 + $0xe68] ss:$20 sps:$4 sm:$0xff]  }
 0x192   : > { %v5540_v44 = vld [vmem:[%s5913_s7 + $0xe94] ss:$20 sps:$4 sm:$0xff]  }
 0x193   : > { %3553 = vmatmul.mubr.bf16.vlgmr.msra.gmra.mrb[0].mxu0 %v6315_v47  ;;  %3799 = vmatmul.mubr.bf16.vlgmr.msra.gmra.mrb[0].mxu1 %v6315_v47 }
 0x194   : > { %3562 = vmatpush1.bf16.msra.mxu0 %v5457_v45  ;;  %3808 = vmatpush1.bf16.msra.mxu1 %v5460_v46  ;;  %v5535_v45 = vld [vmem:[%s5913_s7 + $0xe88] ss:$20 sps:$4 sm:$0xff]   ;;  %v5538_v46 = vld [vmem:[%s5913_s7 + $0xe90] ss:$20 sps:$4 sm:$0xff]  }
 0x195   : > { %3563 = vmatprep.subr.bf16.mxu0 %v5465_v50  ;;  %3809 = vmatprep.subr.bf16.mxu1 %v5468_v51  ;;  %v5546_v50 = vld [vmem:[%s5913_s7 + $0xebc] ss:$20 sps:$4 sm:$0xff]  }
 0x196   : > { %3593 = vmatprep.mubr.bf16.mxu0 %v6323_v53  ;;  %3839 = vmatprep.mubr.bf16.mxu1 %v6323_v53  ;;  %v5541_v51 = vld [vmem:[%s5913_s7 + $0xeb0] ss:$20 sps:$4 sm:$0xff]  }
 0x198   : > { %3564 = vmatpush1.bf16.msra.mxu0 %v5463_v52  ;;  %3810 = vmatpush1.bf16.msra.mxu1 %v5466_v54  ;;  %v5544_v52 = vld [vmem:[%s5913_s7 + $0xeb8] ss:$20 sps:$4 sm:$0xff]   ;;  %v5549_v54 = vld [vmem:[%s5913_s7 + $0xedc] ss:$20 sps:$4 sm:$0xff]  }
 0x199   : > { %3565 = vmatprep.subr.bf16.mxu0 %v5471_v55  ;;  %3811 = vmatprep.subr.bf16.mxu1 %v5474_v56  ;;  %v5552_v55 = vld [vmem:[%s5913_s7 + $0xee4] ss:$20 sps:$4 sm:$0xff]  }
 0x19a   : > { %v5547_v56 = vld [vmem:[%s5913_s7 + $0xed8] ss:$20 sps:$4 sm:$0xff]  }
 0x19c   : > { %3566 = vmatpush1.bf16.msra.mxu0 %v5469_v57  ;;  %3812 = vmatpush1.bf16.msra.mxu1 %v5472_v58  ;;  %v5550_v57 = vld [vmem:[%s5913_s7 + $0xee0] ss:$20 sps:$4 sm:$0xff]  }
 0x19d   : > { %3567 = vmatprep.subr.bf16.mxu0 %v5477_v59  ;;  %3813 = vmatprep.subr.bf16.mxu1 %v5480_v60  ;;  %v243_v58 = vld [vmem:[%s6566_s0 + $0x50] sm:$0xff] }
 0x19e   : > { %v5553_v59 = vld [vmem:[%s5913_s7 + $0x150] ss:$20 sps:$4 sm:$0xff]  }
 0x19f   : > { %v5554_v60 = vld [vmem:[%s5913_s7 + $0x3d0] ss:$20 sps:$4 sm:$0xff]  }
 0x1a0   : > { %3568 = vmatpush1.bf16.msra.mxu0 %v5475_v61  ;;  %3814 = vmatpush1.bf16.msra.mxu1 %v5478_v62  ;;  %v6391_v61 = vpack.c.bf16 %v243_v58, %v243_v58  ;;  %v5555_v62 = vld [vmem:[%s5913_s7 + $0x10] ss:$20 sps:$4 sm:$0xff]   ;;  %v5610_v58 = vld [vmem:[%s5913_s7 + $0x9c0] ss:$20 sps:$4 sm:$0xff]  }
 0x1a1   : > { %3569 = vmatprep.subr.bf16.mxu0 %v5483_v63  ;;  %3815 = vmatprep.subr.bf16.mxu1 %v5486_v0  ;;  %v5556_v63 = vld [vmem:[%s5913_s7 + $0x290] ss:$20 sps:$4 sm:$0xff]   ;;  %v5557_v0 = vld [vmem:[%s5913_s7 + $0x178] ss:$20 sps:$4 sm:$0xff]  }
 0x1a4   : > { %3570 = vmatpush1.bf16.msra.mxu0 %v5481_v1  ;;  %3816 = vmatpush1.bf16.msra.mxu1 %v5484_v2  ;;  %v5558_v1 = vld [vmem:[%s5913_s7 + $0x3f8] ss:$20 sps:$4 sm:$0xff]  }
 0x1a5   : > { %3571 = vmatprep.subr.bf16.mxu0 %v5489_v3  ;;  %3817 = vmatprep.subr.bf16.mxu1 %v5492_v4  ;;  %v5559_v2 = vld [vmem:[%s5913_s7 + $0x38] ss:$20 sps:$4 sm:$0xff]   ;;  %v5561_v4 = vld [vmem:[%s5913_s7 + $0x1a0] ss:$20 sps:$4 sm:$0xff]  }
 0x1a6   : > { %v5560_v3 = vld [vmem:[%s5913_s7 + $0x2b8] ss:$20 sps:$4 sm:$0xff]  }
 0x1a8   : > { %3572 = vmatpush1.bf16.msra.mxu0 %v5487_v6  ;;  %3818 = vmatpush1.bf16.msra.mxu1 %v5490_v7  ;;  %v5562_v6 = vld [vmem:[%s5913_s7 + $0x420] ss:$20 sps:$4 sm:$0xff]  }
 0x1a9   : > { %3573 = vmatprep.subr.bf16.mxu0 %v5495_v8  ;;  %3819 = vmatprep.subr.bf16.mxu1 %v5498_v9  ;;  %v5563_v7 = vld [vmem:[%s5913_s7 + $0x60] ss:$20 sps:$4 sm:$0xff]   ;;  %v5565_v9 = vld [vmem:[%s5913_s7 + $0x1c8] ss:$20 sps:$4 sm:$0xff]  }
 0x1aa   : > { %v5564_v8 = vld [vmem:[%s5913_s7 + $0x2e0] ss:$20 sps:$4 sm:$0xff]  }
 0x1ac   : > { %3574 = vmatpush1.bf16.msra.mxu0 %v5493_v10  ;;  %3820 = vmatpush1.bf16.msra.mxu1 %v5496_v11  ;;  %v5566_v10 = vld [vmem:[%s5913_s7 + $0x448] ss:$20 sps:$4 sm:$0xff]  }
 0x1ad   : > { %3575 = vmatprep.subr.bf16.mxu0 %v5501_v12  ;;  %3821 = vmatprep.subr.bf16.mxu1 %v5504_v14  ;;  %v5567_v11 = vld [vmem:[%s5913_s7 + $0x88] ss:$20 sps:$4 sm:$0xff]   ;;  %v5570_v12 = vld [vmem:[%s5913_s7 + $0x470] ss:$20 sps:$4 sm:$0xff]  }
 0x1ae   : > { %v5571_v14 = vld [vmem:[%s5913_s7 + $0xb0] ss:$20 sps:$4 sm:$0xff]  }
 0x1b0   : > { %3576 = vmatpush1.bf16.msra.mxu0 %v5499_v15  ;;  %3822 = vmatpush1.bf16.msra.mxu1 %v5502_v16  ;;  %v5572_v15 = vld [vmem:[%s5913_s7 + $0x330] ss:$20 sps:$4 sm:$0xff]   ;;  %v5573_v16 = vld [vmem:[%s5913_s7 + $0x218] ss:$20 sps:$4 sm:$0xff]  }
 0x1b1   : > { %3577 = vmatprep.subr.bf16.mxu0 %v5507_v18  ;;  %3823 = vmatprep.subr.bf16.mxu1 %v5510_v19  ;;  %v5574_v18 = vld [vmem:[%s5913_s7 + $0x498] ss:$20 sps:$4 sm:$0xff]  }
 0x1b2   : > { %v5575_v19 = vld [vmem:[%s5913_s7 + $0xd8] ss:$20 sps:$4 sm:$0xff]  }
 0x1b4   : > { %3578 = vmatpush1.bf16.msra.mxu0 %v5505_v20  ;;  %3824 = vmatpush1.bf16.msra.mxu1 %v5508_v21  ;;  %v5576_v20 = vld [vmem:[%s5913_s7 + $0x358] ss:$20 sps:$4 sm:$0xff]   ;;  %v5577_v21 = vld [vmem:[%s5913_s7 + $0x240] ss:$20 sps:$4 sm:$0xff]  }
 0x1b5   : > { %3579 = vmatprep.subr.bf16.mxu0 %v5513_v23  ;;  %3825 = vmatprep.subr.bf16.mxu1 %v5516_v24  ;;  %v5578_v23 = vld [vmem:[%s5913_s7 + $0x4c0] ss:$20 sps:$4 sm:$0xff]  }
 0x1b6   : > { %v5579_v24 = vld [vmem:[%s5913_s7 + $0x100] ss:$20 sps:$4 sm:$0xff]  }
 0x1b8   : > { %3580 = vmatpush1.bf16.msra.mxu0 %v5511_v25  ;;  %3826 = vmatpush1.bf16.msra.mxu1 %v5514_v27  ;;  %v5580_v25 = vld [vmem:[%s5913_s7 + $0x380] ss:$20 sps:$4 sm:$0xff]   ;;  %v5581_v27 = vld [vmem:[%s5913_s7 + $0x268] ss:$20 sps:$4 sm:$0xff]  }
 0x1b9   : > { %3581 = vmatprep.subr.bf16.mxu0 %v5519_v28  ;;  %3827 = vmatprep.subr.bf16.mxu1 %v5522_v29  ;;  %v5582_v28 = vld [vmem:[%s5913_s7 + $0x4e8] ss:$20 sps:$4 sm:$0xff]  }
 0x1ba   : > { %v5583_v29 = vld [vmem:[%s5913_s7 + $0x128] ss:$20 sps:$4 sm:$0xff]  }
 0x1bc   : > { %3582 = vmatpush1.bf16.msra.mxu0 %v5517_v30  ;;  %3828 = vmatpush1.bf16.msra.mxu1 %v5520_v33  ;;  %v5584_v30 = vld [vmem:[%s5913_s7 + $0x3a8] ss:$20 sps:$4 sm:$0xff]   ;;  %v5585_v33 = vld [vmem:[%s5913_s7 + $0x650] ss:$20 sps:$4 sm:$0xff]  }
 0x1bd   : > { %3583 = vmatprep.subr.bf16.mxu0 %v5525_v34  ;;  %3829 = vmatprep.subr.bf16.mxu1 %v5528_v35  ;;  %v5586_v34 = vld [vmem:[%s5913_s7 + $0x8d0] ss:$20 sps:$4 sm:$0xff]  }
 0x1be   : > { %v5587_v35 = vld [vmem:[%s5913_s7 + $0x510] ss:$20 sps:$4 sm:$0xff]  }
 0x1c0   : > { %3584 = vmatpush1.bf16.msra.mxu0 %v5523_v36  ;;  %3830 = vmatpush1.bf16.msra.mxu1 %v5526_v37  ;;  %v5588_v36 = vld [vmem:[%s5913_s7 + $0x790] ss:$20 sps:$4 sm:$0xff]   ;;  %v5589_v37 = vld [vmem:[%s5913_s7 + $0x678] ss:$20 sps:$4 sm:$0xff]  }
 0x1c1   : > { %3585 = vmatprep.subr.bf16.mxu0 %v5531_v39  ;;  %3831 = vmatprep.subr.bf16.mxu1 %v5534_v40  ;;  %v5590_v39 = vld [vmem:[%s5913_s7 + $0x8f8] ss:$20 sps:$4 sm:$0xff]  }
 0x1c2   : > { %v5591_v40 = vld [vmem:[%s5913_s7 + $0x538] ss:$20 sps:$4 sm:$0xff]  }
 0x1c4   : > { %3586 = vmatpush1.bf16.msra.mxu0 %v5529_v41  ;;  %3832 = vmatpush1.bf16.msra.mxu1 %v5532_v42  ;;  %v5592_v41 = vld [vmem:[%s5913_s7 + $0x7b8] ss:$20 sps:$4 sm:$0xff]   ;;  %v5593_v42 = vld [vmem:[%s5913_s7 + $0x6a0] ss:$20 sps:$4 sm:$0xff]  }
 0x1c5   : > { %3587 = vmatprep.subr.bf16.mxu0 %v5537_v43  ;;  %3833 = vmatprep.subr.bf16.mxu1 %v5540_v44  ;;  %v5594_v43 = vld [vmem:[%s5913_s7 + $0x920] ss:$20 sps:$4 sm:$0xff]   ;;  %v5597_v44 = vld [vmem:[%s5913_s7 + $0x6c8] ss:$20 sps:$4 sm:$0xff]  }
 0x1c8   : > { %3588 = vmatpush1.bf16.msra.mxu0 %v5535_v45  ;;  %3834 = vmatpush1.bf16.msra.mxu1 %v5538_v46  ;;  %v5598_v45 = vld [vmem:[%s5913_s7 + $0x948] ss:$20 sps:$4 sm:$0xff]  }
 0x1c9   : > { %3589 = vmatprep.subr.bf16.mxu0 %v5543_v49  ;;  %3835 = vmatprep.subr.bf16.mxu1 %v5546_v50  ;;  %v5599_v46 = vld [vmem:[%s5913_s7 + $0x588] ss:$20 sps:$4 sm:$0xff]   ;;  %v5602_v49 = vld [vmem:[%s5913_s7 + $0x970] ss:$20 sps:$4 sm:$0xff]  }
 0x1ca   : > { %v5603_v50 = vld [vmem:[%s5913_s7 + $0x5b0] ss:$20 sps:$4 sm:$0xff]  }
 0x1cc   : > { %3590 = vmatpush1.bf16.msra.mxu0 %v5541_v51  ;;  %3836 = vmatpush1.bf16.msra.mxu1 %v5544_v52  ;;  %v5604_v51 = vld [vmem:[%s5913_s7 + $0x830] ss:$20 sps:$4 sm:$0xff]   ;;  %v5605_v52 = vld [vmem:[%s5913_s7 + $0x718] ss:$20 sps:$4 sm:$0xff]  }
 0x1cd   : > { %3591 = vmatprep.subr.bf16.mxu0 %v5549_v54  ;;  %3837 = vmatprep.subr.bf16.mxu1 %v5552_v55  ;;  %v5606_v54 = vld [vmem:[%s5913_s7 + $0x998] ss:$20 sps:$4 sm:$0xff]  }
 0x1ce   : > { %v5607_v55 = vld [vmem:[%s5913_s7 + $0x5d8] ss:$20 sps:$4 sm:$0xff]  }
 0x1d0   : > { %3592 = vmatpush1.bf16.msra.mxu0 %v5547_v56  ;;  %3838 = vmatpush1.bf16.msra.mxu1 %v5550_v57  ;;  %v5608_v56 = vld [vmem:[%s5913_s7 + $0x858] ss:$20 sps:$4 sm:$0xff]   ;;  %v5609_v57 = vld [vmem:[%s5913_s7 + $0x740] ss:$20 sps:$4 sm:$0xff]  }
 0x1d1   : > { %4750 = vmatprep.subr.bf16.mxu0 %v5553_v59  ;;  %4772 = vmatprep.subr.bf16.mxu1 %v5554_v60  ;;  %v5611_v59 = vld [vmem:[%s5913_s7 + $0x600] ss:$20 sps:$4 sm:$0xff]  }
 0x1d2   : > { %v5612_v60 = vld [vmem:[%s5913_s7 + $0x880] ss:$20 sps:$4 sm:$0xff]  }
 0x1d3   : > { %3594 = vmatmul.mubr.bf16.vlgmr.msra.gmra.mrb[0].mxu0 %v6391_v61  ;;  %3840 = vmatmul.mubr.bf16.vlgmr.msra.gmra.mrb[0].mxu1 %v6391_v61 }
 0x1d4   : > { %4751 = vmatpush3.bf16.msra.mxu0 %v5555_v62  ;;  %4773 = vmatpush3.bf16.msra.mxu1 %v5556_v63  ;;  %v5613_v62 = vld [vmem:[%s5913_s7 + $0x768] ss:$20 sps:$4 sm:$0xff]  }
 0x1d5   : > { %4752 = vmatprep.subr.bf16.mxu0 %v5557_v0  ;;  %4774 = vmatprep.subr.bf16.mxu1 %v5558_v1  ;;  %v5614_v63 = vld [vmem:[%s5913_s7 + $0x9e8] ss:$20 sps:$4 sm:$0xff]  }
 0x1d6   : > { %3880 = vmatprep.mubr.bf16.mxu0 %v5975_v48  ;;  %3920 = vmatprep.mubr.bf16.mxu1 %v6033_v32  ;;  %v5568_v48 = vld [vmem:[%s5913_s7 + $0x308] ss:$20 sps:$4 sm:$0xff]   ;;  %v5569_v32 = vld [vmem:[%s5913_s7 + $0x1f0] ss:$20 sps:$4 sm:$0xff]  }
 0x1d7   : > { %v5615_v0 = vld [vmem:[%s5913_s7 + $0x628] ss:$20 sps:$4 sm:$0xff]  }
 0x1d8   : > { %4753 = vmatpush3.bf16.msra.mxu0 %v5559_v2  ;;  %4775 = vmatpush3.bf16.msra.mxu1 %v5560_v3  ;;  %v5616_v1 = vld [vmem:[%s5913_s7 + $0x8a8] ss:$20 sps:$4 sm:$0xff]   ;;  %v5617_v2 = vld [vmem:[%s5913_s7 + $0xb50] ss:$20 sps:$4 sm:$0xff]  }
 0x1d9   : > { %4754 = vmatprep.subr.bf16.mxu0 %v5561_v4  ;;  %4776 = vmatprep.subr.bf16.mxu1 %v5562_v6  ;;  %v5618_v3 = vld [vmem:[%s5913_s7 + $0xdd0] ss:$20 sps:$4 sm:$0xff]  }
 0x1da   : > { %v5619_v4 = vld [vmem:[%s5913_s7 + $0xa10] ss:$20 sps:$4 sm:$0xff]  }
 0x1db   : > { %v5620_v6 = vld [vmem:[%s5913_s7 + $0xc90] ss:$20 sps:$4 sm:$0xff]  }
 0x1dc   : > { %4755 = vmatpush3.bf16.msra.mxu0 %v5563_v7  ;;  %4777 = vmatpush3.bf16.msra.mxu1 %v5564_v8  ;;  %v5621_v7 = vld [vmem:[%s5913_s7 + $0xb78] ss:$20 sps:$4 sm:$0xff]  }
 0x1dd   : > { %4756 = vmatprep.subr.bf16.mxu0 %v5565_v9  ;;  %4778 = vmatprep.subr.bf16.mxu1 %v5566_v10  ;;  %v5622_v8 = vld [vmem:[%s5913_s7 + $0xdf8] ss:$20 sps:$4 sm:$0xff]  }
 0x1de   : > { %v5623_v9 = vld [vmem:[%s5913_s7 + $0xa38] ss:$20 sps:$4 sm:$0xff]  }
 0x1df   : > { %v5624_v10 = vld [vmem:[%s5913_s7 + $0xcb8] ss:$20 sps:$4 sm:$0xff]  }
 0x1e0   : > { %4757 = vmatpush3.bf16.msra.mxu0 %v5567_v11  ;;  %4779 = vmatpush3.bf16.msra.mxu1 %v5568_v48  ;;  %v5625_v11 = vld [vmem:[%s5913_s7 + $0xba0] ss:$20 sps:$4 sm:$0xff]  }
 0x1e1   : > { %4758 = vmatprep.subr.bf16.mxu0 %v5569_v32  ;;  %4780 = vmatprep.subr.bf16.mxu1 %v5570_v12  ;;  %v5626_v48 = vld [vmem:[%s5913_s7 + $0xe20] ss:$20 sps:$4 sm:$0xff]   ;;  %v5629_v32 = vld [vmem:[%s5913_s7 + $0xbc8] ss:$20 sps:$4 sm:$0xff]  }
 0x1e2   : > { %v5630_v12 = vld [vmem:[%s5913_s7 + $0xe48] ss:$20 sps:$4 sm:$0xff]  }
 0x1e4   : > { %4759 = vmatpush3.bf16.msra.mxu0 %v5571_v14  ;;  %4781 = vmatpush3.bf16.msra.mxu1 %v5572_v15  ;;  %v5631_v14 = vld [vmem:[%s5913_s7 + $0xa88] ss:$20 sps:$4 sm:$0xff]   ;;  %v5634_v15 = vld [vmem:[%s5913_s7 + $0xe70] ss:$20 sps:$4 sm:$0xff]  }
 0x1e5   : > { %4760 = vmatprep.subr.bf16.mxu0 %v5573_v16  ;;  %4782 = vmatprep.subr.bf16.mxu1 %v5574_v18  ;;  %v5635_v16 = vld [vmem:[%s5913_s7 + $0xab0] ss:$20 sps:$4 sm:$0xff]  }
 0x1e6   : > { %v5636_v18 = vld [vmem:[%s5913_s7 + $0xd30] ss:$20 sps:$4 sm:$0xff]  }
 0x1e8   : > { %4761 = vmatpush3.bf16.msra.mxu0 %v5575_v19  ;;  %4783 = vmatpush3.bf16.msra.mxu1 %v5576_v20  ;;  %v5637_v19 = vld [vmem:[%s5913_s7 + $0xc18] ss:$20 sps:$4 sm:$0xff]  }
 0x1e9   : > { %4762 = vmatprep.subr.bf16.mxu0 %v5577_v21  ;;  %4784 = vmatprep.subr.bf16.mxu1 %v5578_v23  ;;  %v5638_v20 = vld [vmem:[%s5913_s7 + $0xe98] ss:$20 sps:$4 sm:$0xff]  }
 0x1ea   : > { %v5639_v21 = vld [vmem:[%s5913_s7 + $0xad8] ss:$20 sps:$4 sm:$0xff]  }
 0x1eb   : > { %v5640_v23 = vld [vmem:[%s5913_s7 + $0xd58] ss:$20 sps:$4 sm:$0xff]  }
 0x1ec   : > { %4763 = vmatpush3.bf16.msra.mxu0 %v5579_v24  ;;  %4785 = vmatpush3.bf16.msra.mxu1 %v5580_v25  ;;  %v5641_v24 = vld [vmem:[%s5913_s7 + $0xc40] ss:$20 sps:$4 sm:$0xff]  }
 0x1ed   : > { %4764 = vmatprep.subr.bf16.mxu0 %v5581_v27  ;;  %4786 = vmatprep.subr.bf16.mxu1 %v5582_v28  ;;  %v5642_v25 = vld [vmem:[%s5913_s7 + $0xec0] ss:$20 sps:$4 sm:$0xff]  }
 0x1ee   : > { %v5643_v27 = vld [vmem:[%s5913_s7 + $0xb00] ss:$20 sps:$4 sm:$0xff]  }
 0x1ef   : > { %v5644_v28 = vld [vmem:[%s5913_s7 + $0xd80] ss:$20 sps:$4 sm:$0xff]  }
 0x1f0   : > { %4765 = vmatpush3.bf16.msra.mxu0 %v5583_v29  ;;  %4787 = vmatpush3.bf16.msra.mxu1 %v5584_v30  ;;  %v5645_v29 = vld [vmem:[%s5913_s7 + $0xc68] ss:$20 sps:$4 sm:$0xff]  }
 0x1f1   : > { %4794 = vmatprep.subr.bf16.mxu0 %v5585_v33  ;;  %4816 = vmatprep.subr.bf16.mxu1 %v5586_v34  ;;  %v5646_v30 = vld [vmem:[%s5913_s7 + $0xee8] ss:$20 sps:$4 sm:$0xff]  }
 0x1f2   : > { %v5647_v33 = vld [vmem:[%s5913_s7 + $0xb28] ss:$20 sps:$4 sm:$0xff]  }
 0x1f3   : > { %3881 = vmatmul.mubr.bf16.vlgmr.msra.gmra.mrb[4].mxu0 %v6001_v5  ;;  %3921 = vmatmul.mubr.bf16.vlgmr.msra.gmra.mrb[4].mxu1 %v6081_v13  ;;  %v5595_v5 = vld [vmem:[%s5913_s7 + $0x560] ss:$20 sps:$4 sm:$0xff]   ;;  %v5648_v34 = vld [vmem:[%s5913_s7 + $0xda8] ss:$20 sps:$4 sm:$0xff]  }
 0x1f4   : > { %4795 = vmatpush3.bf16.msra.mxu0 %v5587_v35  ;;  %4817 = vmatpush3.bf16.msra.mxu1 %v5588_v36  ;;  %v5596_v13 = vld [vmem:[%s5913_s7 + $0x7e0] ss:$20 sps:$4 sm:$0xff]   ;;  %v835_v35 = vlaneseq }
 0x1f5   : > { %4796 = vmatprep.subr.bf16.mxu0 %v5589_v37  ;;  %4818 = vmatprep.subr.bf16.mxu1 %v5590_v39 }
 0x1f6   : > { %3960 = vmatprep.mubr.bf16.mxu0 %v6088_v17  ;;  %4000 = vmatprep.mubr.bf16.mxu1 %v6166_v26  ;;  %v5600_v17 = vld [vmem:[%s5913_s7 + $0x808] ss:$20 sps:$4 sm:$0xff]   ;;  %v5601_v26 = vld [vmem:[%s5913_s7 + $0x6f0] ss:$20 sps:$4 sm:$0xff]   ;;  %v6501_v36 = vshrl.u32 %v835_v35, 7 }
 0x1f8   : > { %4797 = vmatpush3.bf16.msra.mxu0 %v5591_v40  ;;  %4819 = vmatpush3.bf16.msra.mxu1 %v5592_v41  ;;  %v837_v37 = vsub.s32 0, %v6501_v36  ;;  %v845_v39 = vsub.s32 2, %v6501_v36  ;;  %v6506_v40 = vld [vmem:[%s5919_s30] sm:$0x1f]  ;;  %v841_v41 = vsub.s32 1, %v6501_v36 }
 0x1f9   : > { %4798 = vmatprep.subr.bf16.mxu0 %v5593_v42  ;;  %4820 = vmatprep.subr.bf16.mxu1 %v5594_v43  ;;  %v849_v42 = vsub.s32 3, %v6501_v36 }
 0x1fa   : > { %v838_v43 = vrot.slane %v6506_v40, %v837_v37 }
 0x1fc   : > { %4799 = vmatpush3.bf16.msra.mxu0 %v5595_v5  ;;  %4821 = vmatpush3.bf16.msra.mxu1 %v5596_v13  ;;  %v846_v5 = vrot.slane %v6506_v40, %v845_v39 }
 0x1fd   : > { %4800 = vmatprep.subr.bf16.mxu0 %v5597_v44  ;;  %4822 = vmatprep.subr.bf16.mxu1 %v5598_v45 }
 0x200   : > { %4801 = vmatpush3.bf16.msra.mxu0 %v5599_v46  ;;  %4823 = vmatpush3.bf16.msra.mxu1 %v5600_v17 }
 0x201   : > { %4802 = vmatprep.subr.bf16.mxu0 %v5601_v26  ;;  %4824 = vmatprep.subr.bf16.mxu1 %v5602_v49 }
 0x204   : > { %4803 = vmatpush3.bf16.msra.mxu0 %v5603_v50  ;;  %4825 = vmatpush3.bf16.msra.mxu1 %v5604_v51 }
 0x205   : > { %4804 = vmatprep.subr.bf16.mxu0 %v5605_v52  ;;  %4826 = vmatprep.subr.bf16.mxu1 %v5606_v54 }
 0x208   : > { %4805 = vmatpush3.bf16.msra.mxu0 %v5607_v55  ;;  %4827 = vmatpush3.bf16.msra.mxu1 %v5608_v56 }
 0x209   : > { %4806 = vmatprep.subr.bf16.mxu0 %v5609_v57  ;;  %4828 = vmatprep.subr.bf16.mxu1 %v5610_v58 }
 0x20c   : > { %4807 = vmatpush3.bf16.msra.mxu0 %v5611_v59  ;;  %4829 = vmatpush3.bf16.msra.mxu1 %v5612_v60 }
 0x20d   : > { %4808 = vmatprep.subr.bf16.mxu0 %v5613_v62  ;;  %4830 = vmatprep.subr.bf16.mxu1 %v5614_v63 }
 0x210   : > { %4809 = vmatpush3.bf16.msra.mxu0 %v5615_v0  ;;  %4831 = vmatpush3.bf16.msra.mxu1 %v5616_v1 }
 0x211   : > { %4838 = vmatprep.subr.bf16.mxu0 %v5617_v2  ;;  %4860 = vmatprep.subr.bf16.mxu1 %v5618_v3 }
 0x213   : > { %3961 = vmatmul.mubr.bf16.vlgmr.msra.gmra.mrb[8].mxu0 %v6159_v22  ;;  %4001 = vmatmul.mubr.bf16.vlgmr.msra.gmra.mrb[8].mxu1 %v6235_v31  ;;  %v5627_v22 = vld [vmem:[%s5913_s7 + $0xa60] ss:$20 sps:$4 sm:$0xff]  }
 0x214   : > { %4839 = vmatpush3.bf16.msra.mxu0 %v5619_v4  ;;  %4861 = vmatpush3.bf16.msra.mxu1 %v5620_v6  ;;  %v5628_v31 = vld [vmem:[%s5913_s7 + $0xce0] ss:$20 sps:$4 sm:$0xff]  }
 0x215   : > { %4840 = vmatprep.subr.bf16.mxu0 %v5621_v7  ;;  %4862 = vmatprep.subr.bf16.mxu1 %v5622_v8 }
 0x216   : > { %4040 = vmatprep.mubr.bf16.mxu0 %v6244_v38  ;;  %4080 = vmatprep.mubr.bf16.mxu1 %v6323_v53  ;;  %v5632_v38 = vld [vmem:[%s5913_s7 + $0xd08] ss:$20 sps:$4 sm:$0xff]   ;;  %v5633_v53 = vld [vmem:[%s5913_s7 + $0xbf0] ss:$20 sps:$4 sm:$0xff]   ;;  %s226_s7 = smul.u32 5, %s4258_s16 }
 0x218   : > { %4841 = vmatpush3.bf16.msra.mxu0 %v5623_v9  ;;  %4863 = vmatpush3.bf16.msra.mxu1 %v5624_v10  ;;  %p227_p7 = scmp.lt.s32.totalorder %s226_s7, 9 }
 0x219   : > { %4842 = vmatprep.subr.bf16.mxu0 %v5625_v11  ;;  %4864 = vmatprep.subr.bf16.mxu1 %v5626_v48 }
 0x21a   : > { %s6583_s7 = smov (!%p227_p7, %s226_s7), 9 }
 0x21b   : > { %s4265_s15 = sshll.u32 %s6583_s7, 3 }
 0x21c   : > { %4843 = vmatpush3.bf16.msra.mxu0 %v5627_v22  ;;  %4865 = vmatpush3.bf16.msra.mxu1 %v5628_v31  ;;  %s6543_s4 = scalar_lea.vmem %s6569_s3, %s4265_s15 }
 0x21d   : > { %4844 = vmatprep.subr.bf16.mxu0 %v5629_v32  ;;  %4866 = vmatprep.subr.bf16.mxu1 %v5630_v12 }
 0x220   : > { %4845 = vmatpush3.bf16.msra.mxu0 %v5631_v14  ;;  %4867 = vmatpush3.bf16.msra.mxu1 %v5632_v38  ;;  %v853_v38 = vsub.s32 4, %v6501_v36 }
 0x221   : > { %4846 = vmatprep.subr.bf16.mxu0 %v5633_v53  ;;  %4868 = vmatprep.subr.bf16.mxu1 %v5634_v15 }
 0x224   : > { %4847 = vmatpush3.bf16.msra.mxu0 %v5635_v16  ;;  %4869 = vmatpush3.bf16.msra.mxu1 %v5636_v18 }
 0x225   : > { %4848 = vmatprep.subr.bf16.mxu0 %v5637_v19  ;;  %4870 = vmatprep.subr.bf16.mxu1 %v5638_v20 }
 0x228   : > { %4849 = vmatpush3.bf16.msra.mxu0 %v5639_v21  ;;  %4871 = vmatpush3.bf16.msra.mxu1 %v5640_v23 }
 0x229   : > { %4850 = vmatprep.subr.bf16.mxu0 %v5641_v24  ;;  %4872 = vmatprep.subr.bf16.mxu1 %v5642_v25 }
 0x22c   : > { %4851 = vmatpush3.bf16.msra.mxu0 %v5643_v27  ;;  %4873 = vmatpush3.bf16.msra.mxu1 %v5644_v28 }
 0x22d   : > { %4852 = vmatprep.subr.bf16.mxu0 %v5645_v29  ;;  %4874 = vmatprep.subr.bf16.mxu1 %v5646_v30  ;;  %v854_v30 = vrot.slane %v6506_v40, %v853_v38 }
 0x230   : > { %4853 = vmatpush3.bf16.msra.mxu0 %v5647_v33  ;;  %4875 = vmatpush3.bf16.msra.mxu1 %v5648_v34 }
 0x233   : > { %4041 = vmatmul.mubr.bf16.vlgmr.msra.gmra.mrb[12].mxu0 %v6315_v47  ;;  %4081 = vmatmul.mubr.bf16.vlgmr.msra.gmra.mrb[12].mxu1 %v6391_v61  ;;  %v842_v47 = vrot.slane %v6506_v40, %v841_v41  ;;  %v850_v61 = vrot.slane %v6506_v40, %v849_v42 }
 0x2a6   : > { %v3595_v13 = vpop.f32.mrb[0].mxu0  ;;  %v3841_v44 = vpop.f32.mrb[0].mxu1 }
 0x2a7   : > { %v6514_v45 = vadd.f32 %v3595_v13, %v838_v43  ;;  %v6516_v46 = vadd.f32 %v3841_v44, %v846_v5  ;;  %v3597_v17 = vpop.f32.mrb[1].mxu0  ;;  %v3843_v26 = vpop.f32.mrb[1].mxu1 }
 0x2a8   : > { %v6518_v49 = vadd.f32 %v3597_v17, %v842_v47  ;;  %v6520_v50 = vadd.f32 %v3843_v26, %v850_v61  ;;  %v3599_v51 = vpop.f32.mrb[2].mxu0  ;;  %v3845_v52 = vpop.f32.mrb[2].mxu1 }
 0x2a9   : > { %v4093_v54 = vand.u32 2147483647, %v6514_v45  ;;  %v4095_v55 = vand.u32 2147483647, %v6516_v46  ;;  %v3600_v60 = vpop.f32.mrb[3].mxu0  ;;  %v3846_v62 = vpop.f32.mrb[3].mxu1 }
 0x2aa   : > { %v4094_v56 = vand.u32 2147483647, %v6518_v49  ;;  %v4096_v57 = vand.u32 2147483647, %v6520_v50  ;;  %v4088_v18 = vmax.f32 %v6514_v45, 0.0  ;;  %v4090_v19 = vmax.f32 %v6516_v46, 0.0 }
 0x2ab   : > { %v4098_v58 = vsub.f32 0.0, %v4093_v54  ;;  %v4100_v59 = vsub.f32 0.0, %v4095_v55  ;;  %v4089_v21 = vmax.f32 %v6518_v49, 0.0  ;;  %v4091_v60 = vmax.f32 %v6520_v50, 0.0 }
 0x2ac   : > { %v4099_v63 = vsub.f32 0.0, %v4094_v56  ;;  %v4101_v0 = vsub.f32 0.0, %v4096_v57 }
 0x2ad   : > { %v4103_v1 = vmul.f32 1.442695, %v4098_v58  ;;  %v4107_v2 = vmul.f32 1.442695, %v4100_v59 }
 0x2ae   : > { %v4105_v3 = vmul.f32 1.442695, %v4099_v63  ;;  %v4109_v4 = vmul.f32 1.442695, %v4101_v0 }
 0x2af   : > { %5649 = vpow2.f32 %v4103_v1 }
 0x2b0   : > { %5651 = vpow2.f32 %v4107_v2 }
 0x2b1   : > { %5653 = vpow2.f32 %v4105_v3 }
 0x2b2   : > { %5655 = vpow2.f32 %v4109_v4 }
 0x2b9   : > { %v5650_v6 = vpop.eup %5649 }
 0x2ba   : > { %v5652_v7 = vpop.eup %5651  ;;  %v4113_v8 = vadd.f32 1.0, %v5650_v6  ;;  %v4116_v31 = vmul.f32 -0.5, %v5650_v6  ;;  %v4119_v14 = vand.u32 2147483647, %v5650_v6 }
 0x2bb   : > { %v5654_v9 = vpop.eup %5653  ;;  %v4131_v10 = vadd.f32 1.0, %v5652_v7  ;;  %v4134_v32 = vmul.f32 -0.5, %v5652_v7  ;;  %v4137_v20 = vand.u32 2147483647, %v5652_v7 }
 0x2bc   : > { %v5656_v11 = vpop.eup %5655  ;;  %5657 = vlog2.f32 %v4113_v8  ;;  %v4122_v48 = vadd.f32 1.0, %v5654_v9  ;;  %v4125_v12 = vmul.f32 -0.5, %v5654_v9  ;;  %v4117_v53 = vadd.f32 1.0, %v4116_v31 }
 0x2bd   : > { %5659 = vlog2.f32 %v4131_v10  ;;  %v4140_v22 = vadd.f32 1.0, %v5656_v11  ;;  %v4135_v15 = vadd.f32 1.0, %v4134_v32  ;;  %v4143_v16 = vmul.f32 -0.5, %v5656_v11 }
 0x2be   : > { %5661 = vlog2.f32 %v4122_v48  ;;  %v4126_v23 = vadd.f32 1.0, %v4125_v12  ;;  %vm6535_vm0 = vcmp.lt.f32.partialorder %v4119_v14, 0.0004427343  ;;  %v4128_v27 = vand.u32 2147483647, %v5654_v9 }
 0x2bf   : > { %5663 = vlog2.f32 %v4140_v22  ;;  %v4118_v35 = vmul.f32 %v5650_v6, %v4117_v53  ;;  %v4136_v36 = vmul.f32 %v5652_v7, %v4135_v15  ;;  %v4144_v37 = vadd.f32 1.0, %v4143_v16 }
 0x2c0   : > { %v4146_v5 = vand.u32 2147483647, %v5656_v11  ;;  %vm4138_vm1 = vcmp.lt.f32.partialorder %v4137_v20, 0.0004427343  ;;  %v4127_v46 = vmul.f32 %v5654_v9, %v4126_v23  ;;  %vm4129_vm2 = vcmp.lt.f32.partialorder %v4128_v27, 0.0004427343 }
 0x2c1   : > { %v4145_v58 = vmul.f32 %v5656_v11, %v4144_v37 }
 0x2c2   : > { %vm4147_vm3 = vcmp.lt.f32.partialorder %v4146_v5, 0.0004427343 }
 0x2c6   : > { %v5658_v24 = vpop.eup %5657  ;;  %v4766_v28 = vpop.f32.mrb[4].mxu0 }
 0x2c7   : > { %v4788_v29 = vpop.f32.mrb[4].mxu1  ;;  %v5660_v33 = vpop.eup %5659  ;;  %v4115_v34 = vmul.f32 0.6931472, %v5658_v24 }
 0x2c8   : > { %v4767_v39 = vpop.f32.mrb[5].mxu0  ;;  %v4789_v41 = vpop.f32.mrb[5].mxu1  ;;  %v4133_v43 = vmul.f32 0.6931472, %v5660_v33 }
 0x2c9   : > { %v5662_v42 = vpop.eup %5661  ;;  %v4768_v47 = vadd.f32 %v4767_v39, %v4766_v28  ;;  %v4790_v61 = vadd.f32 %v4789_v41, %v4788_v29  ;;  %v4769_v13 = vpop.f32.mrb[6].mxu0  ;;  %v4121_v40 = vsel %vm6535_vm0, %v4118_v35, %v4115_v34 }
 0x2ca   : > { %v4791_v44 = vpop.f32.mrb[6].mxu1  ;;  %v4124_v45 = vmul.f32 0.6931472, %v5662_v42  ;;  %v4770_v17 = vpop.f32.mrb[7].mxu0  ;;  %v4158_v51 = vadd.f32 %v4121_v40, %v4088_v18  ;;  %v4139_v52 = vsel %vm4138_vm1, %v4136_v36, %v4133_v43 }
 0x2cb   : > { %v4792_v26 = vpop.f32.mrb[7].mxu1  ;;  %v5664_v49 = vpop.eup %5663  ;;  %v3883_v54 = vadd.f32 %v4768_v47, %v854_v30  ;;  %v4160_v55 = vadd.f32 %v4139_v52, %v4090_v19 }
 0x2cc   : > { %v4130_v56 = vsel %vm4129_vm2, %v4127_v46, %v4124_v45  ;;  %v4142_v57 = vmul.f32 0.6931472, %v5664_v49  ;;  %4163 = vst [vmem:[%s6543_s4] sm:$0xff] %v4158_v51 }
 0x2cd   : > { %v4159_v59 = vadd.f32 %v4130_v56, %v4089_v21  ;;  %v3923_v62 = vadd.f32 %v4790_v61, %v3883_v54  ;;  %4165 = vst [vmem:[%s6543_s4 + $0x10] sm:$0xff] %v4160_v55 }
 0x2ce   : > { %v4148_v63 = vsel %vm4147_vm3, %v4145_v58, %v4142_v57 }
 0x2cf   : > { %4164 = vst [vmem:[%s6543_s4 + $0x8] sm:$0xff] %v4159_v59  ;;  %v4161_v0 = vadd.f32 %v4148_v63, %v4091_v60 }
 0x2d1   : > { %4166 = vst [vmem:[%s6543_s4 + $0x18] sm:$0xff] %v4161_v0 }
 0x2e6   : > { %v4810_v1 = vpop.f32.mrb[8].mxu0  ;;  %v4832_v2 = vpop.f32.mrb[8].mxu1 }
 0x2e7   : > { %v4811_v3 = vpop.f32.mrb[9].mxu0  ;;  %v4833_v4 = vpop.f32.mrb[9].mxu1 }
 0x2e8   : > { %v4812_v6 = vadd.f32 %v4811_v3, %v4810_v1  ;;  %v4834_v7 = vadd.f32 %v4833_v4, %v4832_v2  ;;  %v4813_v8 = vpop.f32.mrb[10].mxu0  ;;  %v4835_v9 = vpop.f32.mrb[10].mxu1 }
 0x2e9   : > { %v4814_v10 = vpop.f32.mrb[11].mxu0  ;;  %v4836_v11 = vpop.f32.mrb[11].mxu1 }
 0x2ea   : > { %v3963_v48 = vadd.f32 %v4812_v6, %v3923_v62 }
 0x2ec   : > { %v4003_v22 = vadd.f32 %v4834_v7, %v3963_v48 }
 0x306   : > { %v4854_v50 = vpop.f32.mrb[12].mxu0  ;;  %v4876_v31 = vpop.f32.mrb[12].mxu1 }
 0x307   : > { %v4855_v32 = vpop.f32.mrb[13].mxu0  ;;  %v4877_v12 = vpop.f32.mrb[13].mxu1 }
 0x308   : > { %v4856_v14 = vadd.f32 %v4855_v32, %v4854_v50  ;;  %v4878_v38 = vadd.f32 %v4877_v12, %v4876_v31  ;;  %v4857_v53 = vpop.f32.mrb[14].mxu0  ;;  %v4879_v15 = vpop.f32.mrb[14].mxu1 }
 0x309   : > { %v4858_v16 = vpop.f32.mrb[15].mxu0  ;;  %v4880_v18 = vpop.f32.mrb[15].mxu1 }
 0x30a   : > { %v4043_v19 = vadd.f32 %v4856_v14, %v4003_v22 }
 0x30c   : > { %v4083_v20 = vadd.f32 %v4878_v38, %v4043_v19 }
 0x30e   : > { %v4097_v21 = vand.u32 2147483647, %v4083_v20  ;;  %v4092_v36 = vmax.f32 %v4083_v20, 0.0 }
 0x310   : > { %v4102_v23 = vsub.f32 0.0, %v4097_v21 }
 0x312   : > { %v4111_v24 = vmul.f32 1.442695, %v4102_v23 }
 0x314   : > { %5665 = vpow2.f32 %v4111_v24 }
 0x31e   : > { %v5666_v25 = vpop.eup %5665 }
 0x31f   : > { %v4149_v27 = vadd.f32 1.0, %v5666_v25  ;;  %v4152_v28 = vmul.f32 -0.5, %v5666_v25  ;;  %v4155_v30 = vand.u32 2147483647, %v5666_v25 }
 0x321   : > { %5667 = vlog2.f32 %v4149_v27  ;;  %v4153_v29 = vadd.f32 1.0, %v4152_v28  ;;  %vm4156_vm4 = vcmp.lt.f32.partialorder %v4155_v30, 0.0004427343 }
 0x323   : > { %v4154_v35 = vmul.f32 %v5666_v25, %v4153_v29 }
 0x32b   : > { %v5668_v33 = vpop.eup %5667 }
 0x32c   : > { %v4151_v34 = vmul.f32 0.6931472, %v5668_v33 }
 0x32e   : > { %v4157_v37 = vsel %vm4156_vm4, %v4154_v35, %v4151_v34 }
 0x32f   : > { %v4162_v39 = vadd.f32 %v4157_v37, %v4092_v36 }
 0x331   : > { %4167 = vst [vmem:[%s6543_s4 + $0x20] sm:$0xff] %v4162_v39 }
 0x332 PF: > { %p16_p8 = scmp.ge.s32.totalorder %s5814_s17, 4   ;;  %s6578_s12 = smov %s5759_s13 }
 0x333   : > { %s6579_s13 = smov %s5763_s14  ;;  %s6580_s14 = smov %s5824_s20 }
 0x334   : > { %s6581_s15 = smov %s5814_s17  ;;  %18 = sbr.rel (!%p16_p8) target bundleno = 5 (0x5), region = 85 }
 0x33b   :  { %4190 = vsyncpa [#allocation3], 1 }
 0x33c   :  { %4192 = vsyncpa [#allocation3 + $0x1], 1 }
 0x33d   :  { %4193 = vsyncpa [#allocation5], 1 }
 0x33e   :  { %4195 = vsyncpa [#allocation5 + $0x1], 1 }

</bundles_post_ra>
